<compile_context>
chip_gen: v6e
topology: v6e:2x2x1
jax: 0.10.0
libtpu: 0.0.40
codegen_flags: <defaults>
</compile_context>

<pallas_src>
import functools

import jax
import jax.numpy as jnp
import numpy as np
from jax.experimental import pallas as pl
from jax.experimental.pallas import tpu as pltpu

EPS = 1e-5


def _round_up(x, m):
    return ((x + m - 1) // m) * m


@functools.lru_cache(maxsize=None)
def _vmem_limit_bytes():
    """~75% of physical VMEM per core, with a conservative 64 MiB fallback."""
    phys = 64 * 1024 * 1024
    try:
        info = pltpu.get_tpu_info()
        for attr in ("vmem_capacity_bytes", "vmem_size_bytes", "vmem_bytes"):
            v = getattr(info, attr, None)
            if v:
                phys = int(v)
                break
    except Exception:
        pass
    return (phys * 3) // 4


# --------------------------- in-kernel helpers ------------------------------
def _conv3x3_taps(pad_ref, w_ref, H, W):
    """3x3 'same' conv as nine per-tap bf16 MXU matmuls accumulated in f32.

    pad_ref : [H+2, W+2, C]  zero-bordered activation (f32 VMEM scratch)
    w_ref   : [9, C, C8]     bf16 taps, tap index t = dy*3 + dx
    returns : [H*W, C8]      f32 conv output
    """
    C = pad_ref.shape[-1]
    acc = None
    for dy in range(3):
        for dx in range(3):
            t = dy * 3 + dx
            # Static ref-slice load of the shifted window; merge (H, W)->H*W
            # keeps channels on the lane axis.  Cast to bf16 only for the MXU.
            lhs = pad_ref[dy:dy + H, dx:dx + W, :].reshape(H * W, C)
            part = jnp.dot(lhs.astype(jnp.bfloat16), w_ref[t],
                           preferred_element_type=jnp.float32)
            acc = part if acc is None else acc + part
    return acc


def _bn_relu(y, s_ref, ss_ref, g_ref, b_ref, inv_count):
    """Training-mode BatchNorm (biased batch stats, f32 math) + ReLU."""
    mean = s_ref[...] * inv_count                               # [1, C8]
    var = jnp.maximum(ss_ref[...] * inv_count - mean * mean, 0.0)
    inv = jax.lax.rsqrt(var + EPS)
    return jnp.maximum((y - mean) * (inv * g_ref[...]) + b_ref[...], 0.0)


# ------------------------------- kernels ------------------------------------
def conv1_stats_kernel(x_ref, w_ref, y_ref, s_ref, ss_ref, xp_ref, *, H, W):
    """Stage 1: conv1 + accumulate BN1 batch stats (sum, sum-of-squares)."""
    n = pl.program_id(0)

    @pl.when(n == 0)
    def _init():
        xp_ref[...] = jnp.zeros_like(xp_ref)    # zero halo persists over grid
        s_ref[...] = jnp.zeros_like(s_ref)
        ss_ref[...] = jnp.zeros_like(ss_ref)

    xp_ref[1:H + 1, 1:W + 1, :] = x_ref[0].astype(xp_ref.dtype)
    y = _conv3x3_taps(xp_ref, w_ref, H, W)                      # [HW, C8] f32
    y_ref[0] = y.astype(y_ref.dtype)                            # bf16 store
    s_ref[...] += jnp.sum(y, axis=0, keepdims=True)             # f32 stats
    ss_ref[...] += jnp.sum(y * y, axis=0, keepdims=True)


def bn_relu_conv2_stats_kernel(y1_ref, s1_ref, ss1_ref, g1_ref, b1_ref, w_ref,
                               y2_ref, s2_ref, ss2_ref, ap_ref,
                               *, H, W, inv_count):
    """Stage 2: BN1 + ReLU1 (fused) -> conv2 + accumulate BN2 batch stats."""
    n = pl.program_id(0)

    @pl.when(n == 0)
    def _init():
        ap_ref[...] = jnp.zeros_like(ap_ref)
        s2_ref[...] = jnp.zeros_like(s2_ref)
        ss2_ref[...] = jnp.zeros_like(ss2_ref)

    a = _bn_relu(y1_ref[0].astype(jnp.float32),
                 s1_ref, ss1_ref, g1_ref, b1_ref, inv_count)    # [HW, C8] f32
    ap_ref[1:H + 1, 1:W + 1, :] = a.reshape(H, W, a.shape[-1])
    y = _conv3x3_taps(ap_ref, w_ref, H, W)                      # [HW, C8] f32
    y2_ref[0] = y.astype(y2_ref.dtype)                          # bf16 store
    s2_ref[...] += jnp.sum(y, axis=0, keepdims=True)
    ss2_ref[...] += jnp.sum(y * y, axis=0, keepdims=True)


def bn_relu_out_kernel(y_ref, s_ref, ss_ref, g_ref, b_ref, o_ref, *, inv_count):
    """Stage 3: BN2 + ReLU2 finalize; transposed store => output is NCHW."""
    a = _bn_relu(y_ref[0].astype(jnp.float32),
                 s_ref, ss_ref, g_ref, b_ref, inv_count)        # [HW, C8] f32
    o_ref[0] = a.T.astype(o_ref.dtype)                          # [C8, HW]


# ------------------------------- wrapper -------------------------------------
def pack_params(w1, g1, b1, w2, g2, b2):
    """Repack PyTorch-shaped params into kernel layouts (C8 = round_up(Cout,8)).

    w1: [Cout, Cin, 3, 3] -> [9, Cin, C8] bf16 (tap-major, t = dy*3 + dx)
    w2: [Cout, Cout, 3, 3] -> [9, C8, C8] bf16
    gamma/beta -> [1, C8] f32.  NOTE: padded gamma/beta lanes MUST stay zero:
    padded conv outputs are exactly 0 (zero weight columns) and gamma=0 keeps
    them 0 through BN+ReLU, so nothing leaks into conv2 or the final output.
    """
    cout, cin = int(w1.shape[0]), int(w1.shape[1])
    c8 = _round_up(cout, 8)
    pc = c8 - cout

    w1p = jnp.transpose(w1, (2, 3, 1, 0))                       # [3,3,Cin,Cout]
    w1p = jnp.pad(w1p, ((0, 0), (0, 0), (0, 0), (0, pc)))
    w1p = w1p.reshape(9, cin, c8).astype(jnp.bfloat16)

    w2p = jnp.transpose(w2, (2, 3, 1, 0))                       # [3,3,Cout,Cout]
    w2p = jnp.pad(w2p, ((0, 0), (0, 0), (0, pc), (0, pc)))
    w2p = w2p.reshape(9, c8, c8).astype(jnp.bfloat16)

    pad1 = lambda v: jnp.pad(v.astype(jnp.float32), (0, pc)).reshape(1, c8)
    return dict(w1=w1p, g1=pad1(g1), b1=pad1(b1),
                w2=w2p, g2=pad1(g2), b2=pad1(b2), cout=cout)


@functools.partial(jax.jit, static_argnames=("cout",))
def _double_conv(x_nchw, w1, g1, b1, w2, g2, b2, *, cout):
    N, Cin, H, W = x_nchw.shape
    C8 = w1.shape[-1]                      # round_up(Cout, 8)
    HW = H * W
    inv_count = 1.0 / float(N * HW)
    vmem_limit = _vmem_limit_bytes()

    # Channels-last for the conv kernels (channels on the lane axis); the
    # input transpose is tiny, the output transpose is done in-kernel.
    x = jnp.transpose(x_nchw, (0, 2, 3, 1))                     # NCHW -> NHWC

    stats_spec = pl.BlockSpec((1, C8), lambda n: (0, 0))
    seq_params = pltpu.CompilerParams(
        dimension_semantics=("arbitrary",),    # BN stats accumulate over batch
        vmem_limit_bytes=vmem_limit)

    # ---- stage 1: conv1 + BN1 batch stats -----------------------------------
    y1, s1, ss1 = pl.pallas_call(
        functools.partial(conv1_stats_kernel, H=H, W=W),
        grid=(N,),
        in_specs=[pl.BlockSpec((1, H, W, Cin), lambda n: (n, 0, 0, 0)),
                  pl.BlockSpec((9, Cin, C8), lambda n: (0, 0, 0))],
        out_specs=[pl.BlockSpec((1, HW, C8), lambda n: (n, 0, 0)),
                   stats_spec, stats_spec],
        out_shape=[jax.ShapeDtypeStruct((N, HW, C8), jnp.bfloat16),
                   jax.ShapeDtypeStruct((1, C8), jnp.float32),
                   jax.ShapeDtypeStruct((1, C8), jnp.float32)],
        scratch_shapes=[pltpu.VMEM((H + 2, W + 2, Cin), jnp.float32)],
        compiler_params=seq_params,
    )(x, w1)

    # ---- stage 2: BN1 + ReLU1 + conv2 + BN2 batch stats ----------------------
    y2, s2, ss2 = pl.pallas_call(
        functools.partial(bn_relu_conv2_stats_kernel, H=H, W=W,
                          inv_count=inv_count),
        grid=(N,),
        in_specs=[pl.BlockSpec((1, HW, C8), lambda n: (n, 0, 0)),
                  stats_spec, stats_spec, stats_spec, stats_spec,
                  pl.BlockSpec((9, C8, C8), lambda n: (0, 0, 0))],
        out_specs=[pl.BlockSpec((1, HW, C8), lambda n: (n, 0, 0)),
                   stats_spec, stats_spec],
        out_shape=[jax.ShapeDtypeStruct((N, HW, C8), jnp.bfloat16),
                   jax.ShapeDtypeStruct((1, C8), jnp.float32),
                   jax.ShapeDtypeStruct((1, C8), jnp.float32)],
        scratch_shapes=[pltpu.VMEM((H + 2, W + 2, C8), jnp.float32)],
        compiler_params=seq_params,
    )(y1, s1, ss1, g1, b1, w2)

    # ---- stage 3: BN2 + ReLU2 finalize; transposed lane-dense NCHW store -----
    out_t = pl.pallas_call(
        functools.partial(bn_relu_out_kernel, inv_count=inv_count),
        grid=(N,),
        in_specs=[pl.BlockSpec((1, HW, C8), lambda n: (n, 0, 0)),
                  stats_spec, stats_spec, stats_spec, stats_spec],
        out_specs=pl.BlockSpec((1, C8, HW), lambda n: (n, 0, 0)),
        out_shape=jax.ShapeDtypeStruct((N, C8, HW), x_nchw.dtype),
        compiler_params=pltpu.CompilerParams(
            dimension_semantics=("parallel",),   # elementwise per image
            vmem_limit_bytes=vmem_limit),
    )(y2, s2, ss2, g2, b2)

    # Drop the (at most 7) padded channel rows; spatial reshape only.
    return out_t[:, :cout, :].reshape(N, cout, H, W)


def double_conv(x_nchw, params):
    return _double_conv(x_nchw, params["w1"], params["g1"], params["b1"],
                        params["w2"], params["g2"], params["b2"],
                        cout=params["cout"])


# ----------------------------- pure-JAX reference ----------------------------
def ref_double_conv(x, w1, g1, b1, w2, g2, b2):
    def stage(x, w, g, b):
        y = jax.lax.conv_general_dilated(
            x, w, window_strides=(1, 1), padding=((1, 1), (1, 1)),
            dimension_numbers=("NCHW", "OIHW", "NCHW"),
            precision=jax.lax.Precision.HIGHEST)
        mean = jnp.mean(y, axis=(0, 2, 3), keepdims=True)
        var = jnp.mean((y - mean) ** 2, axis=(0, 2, 3), keepdims=True)
        y = (y - mean) * jax.lax.rsqrt(var + EPS) \
            * g.reshape(1, -1, 1, 1) + b.reshape(1, -1, 1, 1)
        return jnp.maximum(y, 0.0)
    return stage(stage(x, w1, g1, b1), w2, g2, b2)


if __name__ == "__main__":
    N, Cin, Cout, H, W = 2, 4, 8, 16, 16

    key = jax.random.PRNGKey(0)
    k_x, k_w1, k_w2 = jax.random.split(key, 3)

    # Deterministic synthetic parameters (PyTorch shapes: [Cout, Cin, 3, 3]).
    x = jax.random.normal(k_x, (N, Cin, H, W), jnp.float32)
    w1 = jax.random.normal(k_w1, (Cout, Cin, 3, 3), jnp.float32) * 0.1
    w2 = jax.random.normal(k_w2, (Cout, Cout, 3, 3), jnp.float32) * 0.1
    g1 = jnp.ones((Cout,), jnp.float32)
    b1 = jnp.zeros((Cout,), jnp.float32)
    g2 = jnp.ones((Cout,), jnp.float32)
    b2 = jnp.zeros((Cout,), jnp.float32)

    params = pack_params(w1, g1, b1, w2, g2, b2)

    out = jax.block_until_ready(double_conv(x, params))

    ref = ref_double_conv(x, w1, g1, b1, w2, g2, b2)
    # bf16 MXU operands + bf16 inter-stage storage => looser tolerance than f32.
    np.testing.assert_allclose(np.asarray(out), np.asarray(ref),
                               rtol=3e-2, atol=3e-2)
    assert out.shape == (N, Cout, H, W)
    print("KERNEL_OK")
</pallas_src>

<mosaic_0001>
module attributes {stable_mosaic.version = 11 : i64} {
  func.func @conv1_stats_kernel(%arg0: i32, %arg1: memref<1x16x16x4xf32, #tpu.memory_space<vmem>>, %arg2: memref<9x4x8xbf16, #tpu.memory_space<vmem>>, %arg3: memref<1x256x8xbf16, #tpu.memory_space<vmem>>, %arg4: memref<1x8xf32, #tpu.memory_space<vmem>>, %arg5: memref<1x8xf32, #tpu.memory_space<vmem>>, %arg6: memref<18x18x4xf32, #tpu.memory_space<vmem>>) attributes {dimension_semantics = [#tpu.dimension_semantics<arbitrary>], iteration_bounds = array<i64: 2>, scalar_prefetch = 0 : i64, scratch_operands = 1 : i64, tpu.core_type = #tpu.core_type<tc>, window_params = [{transform_indices = @transform_0, window_bounds = array<i64: 1, 16, 16, 4>}, {pipeline_mode = #tpu.pipeline_mode<synchronous>, transform_indices = @transform_1, window_bounds = array<i64: 9, 4, 8>}, {transform_indices = @transform_2, window_bounds = array<i64: 1, 256, 8>}, {pipeline_mode = #tpu.pipeline_mode<synchronous>, transform_indices = @transform_3, window_bounds = array<i64: 1, 8>}, {pipeline_mode = #tpu.pipeline_mode<synchronous>, transform_indices = @transform_4, window_bounds = array<i64: 1, 8>}]} {
    %c0_i32 = arith.constant 0 : i32
    %0 = arith.cmpi eq, %arg0, %c0_i32 : i32
    %1 = arith.extui %0 : i1 to i32
    %c0_i32_0 = arith.constant 0 : i32
    %2 = arith.cmpi ne, %1, %c0_i32_0 : i32
    scf.if %2 {
      %cst_74 = arith.constant 0.000000e+00 : f32
      %83 = vector.broadcast %cst_74 : f32 to vector<18x18x4xf32>
      %c0_75 = arith.constant 0 : index
      %c0_76 = arith.constant 0 : index
      %c0_77 = arith.constant 0 : index
      %84 = vector.load %arg6[%c0_75, %c0_76, %c0_77] : memref<18x18x4xf32, #tpu.memory_space<vmem>>, vector<18x18x4xf32>
      tpu.vector_store %arg6[%c0_75, %c0_76, %c0_77], %83 {strides = array<i32>} : memref<18x18x4xf32, #tpu.memory_space<vmem>>, vector<18x18x4xf32>,
      %cst_78 = arith.constant 0.000000e+00 : f32
      %85 = vector.broadcast %cst_78 : f32 to vector<1x8xf32>
      %c0_79 = arith.constant 0 : index
      %c0_80 = arith.constant 0 : index
      %86 = vector.load %arg4[%c0_79, %c0_80] : memref<1x8xf32, #tpu.memory_space<vmem>>, vector<1x8xf32>
      tpu.vector_store %arg4[%c0_79, %c0_80], %85 {strides = array<i32>} : memref<1x8xf32, #tpu.memory_space<vmem>>, vector<1x8xf32>,
      %cst_81 = arith.constant 0.000000e+00 : f32
      %87 = vector.broadcast %cst_81 : f32 to vector<1x8xf32>
      %c0_82 = arith.constant 0 : index
      %c0_83 = arith.constant 0 : index
      %88 = vector.load %arg5[%c0_82, %c0_83] : memref<1x8xf32, #tpu.memory_space<vmem>>, vector<1x8xf32>
      tpu.vector_store %arg5[%c0_82, %c0_83], %87 {strides = array<i32>} : memref<1x8xf32, #tpu.memory_space<vmem>>, vector<1x8xf32>,
    } else {
    }
    %c0 = arith.constant 0 : index
    %c0_1 = arith.constant 0 : index
    %c0_2 = arith.constant 0 : index
    %c0_3 = arith.constant 0 : index
    %3 = vector.load %arg1[%c0, %c0_1, %c0_2, %c0_3] : memref<1x16x16x4xf32, #tpu.memory_space<vmem>>, vector<1x16x16x4xf32>
    %4 = vector.shape_cast %3 : vector<1x16x16x4xf32> to vector<16x16x4xf32>
    %c1 = arith.constant 1 : index
    %c1_4 = arith.constant 1 : index
    %c0_5 = arith.constant 0 : index
    %5 = vector.load %arg6[%c1, %c1_4, %c0_5] : memref<18x18x4xf32, #tpu.memory_space<vmem>>, vector<16x16x4xf32>
    tpu.vector_store %arg6[%c1, %c1_4, %c0_5], %4 {strides = array<i32>} : memref<18x18x4xf32, #tpu.memory_space<vmem>>, vector<16x16x4xf32>,
    %c0_6 = arith.constant 0 : index
    %c0_7 = arith.constant 0 : index
    %c0_8 = arith.constant 0 : index
    %6 = vector.load %arg6[%c0_6, %c0_7, %c0_8] : memref<18x18x4xf32, #tpu.memory_space<vmem>>, vector<16x16x4xf32>
    %7 = vector.shape_cast %6 : vector<16x16x4xf32> to vector<256x4xf32>
    %8 = arith.truncf %7 : vector<256x4xf32> to vector<256x4xbf16>
    %c0_9 = arith.constant 0 : index
    %c0_10 = arith.constant 0 : index
    %c0_11 = arith.constant 0 : index
    %9 = vector.load %arg2[%c0_9, %c0_10, %c0_11] : memref<9x4x8xbf16, #tpu.memory_space<vmem>>, vector<1x4x8xbf16>
    %10 = vector.shape_cast %9 : vector<1x4x8xbf16> to vector<4x8xbf16>
    %cst = arith.constant dense<0.000000e+00> : vector<256x8xf32>
    %11 = tpu.matmul %8, %10, %cst {dimension_numbers = #tpu.dot_dimension_numbers<[1], [0], [0], [1], [0, 0, 1, 1], [], []>} : vector<256x4xbf16>, vector<4x8xbf16>, vector<256x8xf32> -> vector<256x8xf32>
    %c0_12 = arith.constant 0 : index
    %c1_13 = arith.constant 1 : index
    %c0_14 = arith.constant 0 : index
    %12 = vector.load %arg6[%c0_12, %c1_13, %c0_14] : memref<18x18x4xf32, #tpu.memory_space<vmem>>, vector<16x16x4xf32>
    %13 = vector.shape_cast %12 : vector<16x16x4xf32> to vector<256x4xf32>
    %14 = arith.truncf %13 : vector<256x4xf32> to vector<256x4xbf16>
    %c1_15 = arith.constant 1 : index
    %c0_16 = arith.constant 0 : index
    %c0_17 = arith.constant 0 : index
    %15 = vector.load %arg2[%c1_15, %c0_16, %c0_17] : memref<9x4x8xbf16, #tpu.memory_space<vmem>>, vector<1x4x8xbf16>
    %16 = vector.shape_cast %15 : vector<1x4x8xbf16> to vector<4x8xbf16>
    %cst_18 = arith.constant dense<0.000000e+00> : vector<256x8xf32>
    %17 = tpu.matmul %14, %16, %cst_18 {dimension_numbers = #tpu.dot_dimension_numbers<[1], [0], [0], [1], [0, 0, 1, 1], [], []>} : vector<256x4xbf16>, vector<4x8xbf16>, vector<256x8xf32> -> vector<256x8xf32>
    %18 = arith.addf %11, %17 : vector<256x8xf32>
    %c0_19 = arith.constant 0 : index
    %c2 = arith.constant 2 : index
    %c0_20 = arith.constant 0 : index
    %19 = vector.load %arg6[%c0_19, %c2, %c0_20] : memref<18x18x4xf32, #tpu.memory_space<vmem>>, vector<16x16x4xf32>
    %20 = vector.shape_cast %19 : vector<16x16x4xf32> to vector<256x4xf32>
    %21 = arith.truncf %20 : vector<256x4xf32> to vector<256x4xbf16>
    %c2_21 = arith.constant 2 : index
    %c0_22 = arith.constant 0 : index
    %c0_23 = arith.constant 0 : index
    %22 = vector.load %arg2[%c2_21, %c0_22, %c0_23] : memref<9x4x8xbf16, #tpu.memory_space<vmem>>, vector<1x4x8xbf16>
    %23 = vector.shape_cast %22 : vector<1x4x8xbf16> to vector<4x8xbf16>
    %cst_24 = arith.constant dense<0.000000e+00> : vector<256x8xf32>
    %24 = tpu.matmul %21, %23, %cst_24 {dimension_numbers = #tpu.dot_dimension_numbers<[1], [0], [0], [1], [0, 0, 1, 1], [], []>} : vector<256x4xbf16>, vector<4x8xbf16>, vector<256x8xf32> -> vector<256x8xf32>
    %25 = arith.addf %18, %24 : vector<256x8xf32>
    %c1_25 = arith.constant 1 : index
    %c0_26 = arith.constant 0 : index
    %c0_27 = arith.constant 0 : index
    %26 = vector.load %arg6[%c1_25, %c0_26, %c0_27] : memref<18x18x4xf32, #tpu.memory_space<vmem>>, vector<16x16x4xf32>
    %27 = vector.shape_cast %26 : vector<16x16x4xf32> to vector<256x4xf32>
    %28 = arith.truncf %27 : vector<256x4xf32> to vector<256x4xbf16>
    %c3 = arith.constant 3 : index
    %c0_28 = arith.constant 0 : index
    %c0_29 = arith.constant 0 : index
    %29 = vector.load %arg2[%c3, %c0_28, %c0_29] : memref<9x4x8xbf16, #tpu.memory_space<vmem>>, vector<1x4x8xbf16>
    %30 = vector.shape_cast %29 : vector<1x4x8xbf16> to vector<4x8xbf16>
    %cst_30 = arith.constant dense<0.000000e+00> : vector<256x8xf32>
    %31 = tpu.matmul %28, %30, %cst_30 {dimension_numbers = #tpu.dot_dimension_numbers<[1], [0], [0], [1], [0, 0, 1, 1], [], []>} : vector<256x4xbf16>, vector<4x8xbf16>, vector<256x8xf32> -> vector<256x8xf32>
    %32 = arith.addf %25, %31 : vector<256x8xf32>
    %c1_31 = arith.constant 1 : index
    %c1_32 = arith.constant 1 : index
    %c0_33 = arith.constant 0 : index
    %33 = vector.load %arg6[%c1_31, %c1_32, %c0_33] : memref<18x18x4xf32, #tpu.memory_space<vmem>>, vector<16x16x4xf32>
    %34 = vector.shape_cast %33 : vector<16x16x4xf32> to vector<256x4xf32>
    %35 = arith.truncf %34 : vector<256x4xf32> to vector<256x4xbf16>
    %c4 = arith.constant 4 : index
    %c0_34 = arith.constant 0 : index
    %c0_35 = arith.constant 0 : index
    %36 = vector.load %arg2[%c4, %c0_34, %c0_35] : memref<9x4x8xbf16, #tpu.memory_space<vmem>>, vector<1x4x8xbf16>
    %37 = vector.shape_cast %36 : vector<1x4x8xbf16> to vector<4x8xbf16>
    %cst_36 = arith.constant dense<0.000000e+00> : vector<256x8xf32>
    %38 = tpu.matmul %35, %37, %cst_36 {dimension_numbers = #tpu.dot_dimension_numbers<[1], [0], [0], [1], [0, 0, 1, 1], [], []>} : vector<256x4xbf16>, vector<4x8xbf16>, vector<256x8xf32> -> vector<256x8xf32>
    %39 = arith.addf %32, %38 : vector<256x8xf32>
    %c1_37 = arith.constant 1 : index
    %c2_38 = arith.constant 2 : index
    %c0_39 = arith.constant 0 : index
    %40 = vector.load %arg6[%c1_37, %c2_38, %c0_39] : memref<18x18x4xf32, #tpu.memory_space<vmem>>, vector<16x16x4xf32>
    %41 = vector.shape_cast %40 : vector<16x16x4xf32> to vector<256x4xf32>
    %42 = arith.truncf %41 : vector<256x4xf32> to vector<256x4xbf16>
    %c5 = arith.constant 5 : index
    %c0_40 = arith.constant 0 : index
    %c0_41 = arith.constant 0 : index
    %43 = vector.load %arg2[%c5, %c0_40, %c0_41] : memref<9x4x8xbf16, #tpu.memory_space<vmem>>, vector<1x4x8xbf16>
    %44 = vector.shape_cast %43 : vector<1x4x8xbf16> to vector<4x8xbf16>
    %cst_42 = arith.constant dense<0.000000e+00> : vector<256x8xf32>
    %45 = tpu.matmul %42, %44, %cst_42 {dimension_numbers = #tpu.dot_dimension_numbers<[1], [0], [0], [1], [0, 0, 1, 1], [], []>} : vector<256x4xbf16>, vector<4x8xbf16>, vector<256x8xf32> -> vector<256x8xf32>
    %46 = arith.addf %39, %45 : vector<256x8xf32>
    %c2_43 = arith.constant 2 : index
    %c0_44 = arith.constant 0 : index
    %c0_45 = arith.constant 0 : index
    %47 = vector.load %arg6[%c2_43, %c0_44, %c0_45] : memref<18x18x4xf32, #tpu.memory_space<vmem>>, vector<16x16x4xf32>
    %48 = vector.shape_cast %47 : vector<16x16x4xf32> to vector<256x4xf32>
    %49 = arith.truncf %48 : vector<256x4xf32> to vector<256x4xbf16>
    %c6 = arith.constant 6 : index
    %c0_46 = arith.constant 0 : index
    %c0_47 = arith.constant 0 : index
    %50 = vector.load %arg2[%c6, %c0_46, %c0_47] : memref<9x4x8xbf16, #tpu.memory_space<vmem>>, vector<1x4x8xbf16>
    %51 = vector.shape_cast %50 : vector<1x4x8xbf16> to vector<4x8xbf16>
    %cst_48 = arith.constant dense<0.000000e+00> : vector<256x8xf32>
    %52 = tpu.matmul %49, %51, %cst_48 {dimension_numbers = #tpu.dot_dimension_numbers<[1], [0], [0], [1], [0, 0, 1, 1], [], []>} : vector<256x4xbf16>, vector<4x8xbf16>, vector<256x8xf32> -> vector<256x8xf32>
    %53 = arith.addf %46, %52 : vector<256x8xf32>
    %c2_49 = arith.constant 2 : index
    %c1_50 = arith.constant 1 : index
    %c0_51 = arith.constant 0 : index
    %54 = vector.load %arg6[%c2_49, %c1_50, %c0_51] : memref<18x18x4xf32, #tpu.memory_space<vmem>>, vector<16x16x4xf32>
    %55 = vector.shape_cast %54 : vector<16x16x4xf32> to vector<256x4xf32>
    %56 = arith.truncf %55 : vector<256x4xf32> to vector<256x4xbf16>
    %c7 = arith.constant 7 : index
    %c0_52 = arith.constant 0 : index
    %c0_53 = arith.constant 0 : index
    %57 = vector.load %arg2[%c7, %c0_52, %c0_53] : memref<9x4x8xbf16, #tpu.memory_space<vmem>>, vector<1x4x8xbf16>
    %58 = vector.shape_cast %57 : vector<1x4x8xbf16> to vector<4x8xbf16>
    %cst_54 = arith.constant dense<0.000000e+00> : vector<256x8xf32>
    %59 = tpu.matmul %56, %58, %cst_54 {dimension_numbers = #tpu.dot_dimension_numbers<[1], [0], [0], [1], [0, 0, 1, 1], [], []>} : vector<256x4xbf16>, vector<4x8xbf16>, vector<256x8xf32> -> vector<256x8xf32>
    %60 = arith.addf %53, %59 : vector<256x8xf32>
    %c2_55 = arith.constant 2 : index
    %c2_56 = arith.constant 2 : index
    %c0_57 = arith.constant 0 : index
    %61 = vector.load %arg6[%c2_55, %c2_56, %c0_57] : memref<18x18x4xf32, #tpu.memory_space<vmem>>, vector<16x16x4xf32>
    %62 = vector.shape_cast %61 : vector<16x16x4xf32> to vector<256x4xf32>
    %63 = arith.truncf %62 : vector<256x4xf32> to vector<256x4xbf16>
    %c8 = arith.constant 8 : index
    %c0_58 = arith.constant 0 : index
    %c0_59 = arith.constant 0 : index
    %64 = vector.load %arg2[%c8, %c0_58, %c0_59] : memref<9x4x8xbf16, #tpu.memory_space<vmem>>, vector<1x4x8xbf16>
    %65 = vector.shape_cast %64 : vector<1x4x8xbf16> to vector<4x8xbf16>
    %cst_60 = arith.constant dense<0.000000e+00> : vector<256x8xf32>
    %66 = tpu.matmul %63, %65, %cst_60 {dimension_numbers = #tpu.dot_dimension_numbers<[1], [0], [0], [1], [0, 0, 1, 1], [], []>} : vector<256x4xbf16>, vector<4x8xbf16>, vector<256x8xf32> -> vector<256x8xf32>
    %67 = arith.addf %60, %66 : vector<256x8xf32>
    %68 = arith.truncf %67 : vector<256x8xf32> to vector<256x8xbf16>
    %c0_61 = arith.constant 0 : index
    %c0_62 = arith.constant 0 : index
    %c0_63 = arith.constant 0 : index
    %69 = vector.load %arg3[%c0_61, %c0_62, %c0_63] : memref<1x256x8xbf16, #tpu.memory_space<vmem>>, vector<1x256x8xbf16>
    %70 = vector.shape_cast %69 : vector<1x256x8xbf16> to vector<256x8xbf16>
    %71 = vector.shape_cast %68 : vector<256x8xbf16> to vector<1x256x8xbf16>
    tpu.vector_store %arg3[%c0_61, %c0_62, %c0_63], %71 {strides = array<i32>} : memref<1x256x8xbf16, #tpu.memory_space<vmem>>, vector<1x256x8xbf16>,
    %c0_64 = arith.constant 0 : index
    %c0_65 = arith.constant 0 : index
    %72 = vector.load %arg4[%c0_64, %c0_65] : memref<1x8xf32, #tpu.memory_space<vmem>>, vector<1x8xf32>
    %cst_66 = arith.constant dense<0.000000e+00> : vector<8xf32>
    %73 = vector.multi_reduction <add>, %67, %cst_66 [0] : vector<256x8xf32> to vector<8xf32>
    %74 = vector.shape_cast %73 : vector<8xf32> to vector<1x8xf32>
    %75 = arith.addf %72, %74 : vector<1x8xf32>
    %c0_67 = arith.constant 0 : index
    %c0_68 = arith.constant 0 : index
    %76 = vector.load %arg4[%c0_67, %c0_68] : memref<1x8xf32, #tpu.memory_space<vmem>>, vector<1x8xf32>
    tpu.vector_store %arg4[%c0_67, %c0_68], %75 {strides = array<i32>} : memref<1x8xf32, #tpu.memory_space<vmem>>, vector<1x8xf32>,
    %c0_69 = arith.constant 0 : index
    %c0_70 = arith.constant 0 : index
    %77 = vector.load %arg5[%c0_69, %c0_70] : memref<1x8xf32, #tpu.memory_space<vmem>>, vector<1x8xf32>
    %78 = arith.mulf %67, %67 : vector<256x8xf32>
    %cst_71 = arith.constant dense<0.000000e+00> : vector<8xf32>
    %79 = vector.multi_reduction <add>, %78, %cst_71 [0] : vector<256x8xf32> to vector<8xf32>
    %80 = vector.shape_cast %79 : vector<8xf32> to vector<1x8xf32>
    %81 = arith.addf %77, %80 : vector<1x8xf32>
    %c0_72 = arith.constant 0 : index
    %c0_73 = arith.constant 0 : index
    %82 = vector.load %arg5[%c0_72, %c0_73] : memref<1x8xf32, #tpu.memory_space<vmem>>, vector<1x8xf32>
    tpu.vector_store %arg5[%c0_72, %c0_73], %81 {strides = array<i32>} : memref<1x8xf32, #tpu.memory_space<vmem>>, vector<1x8xf32>,
    return
  }
  func.func @transform_0(%arg0: i32) -> (i32, i32, i32, i32) {
    %c0_i32 = arith.constant 0 : i32
    %c0_i32_0 = arith.constant 0 : i32
    %c0_i32_1 = arith.constant 0 : i32
    %c0_i32_2 = arith.constant 0 : i32
    return %arg0, %c0_i32, %c0_i32_0, %c0_i32_1 : i32, i32, i32, i32
  }
  func.func @transform_1(%arg0: i32) -> (i32, i32, i32) {
    %c0_i32 = arith.constant 0 : i32
    %c0_i32_0 = arith.constant 0 : i32
    %c0_i32_1 = arith.constant 0 : i32
    %c0_i32_2 = arith.constant 0 : i32
    return %c0_i32, %c0_i32_0, %c0_i32_1 : i32, i32, i32
  }
  func.func @transform_2(%arg0: i32) -> (i32, i32, i32) {
    %c0_i32 = arith.constant 0 : i32
    %c0_i32_0 = arith.constant 0 : i32
    %c0_i32_1 = arith.constant 0 : i32
    return %arg0, %c0_i32, %c0_i32_0 : i32, i32, i32
  }
  func.func @transform_3(%arg0: i32) -> (i32, i32) {
    %c0_i32 = arith.constant 0 : i32
    %c0_i32_0 = arith.constant 0 : i32
    %c0_i32_1 = arith.constant 0 : i32
    return %c0_i32, %c0_i32_0 : i32, i32
  }
  func.func @transform_4(%arg0: i32) -> (i32, i32) {
    %c0_i32 = arith.constant 0 : i32
    %c0_i32_0 = arith.constant 0 : i32
    %c0_i32_1 = arith.constant 0 : i32
    return %c0_i32, %c0_i32_0 : i32, i32
  }
}

module attributes {stable_mosaic.version = 11 : i64} {
  func.func @bn_relu_out_kernel(%arg0: i32, %arg1: memref<1x256x8xbf16, #tpu.memory_space<vmem>>, %arg2: memref<1x8xf32, #tpu.memory_space<vmem>>, %arg3: memref<1x8xf32, #tpu.memory_space<vmem>>, %arg4: memref<1x8xf32, #tpu.memory_space<vmem>>, %arg5: memref<1x8xf32, #tpu.memory_space<vmem>>, %arg6: memref<1x8x256xf32, #tpu.memory_space<vmem>>) attributes {dimension_semantics = [#tpu.dimension_semantics<parallel>], iteration_bounds = array<i64: 2>, scalar_prefetch = 0 : i64, scratch_operands = 0 : i64, tpu.core_type = #tpu.core_type<tc>, window_params = [{transform_indices = @transform_0, window_bounds = array<i64: 1, 256, 8>}, {pipeline_mode = #tpu.pipeline_mode<synchronous>, transform_indices = @transform_1, window_bounds = array<i64: 1, 8>}, {pipeline_mode = #tpu.pipeline_mode<synchronous>, transform_indices = @transform_2, window_bounds = array<i64: 1, 8>}, {pipeline_mode = #tpu.pipeline_mode<synchronous>, transform_indices = @transform_3, window_bounds = array<i64: 1, 8>}, {pipeline_mode = #tpu.pipeline_mode<synchronous>, transform_indices = @transform_4, window_bounds = array<i64: 1, 8>}, {transform_indices = @transform_5, window_bounds = array<i64: 1, 8, 256>}]} {
    %c0 = arith.constant 0 : index
    %c0_0 = arith.constant 0 : index
    %c0_1 = arith.constant 0 : index
    %0 = vector.load %arg1[%c0, %c0_0, %c0_1] : memref<1x256x8xbf16, #tpu.memory_space<vmem>>, vector<1x256x8xbf16>
    %1 = vector.shape_cast %0 : vector<1x256x8xbf16> to vector<256x8xbf16>
    %2 = arith.extf %1 : vector<256x8xbf16> to vector<256x8xf32>
    %c0_2 = arith.constant 0 : index
    %c0_3 = arith.constant 0 : index
    %3 = vector.load %arg2[%c0_2, %c0_3] : memref<1x8xf32, #tpu.memory_space<vmem>>, vector<1x8xf32>
    %cst = arith.constant 0.001953125 : f32
    %4 = vector.broadcast %cst : f32 to vector<1x8xf32>
    %5 = arith.mulf %3, %4 : vector<1x8xf32>
    %c0_4 = arith.constant 0 : index
    %c0_5 = arith.constant 0 : index
    %6 = vector.load %arg3[%c0_4, %c0_5] : memref<1x8xf32, #tpu.memory_space<vmem>>, vector<1x8xf32>
    %cst_6 = arith.constant 0.001953125 : f32
    %7 = vector.broadcast %cst_6 : f32 to vector<1x8xf32>
    %8 = arith.mulf %6, %7 : vector<1x8xf32>
    %9 = arith.mulf %5, %5 : vector<1x8xf32>
    %10 = arith.subf %8, %9 : vector<1x8xf32>
    %cst_7 = arith.constant 0.000000e+00 : f32
    %11 = vector.broadcast %cst_7 : f32 to vector<1x8xf32>
    %12 = arith.maximumf %10, %11 : vector<1x8xf32>
    %cst_8 = arith.constant 9.99999974E-6 : f32
    %13 = vector.broadcast %cst_8 : f32 to vector<1x8xf32>
    %14 = arith.addf %12, %13 : vector<1x8xf32>
    %15 = math.rsqrt %14 : vector<1x8xf32>
    %16 = vector.broadcast %5 : vector<1x8xf32> to vector<256x8xf32>
    %17 = arith.subf %2, %16 : vector<256x8xf32>
    %c0_9 = arith.constant 0 : index
    %c0_10 = arith.constant 0 : index
    %18 = vector.load %arg4[%c0_9, %c0_10] : memref<1x8xf32, #tpu.memory_space<vmem>>, vector<1x8xf32>
    %19 = arith.mulf %15, %18 : vector<1x8xf32>
    %20 = vector.broadcast %19 : vector<1x8xf32> to vector<256x8xf32>
    %21 = arith.mulf %17, %20 : vector<256x8xf32>
    %c0_11 = arith.constant 0 : index
    %c0_12 = arith.constant 0 : index
    %22 = vector.load %arg5[%c0_11, %c0_12] : memref<1x8xf32, #tpu.memory_space<vmem>>, vector<1x8xf32>
    %23 = vector.broadcast %22 : vector<1x8xf32> to vector<256x8xf32>
    %24 = arith.addf %21, %23 : vector<256x8xf32>
    %cst_13 = arith.constant 0.000000e+00 : f32
    %25 = vector.broadcast %cst_13 : f32 to vector<256x8xf32>
    %26 = arith.maximumf %24, %25 : vector<256x8xf32>
    %27 = tpu.transpose %26, [1, 0] : vector<256x8xf32> -> vector<8x256xf32>
    %c0_14 = arith.constant 0 : index
    %c0_15 = arith.constant 0 : index
    %c0_16 = arith.constant 0 : index
    %28 = vector.load %arg6[%c0_14, %c0_15, %c0_16] : memref<1x8x256xf32, #tpu.memory_space<vmem>>, vector<1x8x256xf32>
    %29 = vector.shape_cast %28 : vector<1x8x256xf32> to vector<8x256xf32>
    %30 = vector.shape_cast %27 : vector<8x256xf32> to vector<1x8x256xf32>
    tpu.vector_store %arg6[%c0_14, %c0_15, %c0_16], %30 {strides = array<i32>} : memref<1x8x256xf32, #tpu.memory_space<vmem>>, vector<1x8x256xf32>,
    return
  }
  func.func @transform_0(%arg0: i32) -> (i32, i32, i32) {
    %c0_i32 = arith.constant 0 : i32
    %c0_i32_0 = arith.constant 0 : i32
    %c0_i32_1 = arith.constant 0 : i32
    return %arg0, %c0_i32, %c0_i32_0 : i32, i32, i32
  }
  func.func @transform_1(%arg0: i32) -> (i32, i32) {
    %c0_i32 = arith.constant 0 : i32
    %c0_i32_0 = arith.constant 0 : i32
    %c0_i32_1 = arith.constant 0 : i32
    return %c0_i32, %c0_i32_0 : i32, i32
  }
  func.func @transform_2(%arg0: i32) -> (i32, i32) {
    %c0_i32 = arith.constant 0 : i32
    %c0_i32_0 = arith.constant 0 : i32
    %c0_i32_1 = arith.constant 0 : i32
    return %c0_i32, %c0_i32_0 : i32, i32
  }
  func.func @transform_3(%arg0: i32) -> (i32, i32) {
    %c0_i32 = arith.constant 0 : i32
    %c0_i32_0 = arith.constant 0 : i32
    %c0_i32_1 = arith.constant 0 : i32
    return %c0_i32, %c0_i32_0 : i32, i32
  }
  func.func @transform_4(%arg0: i32) -> (i32, i32) {
    %c0_i32 = arith.constant 0 : i32
    %c0_i32_0 = arith.constant 0 : i32
    %c0_i32_1 = arith.constant 0 : i32
    return %c0_i32, %c0_i32_0 : i32, i32
  }
  func.func @transform_5(%arg0: i32) -> (i32, i32, i32) {
    %c0_i32 = arith.constant 0 : i32
    %c0_i32_0 = arith.constant 0 : i32
    %c0_i32_1 = arith.constant 0 : i32
    return %arg0, %c0_i32, %c0_i32_0 : i32, i32, i32
  }
}

module attributes {stable_mosaic.version = 11 : i64} {
  func.func @bn_relu_conv2_stats_kernel(%arg0: i32, %arg1: memref<1x256x8xbf16, #tpu.memory_space<vmem>>, %arg2: memref<1x8xf32, #tpu.memory_space<vmem>>, %arg3: memref<1x8xf32, #tpu.memory_space<vmem>>, %arg4: memref<1x8xf32, #tpu.memory_space<vmem>>, %arg5: memref<1x8xf32, #tpu.memory_space<vmem>>, %arg6: memref<9x8x8xbf16, #tpu.memory_space<vmem>>, %arg7: memref<1x256x8xbf16, #tpu.memory_space<vmem>>, %arg8: memref<1x8xf32, #tpu.memory_space<vmem>>, %arg9: memref<1x8xf32, #tpu.memory_space<vmem>>, %arg10: memref<18x18x8xf32, #tpu.memory_space<vmem>>) attributes {dimension_semantics = [#tpu.dimension_semantics<arbitrary>], iteration_bounds = array<i64: 2>, scalar_prefetch = 0 : i64, scratch_operands = 1 : i64, tpu.core_type = #tpu.core_type<tc>, window_params = [{transform_indices = @transform_0, window_bounds = array<i64: 1, 256, 8>}, {pipeline_mode = #tpu.pipeline_mode<synchronous>, transform_indices = @transform_1, window_bounds = array<i64: 1, 8>}, {pipeline_mode = #tpu.pipeline_mode<synchronous>, transform_indices = @transform_2, window_bounds = array<i64: 1, 8>}, {pipeline_mode = #tpu.pipeline_mode<synchronous>, transform_indices = @transform_3, window_bounds = array<i64: 1, 8>}, {pipeline_mode = #tpu.pipeline_mode<synchronous>, transform_indices = @transform_4, window_bounds = array<i64: 1, 8>}, {pipeline_mode = #tpu.pipeline_mode<synchronous>, transform_indices = @transform_5, window_bounds = array<i64: 9, 8, 8>}, {transform_indices = @transform_6, window_bounds = array<i64: 1, 256, 8>}, {pipeline_mode = #tpu.pipeline_mode<synchronous>, transform_indices = @transform_7, window_bounds = array<i64: 1, 8>}, {pipeline_mode = #tpu.pipeline_mode<synchronous>, transform_indices = @transform_8, window_bounds = array<i64: 1, 8>}]} {
    %c0_i32 = arith.constant 0 : i32
    %0 = arith.cmpi eq, %arg0, %c0_i32 : i32
    %1 = arith.extui %0 : i1 to i32
    %c0_i32_0 = arith.constant 0 : i32
    %2 = arith.cmpi ne, %1, %c0_i32_0 : i32
    scf.if %2 {
      %cst_86 = arith.constant 0.000000e+00 : f32
      %109 = vector.broadcast %cst_86 : f32 to vector<18x18x8xf32>
      %c0_87 = arith.constant 0 : index
      %c0_88 = arith.constant 0 : index
      %c0_89 = arith.constant 0 : index
      %110 = vector.load %arg10[%c0_87, %c0_88, %c0_89] : memref<18x18x8xf32, #tpu.memory_space<vmem>>, vector<18x18x8xf32>
      tpu.vector_store %arg10[%c0_87, %c0_88, %c0_89], %109 {strides = array<i32>} : memref<18x18x8xf32, #tpu.memory_space<vmem>>, vector<18x18x8xf32>,
      %cst_90 = arith.constant 0.000000e+00 : f32
      %111 = vector.broadcast %cst_90 : f32 to vector<1x8xf32>
      %c0_91 = arith.constant 0 : index
      %c0_92 = arith.constant 0 : index
      %112 = vector.load %arg8[%c0_91, %c0_92] : memref<1x8xf32, #tpu.memory_space<vmem>>, vector<1x8xf32>
      tpu.vector_store %arg8[%c0_91, %c0_92], %111 {strides = array<i32>} : memref<1x8xf32, #tpu.memory_space<vmem>>, vector<1x8xf32>,
      %cst_93 = arith.constant 0.000000e+00 : f32
      %113 = vector.broadcast %cst_93 : f32 to vector<1x8xf32>
      %c0_94 = arith.constant 0 : index
      %c0_95 = arith.constant 0 : index
      %114 = vector.load %arg9[%c0_94, %c0_95] : memref<1x8xf32, #tpu.memory_space<vmem>>, vector<1x8xf32>
      tpu.vector_store %arg9[%c0_94, %c0_95], %113 {strides = array<i32>} : memref<1x8xf32, #tpu.memory_space<vmem>>, vector<1x8xf32>,
    } else {
    }
    %c0 = arith.constant 0 : index
    %c0_1 = arith.constant 0 : index
    %c0_2 = arith.constant 0 : index
    %3 = vector.load %arg1[%c0, %c0_1, %c0_2] : memref<1x256x8xbf16, #tpu.memory_space<vmem>>, vector<1x256x8xbf16>
    %4 = vector.shape_cast %3 : vector<1x256x8xbf16> to vector<256x8xbf16>
    %5 = arith.extf %4 : vector<256x8xbf16> to vector<256x8xf32>
    %c0_3 = arith.constant 0 : index
    %c0_4 = arith.constant 0 : index
    %6 = vector.load %arg2[%c0_3, %c0_4] : memref<1x8xf32, #tpu.memory_space<vmem>>, vector<1x8xf32>
    %cst = arith.constant 0.001953125 : f32
    %7 = vector.broadcast %cst : f32 to vector<1x8xf32>
    %8 = arith.mulf %6, %7 : vector<1x8xf32>
    %c0_5 = arith.constant 0 : index
    %c0_6 = arith.constant 0 : index
    %9 = vector.load %arg3[%c0_5, %c0_6] : memref<1x8xf32, #tpu.memory_space<vmem>>, vector<1x8xf32>
    %cst_7 = arith.constant 0.001953125 : f32
    %10 = vector.broadcast %cst_7 : f32 to vector<1x8xf32>
    %11 = arith.mulf %9, %10 : vector<1x8xf32>
    %12 = arith.mulf %8, %8 : vector<1x8xf32>
    %13 = arith.subf %11, %12 : vector<1x8xf32>
    %cst_8 = arith.constant 0.000000e+00 : f32
    %14 = vector.broadcast %cst_8 : f32 to vector<1x8xf32>
    %15 = arith.maximumf %13, %14 : vector<1x8xf32>
    %cst_9 = arith.constant 9.99999974E-6 : f32
    %16 = vector.broadcast %cst_9 : f32 to vector<1x8xf32>
    %17 = arith.addf %15, %16 : vector<1x8xf32>
    %18 = math.rsqrt %17 : vector<1x8xf32>
    %19 = vector.broadcast %8 : vector<1x8xf32> to vector<256x8xf32>
    %20 = arith.subf %5, %19 : vector<256x8xf32>
    %c0_10 = arith.constant 0 : index
    %c0_11 = arith.constant 0 : index
    %21 = vector.load %arg4[%c0_10, %c0_11] : memref<1x8xf32, #tpu.memory_space<vmem>>, vector<1x8xf32>
    %22 = arith.mulf %18, %21 : vector<1x8xf32>
    %23 = vector.broadcast %22 : vector<1x8xf32> to vector<256x8xf32>
    %24 = arith.mulf %20, %23 : vector<256x8xf32>
    %c0_12 = arith.constant 0 : index
    %c0_13 = arith.constant 0 : index
    %25 = vector.load %arg5[%c0_12, %c0_13] : memref<1x8xf32, #tpu.memory_space<vmem>>, vector<1x8xf32>
    %26 = vector.broadcast %25 : vector<1x8xf32> to vector<256x8xf32>
    %27 = arith.addf %24, %26 : vector<256x8xf32>
    %cst_14 = arith.constant 0.000000e+00 : f32
    %28 = vector.broadcast %cst_14 : f32 to vector<256x8xf32>
    %29 = arith.maximumf %27, %28 : vector<256x8xf32>
    %30 = vector.shape_cast %29 : vector<256x8xf32> to vector<16x16x8xf32>
    %c1 = arith.constant 1 : index
    %c1_15 = arith.constant 1 : index
    %c0_16 = arith.constant 0 : index
    %31 = vector.load %arg10[%c1, %c1_15, %c0_16] : memref<18x18x8xf32, #tpu.memory_space<vmem>>, vector<16x16x8xf32>
    tpu.vector_store %arg10[%c1, %c1_15, %c0_16], %30 {strides = array<i32>} : memref<18x18x8xf32, #tpu.memory_space<vmem>>, vector<16x16x8xf32>,
    %c0_17 = arith.constant 0 : index
    %c0_18 = arith.constant 0 : index
    %c0_19 = arith.constant 0 : index
    %32 = vector.load %arg10[%c0_17, %c0_18, %c0_19] : memref<18x18x8xf32, #tpu.memory_space<vmem>>, vector<16x16x8xf32>
    %33 = vector.shape_cast %32 : vector<16x16x8xf32> to vector<256x8xf32>
    %34 = arith.truncf %33 : vector<256x8xf32> to vector<256x8xbf16>
    %c0_20 = arith.constant 0 : index
    %c0_21 = arith.constant 0 : index
    %c0_22 = arith.constant 0 : index
    %35 = vector.load %arg6[%c0_20, %c0_21, %c0_22] : memref<9x8x8xbf16, #tpu.memory_space<vmem>>, vector<1x8x8xbf16>
    %36 = vector.shape_cast %35 : vector<1x8x8xbf16> to vector<8x8xbf16>
    %cst_23 = arith.constant dense<0.000000e+00> : vector<256x8xf32>
    %37 = tpu.matmul %34, %36, %cst_23 {dimension_numbers = #tpu.dot_dimension_numbers<[1], [0], [0], [1], [0, 0, 1, 1], [], []>} : vector<256x8xbf16>, vector<8x8xbf16>, vector<256x8xf32> -> vector<256x8xf32>
    %c0_24 = arith.constant 0 : index
    %c1_25 = arith.constant 1 : index
    %c0_26 = arith.constant 0 : index
    %38 = vector.load %arg10[%c0_24, %c1_25, %c0_26] : memref<18x18x8xf32, #tpu.memory_space<vmem>>, vector<16x16x8xf32>
    %39 = vector.shape_cast %38 : vector<16x16x8xf32> to vector<256x8xf32>
    %40 = arith.truncf %39 : vector<256x8xf32> to vector<256x8xbf16>
    %c1_27 = arith.constant 1 : index
    %c0_28 = arith.constant 0 : index
    %c0_29 = arith.constant 0 : index
    %41 = vector.load %arg6[%c1_27, %c0_28, %c0_29] : memref<9x8x8xbf16, #tpu.memory_space<vmem>>, vector<1x8x8xbf16>
    %42 = vector.shape_cast %41 : vector<1x8x8xbf16> to vector<8x8xbf16>
    %cst_30 = arith.constant dense<0.000000e+00> : vector<256x8xf32>
    %43 = tpu.matmul %40, %42, %cst_30 {dimension_numbers = #tpu.dot_dimension_numbers<[1], [0], [0], [1], [0, 0, 1, 1], [], []>} : vector<256x8xbf16>, vector<8x8xbf16>, vector<256x8xf32> -> vector<256x8xf32>
    %44 = arith.addf %37, %43 : vector<256x8xf32>
    %c0_31 = arith.constant 0 : index
    %c2 = arith.constant 2 : index
    %c0_32 = arith.constant 0 : index
    %45 = vector.load %arg10[%c0_31, %c2, %c0_32] : memref<18x18x8xf32, #tpu.memory_space<vmem>>, vector<16x16x8xf32>
    %46 = vector.shape_cast %45 : vector<16x16x8xf32> to vector<256x8xf32>
    %47 = arith.truncf %46 : vector<256x8xf32> to vector<256x8xbf16>
    %c2_33 = arith.constant 2 : index
    %c0_34 = arith.constant 0 : index
    %c0_35 = arith.constant 0 : index
    %48 = vector.load %arg6[%c2_33, %c0_34, %c0_35] : memref<9x8x8xbf16, #tpu.memory_space<vmem>>, vector<1x8x8xbf16>
    %49 = vector.shape_cast %48 : vector<1x8x8xbf16> to vector<8x8xbf16>
    %cst_36 = arith.constant dense<0.000000e+00> : vector<256x8xf32>
    %50 = tpu.matmul %47, %49, %cst_36 {dimension_numbers = #tpu.dot_dimension_numbers<[1], [0], [0], [1], [0, 0, 1, 1], [], []>} : vector<256x8xbf16>, vector<8x8xbf16>, vector<256x8xf32> -> vector<256x8xf32>
    %51 = arith.addf %44, %50 : vector<256x8xf32>
    %c1_37 = arith.constant 1 : index
    %c0_38 = arith.constant 0 : index
    %c0_39 = arith.constant 0 : index
    %52 = vector.load %arg10[%c1_37, %c0_38, %c0_39] : memref<18x18x8xf32, #tpu.memory_space<vmem>>, vector<16x16x8xf32>
    %53 = vector.shape_cast %52 : vector<16x16x8xf32> to vector<256x8xf32>
    %54 = arith.truncf %53 : vector<256x8xf32> to vector<256x8xbf16>
    %c3 = arith.constant 3 : index
    %c0_40 = arith.constant 0 : index
    %c0_41 = arith.constant 0 : index
    %55 = vector.load %arg6[%c3, %c0_40, %c0_41] : memref<9x8x8xbf16, #tpu.memory_space<vmem>>, vector<1x8x8xbf16>
    %56 = vector.shape_cast %55 : vector<1x8x8xbf16> to vector<8x8xbf16>
    %cst_42 = arith.constant dense<0.000000e+00> : vector<256x8xf32>
    %57 = tpu.matmul %54, %56, %cst_42 {dimension_numbers = #tpu.dot_dimension_numbers<[1], [0], [0], [1], [0, 0, 1, 1], [], []>} : vector<256x8xbf16>, vector<8x8xbf16>, vector<256x8xf32> -> vector<256x8xf32>
    %58 = arith.addf %51, %57 : vector<256x8xf32>
    %c1_43 = arith.constant 1 : index
    %c1_44 = arith.constant 1 : index
    %c0_45 = arith.constant 0 : index
    %59 = vector.load %arg10[%c1_43, %c1_44, %c0_45] : memref<18x18x8xf32, #tpu.memory_space<vmem>>, vector<16x16x8xf32>
    %60 = vector.shape_cast %59 : vector<16x16x8xf32> to vector<256x8xf32>
    %61 = arith.truncf %60 : vector<256x8xf32> to vector<256x8xbf16>
    %c4 = arith.constant 4 : index
    %c0_46 = arith.constant 0 : index
    %c0_47 = arith.constant 0 : index
    %62 = vector.load %arg6[%c4, %c0_46, %c0_47] : memref<9x8x8xbf16, #tpu.memory_space<vmem>>, vector<1x8x8xbf16>
    %63 = vector.shape_cast %62 : vector<1x8x8xbf16> to vector<8x8xbf16>
    %cst_48 = arith.constant dense<0.000000e+00> : vector<256x8xf32>
    %64 = tpu.matmul %61, %63, %cst_48 {dimension_numbers = #tpu.dot_dimension_numbers<[1], [0], [0], [1], [0, 0, 1, 1], [], []>} : vector<256x8xbf16>, vector<8x8xbf16>, vector<256x8xf32> -> vector<256x8xf32>
    %65 = arith.addf %58, %64 : vector<256x8xf32>
    %c1_49 = arith.constant 1 : index
    %c2_50 = arith.constant 2 : index
    %c0_51 = arith.constant 0 : index
    %66 = vector.load %arg10[%c1_49, %c2_50, %c0_51] : memref<18x18x8xf32, #tpu.memory_space<vmem>>, vector<16x16x8xf32>
    %67 = vector.shape_cast %66 : vector<16x16x8xf32> to vector<256x8xf32>
    %68 = arith.truncf %67 : vector<256x8xf32> to vector<256x8xbf16>
    %c5 = arith.constant 5 : index
    %c0_52 = arith.constant 0 : index
    %c0_53 = arith.constant 0 : index
    %69 = vector.load %arg6[%c5, %c0_52, %c0_53] : memref<9x8x8xbf16, #tpu.memory_space<vmem>>, vector<1x8x8xbf16>
    %70 = vector.shape_cast %69 : vector<1x8x8xbf16> to vector<8x8xbf16>
    %cst_54 = arith.constant dense<0.000000e+00> : vector<256x8xf32>
    %71 = tpu.matmul %68, %70, %cst_54 {dimension_numbers = #tpu.dot_dimension_numbers<[1], [0], [0], [1], [0, 0, 1, 1], [], []>} : vector<256x8xbf16>, vector<8x8xbf16>, vector<256x8xf32> -> vector<256x8xf32>
    %72 = arith.addf %65, %71 : vector<256x8xf32>
    %c2_55 = arith.constant 2 : index
    %c0_56 = arith.constant 0 : index
    %c0_57 = arith.constant 0 : index
    %73 = vector.load %arg10[%c2_55, %c0_56, %c0_57] : memref<18x18x8xf32, #tpu.memory_space<vmem>>, vector<16x16x8xf32>
    %74 = vector.shape_cast %73 : vector<16x16x8xf32> to vector<256x8xf32>
    %75 = arith.truncf %74 : vector<256x8xf32> to vector<256x8xbf16>
    %c6 = arith.constant 6 : index
    %c0_58 = arith.constant 0 : index
    %c0_59 = arith.constant 0 : index
    %76 = vector.load %arg6[%c6, %c0_58, %c0_59] : memref<9x8x8xbf16, #tpu.memory_space<vmem>>, vector<1x8x8xbf16>
    %77 = vector.shape_cast %76 : vector<1x8x8xbf16> to vector<8x8xbf16>
    %cst_60 = arith.constant dense<0.000000e+00> : vector<256x8xf32>
    %78 = tpu.matmul %75, %77, %cst_60 {dimension_numbers = #tpu.dot_dimension_numbers<[1], [0], [0], [1], [0, 0, 1, 1], [], []>} : vector<256x8xbf16>, vector<8x8xbf16>, vector<256x8xf32> -> vector<256x8xf32>
    %79 = arith.addf %72, %78 : vector<256x8xf32>
    %c2_61 = arith.constant 2 : index
    %c1_62 = arith.constant 1 : index
    %c0_63 = arith.constant 0 : index
    %80 = vector.load %arg10[%c2_61, %c1_62, %c0_63] : memref<18x18x8xf32, #tpu.memory_space<vmem>>, vector<16x16x8xf32>
    %81 = vector.shape_cast %80 : vector<16x16x8xf32> to vector<256x8xf32>
    %82 = arith.truncf %81 : vector<256x8xf32> to vector<256x8xbf16>
    %c7 = arith.constant 7 : index
    %c0_64 = arith.constant 0 : index
    %c0_65 = arith.constant 0 : index
    %83 = vector.load %arg6[%c7, %c0_64, %c0_65] : memref<9x8x8xbf16, #tpu.memory_space<vmem>>, vector<1x8x8xbf16>
    %84 = vector.shape_cast %83 : vector<1x8x8xbf16> to vector<8x8xbf16>
    %cst_66 = arith.constant dense<0.000000e+00> : vector<256x8xf32>
    %85 = tpu.matmul %82, %84, %cst_66 {dimension_numbers = #tpu.dot_dimension_numbers<[1], [0], [0], [1], [0, 0, 1, 1], [], []>} : vector<256x8xbf16>, vector<8x8xbf16>, vector<256x8xf32> -> vector<256x8xf32>
    %86 = arith.addf %79, %85 : vector<256x8xf32>
    %c2_67 = arith.constant 2 : index
    %c2_68 = arith.constant 2 : index
    %c0_69 = arith.constant 0 : index
    %87 = vector.load %arg10[%c2_67, %c2_68, %c0_69] : memref<18x18x8xf32, #tpu.memory_space<vmem>>, vector<16x16x8xf32>
    %88 = vector.shape_cast %87 : vector<16x16x8xf32> to vector<256x8xf32>
    %89 = arith.truncf %88 : vector<256x8xf32> to vector<256x8xbf16>
    %c8 = arith.constant 8 : index
    %c0_70 = arith.constant 0 : index
    %c0_71 = arith.constant 0 : index
    %90 = vector.load %arg6[%c8, %c0_70, %c0_71] : memref<9x8x8xbf16, #tpu.memory_space<vmem>>, vector<1x8x8xbf16>
    %91 = vector.shape_cast %90 : vector<1x8x8xbf16> to vector<8x8xbf16>
    %cst_72 = arith.constant dense<0.000000e+00> : vector<256x8xf32>
    %92 = tpu.matmul %89, %91, %cst_72 {dimension_numbers = #tpu.dot_dimension_numbers<[1], [0], [0], [1], [0, 0, 1, 1], [], []>} : vector<256x8xbf16>, vector<8x8xbf16>, vector<256x8xf32> -> vector<256x8xf32>
    %93 = arith.addf %86, %92 : vector<256x8xf32>
    %94 = arith.truncf %93 : vector<256x8xf32> to vector<256x8xbf16>
    %c0_73 = arith.constant 0 : index
    %c0_74 = arith.constant 0 : index
    %c0_75 = arith.constant 0 : index
    %95 = vector.load %arg7[%c0_73, %c0_74, %c0_75] : memref<1x256x8xbf16, #tpu.memory_space<vmem>>, vector<1x256x8xbf16>
    %96 = vector.shape_cast %95 : vector<1x256x8xbf16> to vector<256x8xbf16>
    %97 = vector.shape_cast %94 : vector<256x8xbf16> to vector<1x256x8xbf16>
    tpu.vector_store %arg7[%c0_73, %c0_74, %c0_75], %97 {strides = array<i32>} : memref<1x256x8xbf16, #tpu.memory_space<vmem>>, vector<1x256x8xbf16>,
    %c0_76 = arith.constant 0 : index
    %c0_77 = arith.constant 0 : index
    %98 = vector.load %arg8[%c0_76, %c0_77] : memref<1x8xf32, #tpu.memory_space<vmem>>, vector<1x8xf32>
    %cst_78 = arith.constant dense<0.000000e+00> : vector<8xf32>
    %99 = vector.multi_reduction <add>, %93, %cst_78 [0] : vector<256x8xf32> to vector<8xf32>
    %100 = vector.shape_cast %99 : vector<8xf32> to vector<1x8xf32>
    %101 = arith.addf %98, %100 : vector<1x8xf32>
    %c0_79 = arith.constant 0 : index
    %c0_80 = arith.constant 0 : index
    %102 = vector.load %arg8[%c0_79, %c0_80] : memref<1x8xf32, #tpu.memory_space<vmem>>, vector<1x8xf32>
    tpu.vector_store %arg8[%c0_79, %c0_80], %101 {strides = array<i32>} : memref<1x8xf32, #tpu.memory_space<vmem>>, vector<1x8xf32>,
    %c0_81 = arith.constant 0 : index
    %c0_82 = arith.constant 0 : index
    %103 = vector.load %arg9[%c0_81, %c0_82] : memref<1x8xf32, #tpu.memory_space<vmem>>, vector<1x8xf32>
    %104 = arith.mulf %93, %93 : vector<256x8xf32>
    %cst_83 = arith.constant dense<0.000000e+00> : vector<8xf32>
    %105 = vector.multi_reduction <add>, %104, %cst_83 [0] : vector<256x8xf32> to vector<8xf32>
    %106 = vector.shape_cast %105 : vector<8xf32> to vector<1x8xf32>
    %107 = arith.addf %103, %106 : vector<1x8xf32>
    %c0_84 = arith.constant 0 : index
    %c0_85 = arith.constant 0 : index
    %108 = vector.load %arg9[%c0_84, %c0_85] : memref<1x8xf32, #tpu.memory_space<vmem>>, vector<1x8xf32>
    tpu.vector_store %arg9[%c0_84, %c0_85], %107 {strides = array<i32>} : memref<1x8xf32, #tpu.memory_space<vmem>>, vector<1x8xf32>,
    return
  }
  func.func @transform_0(%arg0: i32) -> (i32, i32, i32) {
    %c0_i32 = arith.constant 0 : i32
    %c0_i32_0 = arith.constant 0 : i32
    %c0_i32_1 = arith.constant 0 : i32
    return %arg0, %c0_i32, %c0_i32_0 : i32, i32, i32
  }
  func.func @transform_1(%arg0: i32) -> (i32, i32) {
    %c0_i32 = arith.constant 0 : i32
    %c0_i32_0 = arith.constant 0 : i32
    %c0_i32_1 = arith.constant 0 : i32
    return %c0_i32, %c0_i32_0 : i32, i32
  }
  func.func @transform_2(%arg0: i32) -> (i32, i32) {
    %c0_i32 = arith.constant 0 : i32
    %c0_i32_0 = arith.constant 0 : i32
    %c0_i32_1 = arith.constant 0 : i32
    return %c0_i32, %c0_i32_0 : i32, i32
  }
  func.func @transform_3(%arg0: i32) -> (i32, i32) {
    %c0_i32 = arith.constant 0 : i32
    %c0_i32_0 = arith.constant 0 : i32
    %c0_i32_1 = arith.constant 0 : i32
    return %c0_i32, %c0_i32_0 : i32, i32
  }
  func.func @transform_4(%arg0: i32) -> (i32, i32) {
    %c0_i32 = arith.constant 0 : i32
    %c0_i32_0 = arith.constant 0 : i32
    %c0_i32_1 = arith.constant 0 : i32
    return %c0_i32, %c0_i32_0 : i32, i32
  }
  func.func @transform_5(%arg0: i32) -> (i32, i32, i32) {
    %c0_i32 = arith.constant 0 : i32
    %c0_i32_0 = arith.constant 0 : i32
    %c0_i32_1 = arith.constant 0 : i32
    %c0_i32_2 = arith.constant 0 : i32
    return %c0_i32, %c0_i32_0, %c0_i32_1 : i32, i32, i32
  }
  func.func @transform_6(%arg0: i32) -> (i32, i32, i32) {
    %c0_i32 = arith.constant 0 : i32
    %c0_i32_0 = arith.constant 0 : i32
    %c0_i32_1 = arith.constant 0 : i32
    return %arg0, %c0_i32, %c0_i32_0 : i32, i32, i32
  }
  func.func @transform_7(%arg0: i32) -> (i32, i32) {
    %c0_i32 = arith.constant 0 : i32
    %c0_i32_0 = arith.constant 0 : i32
    %c0_i32_1 = arith.constant 0 : i32
    return %c0_i32, %c0_i32_0 : i32, i32
  }
  func.func @transform_8(%arg0: i32) -> (i32, i32) {
    %c0_i32 = arith.constant 0 : i32
    %c0_i32_0 = arith.constant 0 : i32
    %c0_i32_1 = arith.constant 0 : i32
    return %c0_i32, %c0_i32_0 : i32, i32
  }
}

</mosaic_0001>

<bundles_post_ra>
// kernel: _double_conv.5
= control target key start
LH: loop header
LB: loop body
LE: loop exit
PB: predicated region body
PF: predicated region fallthrough
CT: control target
= control target key end

     0   :  { %s709_s18 = smov 0   ;;  %s862_s0 = inlined_call_operand.vmem [shape: bf16[2,256,8], index: 0, kind: input, shape index: {}]   ;;  %s863_s1 = inlined_call_operand.vmem [shape: f32[1,8], index: 1, kind: input, shape index: {}]   ;;  %s864_s2 = inlined_call_operand.vmem [shape: f32[1,8], index: 2, kind: input, shape index: {}]   ;;  %s865_s3 = inlined_call_operand.vmem [shape: f32[1,8], index: 3, kind: input, shape index: {}]   ;;  %s866_s4 = inlined_call_operand.vmem [shape: f32[1,8], index: 4, kind: input, shape index: {}]   ;;  %s867_s5 = inlined_call_operand.vmem [shape: f32[2,8,256], index: 5, kind: output, shape index: {}]  }
   0x1 LB: > { %s568_s19 = sadd.s32 4294967295, %s677_s18   ;;  %p572_p0 = scmp.ge.s32.totalorder %s677_s18, 1  ;;  %s677_s18 = sphi %s709_s18, %s15_s18  }
   0x2   : > { %p187_p1 = scmp.lt.s32.totalorder %s677_s18, 3 }
   0x4   : > { %p188_p2 = pnand %p572_p0, %p187_p1 }
   0x5   : > { %p215_p3 = scmp.lt.s32.totalorder (!%p188_p2), %s568_s19, 1 }
   0x6   : > { %191 = sbr.rel (%p188_p2) target bundleno = 172 (0xac), region = 40 }
   0xb   : > { %v289_v0 = vld [vmem:[%s863_s1] sm:$0x1]  ;;  %s869_s19 = smov (!%p215_p3, %s568_s19), 1  ;;  %v299_v7 = vlaneseq }
   0xc   : > { %v291_v1 = vld [vmem:[%s864_s2] sm:$0x1]  ;;  %v290_v2 = vmul.f32 0.001953125, %v289_v0  ;;  %s580_s24 = sshll.u32 %s869_s19, 7  ;;  %s581_s7 = sshll.u32 %s869_s19, 4 }
   0xd   : > { %v292_v3 = vmul.f32 0.001953125, %v291_v1  ;;  %v300_v9 = vshrl.u32 %v299_v7, 7  ;;  %s729_s27 = scalar_lea.vmem %s862_s0, %s580_s24  ;;  %v336_v20 = vld [vmem:[%s865_s3] sm:$0x1]  ;;  %s224_s10 = scalar_lea.vmem %s867_s5, %s581_s7 }
   0xe   : > { %v293_v4 = vmul.f32 %v290_v2, %v290_v2  ;;  %v653_v11 = vld [vmem:[%s729_s27 + $0x40] sm:$0xff]   ;;  %v654_v13 = vld [vmem:[%s729_s27 + $0x48] sm:$0xff]   ;;  %v655_v30 = vld [vmem:[%s729_s27 + $0x50] sm:$0xff]  }
   0xf   : > { %v301_v10 = vsub.s32 0, %v300_v9  ;;  %v583_v12 = vld [vmem:[%s729_s27] sm:$0xff]   ;;  %v646_v14 = vld [vmem:[%s729_s27 + $0x8] sm:$0xff]   ;;  %v616_v15 = vunpack.c.l.bf16 %v653_v11  ;;  %v617_v18 = vunpack.c.h.bf16 %v653_v11  ;;  %v620_v21 = vunpack.c.l.bf16 %v654_v13  ;;  %v647_v35 = vld [vmem:[%s729_s27 + $0x10] sm:$0xff]  }
  0x10   : > { %v294_v5 = vsub.f32 %v292_v3, %v293_v4  ;;  %v584_v17 = vunpack.c.l.bf16 %v583_v12  ;;  %v585_v19 = vunpack.c.h.bf16 %v583_v12  ;;  %v588_v22 = vunpack.c.l.bf16 %v646_v14  ;;  %v753_v36 = vld [vmem:[%s866_s4] ss:$0 sm:$0xff]  ;;  %v656_v59 = vld [vmem:[%s729_s27 + $0x58] sm:$0xff]  }
  0x11   : > { %v735_v16 = vrot.slane %v290_v2, %v301_v10  ;;  %v621_v25 = vunpack.c.h.bf16 %v654_v13  ;;  %v589_v33 = vunpack.c.h.bf16 %v646_v14  ;;  %v624_v38 = vunpack.c.l.bf16 %v655_v30  ;;  %v648_v60 = vld [vmem:[%s729_s27 + $0x18] sm:$0xff]  }
  0x12   : > { %v295_v6 = vmax.f32 %v294_v5, 0.0  ;;  %v592_v46 = vunpack.c.l.bf16 %v647_v35  ;;  %v625_v53 = vunpack.c.h.bf16 %v655_v30  ;;  %v593_v54 = vunpack.c.h.bf16 %v647_v35 }
  0x13   : > { %v320_v24 = vsub.f32 %v616_v15, %v735_v16  ;;  %v304_v27 = vsub.f32 %v584_v17, %v735_v16  ;;  %v321_v28 = vsub.f32 %v617_v18, %v735_v16  ;;  %v305_v29 = vsub.f32 %v585_v19, %v735_v16  ;;  %v657_v18 = vld [vmem:[%s729_s27 + $0x60] sm:$0xff]  }
  0x14   : > { %v296_v8 = vadd.f32 1e-05, %v295_v6  ;;  %v322_v31 = vsub.f32 %v620_v21, %v735_v16  ;;  %v306_v32 = vsub.f32 %v588_v22, %v735_v16  ;;  %v323_v37 = vsub.f32 %v621_v25, %v735_v16 }
  0x15   : > { %v307_v45 = vsub.f32 %v589_v33, %v735_v16  ;;  %v324_v57 = vsub.f32 %v624_v38, %v735_v16  ;;  %v308_v58 = vsub.f32 %v592_v46, %v735_v16  ;;  %v628_v1 = vunpack.c.l.bf16 %v656_v59 }
  0x16   : > { %669 = vrsqrt.f32 %v296_v8  ;;  %v596_v2 = vunpack.c.l.bf16 %v648_v60  ;;  %v325_v5 = vsub.f32 %v625_v53, %v735_v16  ;;  %v309_v6 = vsub.f32 %v593_v54, %v735_v16 }
  0x17   : > { %v326_v11 = vsub.f32 %v628_v1, %v735_v16  ;;  %v629_v12 = vunpack.c.h.bf16 %v656_v59  ;;  %v597_v17 = vunpack.c.h.bf16 %v648_v60  ;;  %v632_v25 = vunpack.c.l.bf16 %v657_v18 }
  0x18   : > { %v310_v15 = vsub.f32 %v596_v2, %v735_v16  ;;  %v633_v35 = vunpack.c.h.bf16 %v657_v18 }
  0x23   : > { %v670_v23 = vpop.eup %669 }
  0x24   : > { %v337_v26 = vmul.f32 %v670_v23, %v336_v20  ;;  %v649_v23 = vld [vmem:[%s729_s27 + $0x20] sm:$0xff]  }
  0x26   : > { %v747_v34 = vrot.slane %v337_v26, %v301_v10 }
  0x28   : > { %v360_v39 = vmul.f32 %v747_v34, %v320_v24  ;;  %v344_v40 = vmul.f32 %v747_v34, %v304_v27  ;;  %v361_v41 = vmul.f32 %v747_v34, %v321_v28  ;;  %v345_v42 = vmul.f32 %v747_v34, %v305_v29 }
  0x29   : > { %v362_v43 = vmul.f32 %v747_v34, %v322_v31  ;;  %v346_v44 = vmul.f32 %v747_v34, %v306_v32  ;;  %v363_v55 = vmul.f32 %v747_v34, %v323_v37  ;;  %v347_v56 = vmul.f32 %v747_v34, %v307_v45 }
  0x2a   : > { %v399_v47 = vadd.f32 %v753_v36, %v360_v39  ;;  %v383_v48 = vadd.f32 %v753_v36, %v344_v40  ;;  %v400_v49 = vadd.f32 %v753_v36, %v361_v41  ;;  %v384_v50 = vadd.f32 %v753_v36, %v345_v42  ;;  %v658_v42 = vld [vmem:[%s729_s27 + $0x68] sm:$0xff]  }
  0x2b   : > { %v401_v63 = vadd.f32 %v753_v36, %v362_v43  ;;  %v385_v0 = vadd.f32 %v753_v36, %v346_v44  ;;  %v402_v3 = vadd.f32 %v753_v36, %v363_v55  ;;  %v386_v4 = vadd.f32 %v753_v36, %v347_v56  ;;  %v650_v43 = vld [vmem:[%s729_s27 + $0x28] sm:$0xff]  }
  0x2c   : > { %v431_v51 = vmax.f32 %v399_v47, 0.0  ;;  %v415_v52 = vmax.f32 %v383_v48, 0.0  ;;  %v432_v61 = vmax.f32 %v400_v49, 0.0  ;;  %v416_v62 = vmax.f32 %v384_v50, 0.0 }
  0x2d   : > { %v433_v7 = vmax.f32 %v401_v63, 0.0  ;;  %v417_v8 = vmax.f32 %v385_v0, 0.0  ;;  %v364_v9 = vmul.f32 %v747_v34, %v324_v57  ;;  %v348_v10 = vmul.f32 %v747_v34, %v308_v58  ;;  %v659_v0 = vld [vmem:[%s729_s27 + $0x70] sm:$0xff]  }
  0x2e   : > { %479 = vxpose.xlu1.b32.start [1/16] (narrow) %v431_v51, 8  ;;  %447 = vxpose.xlu0.b32.start [1/16] (narrow) %v415_v52, 8  ;;  %v434_v13 = vmax.f32 %v402_v3, 0.0  ;;  %v365_v14 = vmul.f32 %v747_v34, %v325_v5  ;;  %v418_v19 = vmax.f32 %v386_v4, 0.0  ;;  %v349_v22 = vmul.f32 %v747_v34, %v309_v6  ;;  %v651_v5 = vld [vmem:[%s729_s27 + $0x30] sm:$0xff]  }
  0x2f   : > { %v403_v20 = vadd.f32 %v753_v36, %v364_v9  ;;  %v387_v21 = vadd.f32 %v753_v36, %v348_v10  ;;  %v327_v24 = vsub.f32 %v629_v12, %v735_v16  ;;  %v366_v26 = vmul.f32 %v747_v34, %v326_v11 }
  0x30   : > { %v350_v27 = vmul.f32 %v747_v34, %v310_v15  ;;  %v311_v28 = vsub.f32 %v597_v17, %v735_v16  ;;  %v600_v29 = vunpack.c.l.bf16 %v649_v23  ;;  %v404_v32 = vadd.f32 %v753_v36, %v365_v14 }
  0x31   : > { %v435_v30 = vmax.f32 %v403_v20, 0.0  ;;  %v419_v31 = vmax.f32 %v387_v21, 0.0  ;;  %v388_v33 = vadd.f32 %v753_v36, %v349_v22  ;;  %v601_v37 = vunpack.c.h.bf16 %v649_v23  ;;  %v660_v23 = vld [vmem:[%s729_s27 + $0x78] sm:$0xff]  }
  0x32   : > { %480 = vxpose.xlu1.b32.cont [2/16] (narrow) %v432_v61, 8  ;;  %448 = vxpose.xlu0.b32.cont [2/16] (narrow) %v416_v62, 8  ;;  %v367_v38 = vmul.f32 %v747_v34, %v327_v24  ;;  %v351_v39 = vmul.f32 %v747_v34, %v311_v28  ;;  %v328_v40 = vsub.f32 %v632_v25, %v735_v16  ;;  %v436_v44 = vmax.f32 %v404_v32, 0.0  ;;  %v652_v24 = vld [vmem:[%s729_s27 + $0x38] sm:$0xff]  }
  0x33   : > { %v312_v41 = vsub.f32 %v600_v29, %v735_v16  ;;  %v420_v45 = vmax.f32 %v388_v33, 0.0  ;;  %v405_v46 = vadd.f32 %v753_v36, %v366_v26  ;;  %v389_v47 = vadd.f32 %v753_v36, %v350_v27 }
  0x34   : > { %v636_v48 = vunpack.c.l.bf16 %v658_v42  ;;  %v604_v49 = vunpack.c.l.bf16 %v650_v43  ;;  %v406_v50 = vadd.f32 %v753_v36, %v367_v38  ;;  %v390_v51 = vadd.f32 %v753_v36, %v351_v39 }
  0x35   : > { %v329_v52 = vsub.f32 %v633_v35, %v735_v16  ;;  %v313_v53 = vsub.f32 %v601_v37, %v735_v16  ;;  %v437_v54 = vmax.f32 %v405_v46, 0.0  ;;  %v421_v55 = vmax.f32 %v389_v47, 0.0 }
  0x36   : > { %481 = vxpose.xlu1.b32.cont [3/16] (narrow) %v433_v7, 8  ;;  %449 = vxpose.xlu0.b32.cont [3/16] (narrow) %v417_v8, 8  ;;  %v368_v56 = vmul.f32 %v747_v34, %v328_v40  ;;  %v352_v57 = vmul.f32 %v747_v34, %v312_v41  ;;  %v330_v58 = vsub.f32 %v636_v48, %v735_v16  ;;  %v637_v59 = vunpack.c.h.bf16 %v658_v42 }
  0x37   : > { %v438_v60 = vmax.f32 %v406_v50, 0.0  ;;  %v369_v61 = vmul.f32 %v747_v34, %v329_v52  ;;  %v314_v62 = vsub.f32 %v604_v49, %v735_v16  ;;  %v605_v63 = vunpack.c.h.bf16 %v650_v43 }
  0x38   : > { %v422_v1 = vmax.f32 %v390_v51, 0.0  ;;  %v407_v2 = vadd.f32 %v753_v36, %v368_v56  ;;  %v391_v3 = vadd.f32 %v753_v36, %v352_v57  ;;  %v353_v4 = vmul.f32 %v747_v34, %v313_v53 }
  0x39   : > { %v331_v6 = vsub.f32 %v637_v59, %v735_v16  ;;  %v640_v7 = vunpack.c.l.bf16 %v659_v0  ;;  %v370_v8 = vmul.f32 %v747_v34, %v330_v58  ;;  %v354_v9 = vmul.f32 %v747_v34, %v314_v62 }
  0x3a   : > { %482 = vxpose.xlu1.b32.cont [4/16] (narrow) %v434_v13, 8  ;;  %450 = vxpose.xlu0.b32.cont [4/16] (narrow) %v418_v19, 8  ;;  %v315_v10 = vsub.f32 %v605_v63, %v735_v16  ;;  %v608_v11 = vunpack.c.l.bf16 %v651_v5  ;;  %v439_v12 = vmax.f32 %v407_v2, 0.0  ;;  %v423_v13 = vmax.f32 %v391_v3, 0.0 }
  0x3b   : > { %v408_v14 = vadd.f32 %v753_v36, %v369_v61  ;;  %v392_v15 = vadd.f32 %v753_v36, %v353_v4  ;;  %v641_v17 = vunpack.c.h.bf16 %v659_v0  ;;  %v609_v18 = vunpack.c.h.bf16 %v651_v5 }
  0x3c   : > { %v409_v19 = vadd.f32 %v753_v36, %v370_v8  ;;  %v371_v20 = vmul.f32 %v747_v34, %v331_v6  ;;  %v332_v21 = vsub.f32 %v640_v7, %v735_v16  ;;  %v316_v22 = vsub.f32 %v608_v11, %v735_v16 }
  0x3d   : > { %v440_v25 = vmax.f32 %v408_v14, 0.0  ;;  %v424_v26 = vmax.f32 %v392_v15, 0.0  ;;  %v393_v27 = vadd.f32 %v753_v36, %v354_v9  ;;  %v355_v28 = vmul.f32 %v747_v34, %v315_v10 }
  0x3e   : > { %483 = vxpose.xlu1.b32.cont [5/16] (narrow) %v435_v30, 8  ;;  %451 = vxpose.xlu0.b32.cont [5/16] (narrow) %v419_v31, 8  ;;  %v644_v29 = vunpack.c.l.bf16 %v660_v23  ;;  %v612_v30 = vunpack.c.l.bf16 %v652_v24  ;;  %v441_v31 = vmax.f32 %v409_v19, 0.0  ;;  %v410_v32 = vadd.f32 %v753_v36, %v371_v20 }
  0x3f   : > { %v333_v33 = vsub.f32 %v641_v17, %v735_v16  ;;  %v317_v35 = vsub.f32 %v609_v18, %v735_v16  ;;  %v425_v37 = vmax.f32 %v393_v27, 0.0  ;;  %v394_v38 = vadd.f32 %v753_v36, %v355_v28 }
  0x40   : > { %v372_v39 = vmul.f32 %v747_v34, %v332_v21  ;;  %v356_v40 = vmul.f32 %v747_v34, %v316_v22  ;;  %v334_v41 = vsub.f32 %v644_v29, %v735_v16  ;;  %v645_v42 = vunpack.c.h.bf16 %v660_v23 }
  0x41   : > { %v442_v43 = vmax.f32 %v410_v32, 0.0  ;;  %v613_v46 = vunpack.c.h.bf16 %v652_v24  ;;  %v426_v47 = vmax.f32 %v394_v38, 0.0  ;;  %v357_v50 = vmul.f32 %v747_v34, %v317_v35 }
  0x42   : > { %484 = vxpose.xlu1.b32.cont [6/16] (narrow) %v436_v44, 8  ;;  %452 = vxpose.xlu0.b32.cont [6/16] (narrow) %v420_v45, 8  ;;  %v373_v44 = vmul.f32 %v747_v34, %v333_v33  ;;  %v318_v45 = vsub.f32 %v612_v30, %v735_v16  ;;  %v411_v48 = vadd.f32 %v753_v36, %v372_v39 }
  0x43   : > { %v395_v49 = vadd.f32 %v753_v36, %v356_v40  ;;  %v374_v51 = vmul.f32 %v747_v34, %v334_v41  ;;  %v335_v53 = vsub.f32 %v645_v42, %v735_v16  ;;  %v396_v58 = vadd.f32 %v753_v36, %v357_v50 }
  0x44   : > { %v358_v52 = vmul.f32 %v747_v34, %v318_v45  ;;  %v412_v57 = vadd.f32 %v753_v36, %v373_v44 }
  0x45   : > { %v427_v56 = vmax.f32 %v395_v49, 0.0  ;;  %v413_v59 = vadd.f32 %v753_v36, %v374_v51  ;;  %v428_v62 = vmax.f32 %v396_v58, 0.0 }
  0x46   : > { %485 = vxpose.xlu1.b32.cont [7/16] (narrow) %v437_v54, 8  ;;  %453 = vxpose.xlu0.b32.cont [7/16] (narrow) %v421_v55, 8  ;;  %v319_v54 = vsub.f32 %v613_v46, %v735_v16  ;;  %v443_v55 = vmax.f32 %v411_v48, 0.0  ;;  %v444_v61 = vmax.f32 %v412_v57, 0.0  ;;  %v397_v63 = vadd.f32 %v753_v36, %v358_v52 }
  0x47   : > { %v445_v0 = vmax.f32 %v413_v59, 0.0 }
  0x48   : > { %v359_v16 = vmul.f32 %v747_v34, %v319_v54 }
  0x4a   : > { %486 = vxpose.xlu1.b32.cont [8/16] (narrow) %v438_v60, 8  ;;  %454 = vxpose.xlu0.b32.cont [8/16] (narrow) %v422_v1, 8  ;;  %v375_v60 = vmul.f32 %v747_v34, %v335_v53  ;;  %v429_v1 = vmax.f32 %v397_v63, 0.0  ;;  %v398_v3 = vadd.f32 %v753_v36, %v359_v16 }
  0x4c   : > { %v414_v2 = vadd.f32 %v753_v36, %v375_v60  ;;  %v430_v5 = vmax.f32 %v398_v3, 0.0 }
  0x4e   : > { %487 = vxpose.xlu1.b32.cont [9/16] (narrow) %v439_v12, 8  ;;  %455 = vxpose.xlu0.b32.cont [9/16] (narrow) %v423_v13, 8  ;;  %v446_v4 = vmax.f32 %v414_v2, 0.0 }
  0x52   : > { %488 = vxpose.xlu1.b32.cont [10/16] (narrow) %v440_v25, 8  ;;  %456 = vxpose.xlu0.b32.cont [10/16] (narrow) %v424_v26, 8 }
  0x56   : > { %489 = vxpose.xlu1.b32.cont [11/16] (narrow) %v441_v31, 8  ;;  %457 = vxpose.xlu0.b32.cont [11/16] (narrow) %v425_v37, 8 }
  0x5a   : > { %490 = vxpose.xlu1.b32.cont [12/16] (narrow) %v442_v43, 8  ;;  %458 = vxpose.xlu0.b32.cont [12/16] (narrow) %v426_v47, 8 }
  0x5e   : > { %491 = vxpose.xlu1.b32.cont [13/16] (narrow) %v443_v55, 8  ;;  %459 = vxpose.xlu0.b32.cont [13/16] (narrow) %v427_v56, 8 }
  0x62   : > { %492 = vxpose.xlu1.b32.cont [14/16] (narrow) %v444_v61, 8  ;;  %460 = vxpose.xlu0.b32.cont [14/16] (narrow) %v428_v62, 8 }
  0x66   : > { %493 = vxpose.xlu1.b32.cont [15/16] (narrow) %v445_v0, 8  ;;  %461 = vxpose.xlu0.b32.cont [15/16] (narrow) %v429_v1, 8 }
  0x6a   : > { %494 = vxpose.xlu1.b32.end [16/16] (narrow) %v446_v4, 8  ;;  %462 = vxpose.xlu0.b32.end [16/16] (narrow) %v430_v5, 8 }
  0xaa   : > { %v495_v34 = vpop.trf.xlu1  ;;  %v463_v6 = vpop.trf.xlu0 }
  0xab   : > { %512 = vst [vmem:[%s224_s10 + $0x8] sm:$0xff] %v495_v34  ;;  %511 = vst [vmem:[%s224_s10] sm:$0xff] %v463_v6 }
  0xac PF: > { %s15_s18 = sadd.s32 1, %s677_s18  }
  0xad   : > { %p12_p4 = scmp.ge.s32.totalorder %s15_s18, 4  }
  0xaf   :  { %14 = sbr.rel (!%p12_p4) target bundleno = 1 (0x1), region = 70 }

// kernel: _double_conv.3
= control target key start
LH: loop header
LB: loop body
LE: loop exit
PB: predicated region body
PF: predicated region fallthrough
CT: control target
= control target key end

     0   :  { %s4056_s15 = smov 0   ;;  %s5267_s0 = inlined_call_operand.vmem [shape: f32[2,16,16,4], index: 0, kind: input, shape index: {}]   ;;  %s5268_s1 = inlined_call_operand.vmem [shape: bf16[9,4,8], index: 1, kind: input, shape index: {}]   ;;  %s5269_s2 = inlined_call_operand.vmem [shape: bf16[2,256,8], index: 2, kind: output, shape index: {0}]   ;;  %s5270_s3 = inlined_call_operand.vmem [shape: f32[1,8], index: 3, kind: output, shape index: {1}]   ;;  %s5271_s4 = inlined_call_operand.vmem [shape: f32[1,8], index: 4, kind: output, shape index: {2}]  }
   0x1 LB: > { %s3312_s16 = sadd.s32 4294967295, %s4028_s15   ;;  %p3316_p0 = scmp.ge.s32.totalorder %s4028_s15, 1  ;;  %s4028_s15 = sphi %s4056_s15, %s15_s15  }
   0x2   : > { %p157_p1 = scmp.lt.s32.totalorder %s4028_s15, 3 }
   0x4   : > { %p158_p2 = pnand %p3316_p0, %p157_p1 }
   0x6   : > { %161 = sbr.rel (%p158_p2) target bundleno = 573 (0x23d), region = 28 }
   0xb   : > { %p183_p3 = scmp.lt.s32.totalorder %s3312_s16, 1  ;;  %p3321_p4 = scmp.ne.s32.totalorder %s3312_s16, 0 }
   0xd   : > { %s184_s17 = scalar_select %p183_p3, %s3312_s16, 1 }
   0xe   : > { %197 = sbr.rel (%p3321_p4) target bundleno = 48 (0x30), region = 32 }
   0xf   : > { %s3508_s18 = sshll.u32 %s184_s17, 8  ;;  %s3509_s19 = sshll.u32 %s184_s17, 7 }
  0x10   : > { %s4067_s22 = scalar_lea.vmem %s5267_s0, %s3508_s18  ;;  %s4072_s25 = scalar_lea.vmem %s5269_s2, %s3509_s19 }
  0x13   : > { %vm198_vm0 = vcmask 31744   ;;  %vm201_vm1 = vcmask 25600   ;;  %vm254_vm2 = vcmask 57344   ;;  %v4030_v0 = vmov 0.0  }
  0x14   : > { %199 = vst.msk [vmem:[#allocation2] sm:$0xff] %vm198_vm0, %v4030_v0  ;;  %200 = vst.msk [vmem:[#allocation2 + $0x8] sm:$0xff] %vm198_vm0, %v4030_v0 }
  0x15   : > { %203 = vst.msk [vmem:[#allocation2 + $0x18] sm:$0xff] %vm198_vm0, %v4030_v0  ;;  %204 = vst.msk [vmem:[#allocation2 + $0x20] sm:$0xff] %vm198_vm0, %v4030_v0 }
  0x16   : > { %206 = vst.msk [vmem:[#allocation2 + $0x30] sm:$0xff] %vm198_vm0, %v4030_v0  ;;  %207 = vst.msk [vmem:[#allocation2 + $0x38] sm:$0xff] %vm198_vm0, %v4030_v0 }
  0x17   : > { %209 = vst.msk [vmem:[#allocation2 + $0x48] sm:$0xff] %vm198_vm0, %v4030_v0  ;;  %210 = vst.msk [vmem:[#allocation2 + $0x50] sm:$0xff] %vm198_vm0, %v4030_v0 }
  0x18   : > { %212 = vst.msk [vmem:[#allocation2 + $0x60] sm:$0xff] %vm198_vm0, %v4030_v0  ;;  %213 = vst.msk [vmem:[#allocation2 + $0x68] sm:$0xff] %vm198_vm0, %v4030_v0 }
  0x19   : > { %215 = vst.msk [vmem:[#allocation2 + $0x78] sm:$0xff] %vm198_vm0, %v4030_v0  ;;  %216 = vst.msk [vmem:[#allocation2 + $0x80] sm:$0xff] %vm198_vm0, %v4030_v0 }
  0x1a   : > { %218 = vst.msk [vmem:[#allocation2 + $0x90] sm:$0xff] %vm198_vm0, %v4030_v0  ;;  %219 = vst.msk [vmem:[#allocation2 + $0x98] sm:$0xff] %vm198_vm0, %v4030_v0 }
  0x1b   : > { %221 = vst.msk [vmem:[#allocation2 + $0xa8] sm:$0xff] %vm198_vm0, %v4030_v0  ;;  %222 = vst.msk [vmem:[#allocation2 + $0xb0] sm:$0xff] %vm198_vm0, %v4030_v0 }
  0x1c   : > { %224 = vst.msk [vmem:[#allocation2 + $0xc0] sm:$0xff] %vm198_vm0, %v4030_v0  ;;  %225 = vst.msk [vmem:[#allocation2 + $0xc8] sm:$0xff] %vm198_vm0, %v4030_v0 }
  0x1d   : > { %227 = vst.msk [vmem:[#allocation2 + $0xd8] sm:$0xff] %vm198_vm0, %v4030_v0  ;;  %228 = vst.msk [vmem:[#allocation2 + $0xe0] sm:$0xff] %vm198_vm0, %v4030_v0 }
  0x1e   : > { %230 = vst.msk [vmem:[#allocation2 + $0xf0] sm:$0xff] %vm198_vm0, %v4030_v0  ;;  %231 = vst.msk [vmem:[#allocation2 + $0xf8] sm:$0xff] %vm198_vm0, %v4030_v0 }
  0x1f   : > { %233 = vst.msk [vmem:[#allocation2 + $0x108] sm:$0xff] %vm198_vm0, %v4030_v0  ;;  %234 = vst.msk [vmem:[#allocation2 + $0x110] sm:$0xff] %vm198_vm0, %v4030_v0 }
  0x20   : > { %236 = vst.msk [vmem:[#allocation2 + $0x120] sm:$0xff] %vm198_vm0, %v4030_v0  ;;  %237 = vst.msk [vmem:[#allocation2 + $0x128] sm:$0xff] %vm198_vm0, %v4030_v0 }
  0x21   : > { %239 = vst.msk [vmem:[#allocation2 + $0x138] sm:$0xff] %vm198_vm0, %v4030_v0  ;;  %240 = vst.msk [vmem:[#allocation2 + $0x140] sm:$0xff] %vm198_vm0, %v4030_v0 }
  0x22   : > { %242 = vst.msk [vmem:[#allocation2 + $0x150] sm:$0xff] %vm198_vm0, %v4030_v0  ;;  %243 = vst.msk [vmem:[#allocation2 + $0x158] sm:$0xff] %vm198_vm0, %v4030_v0 }
  0x23   : > { %245 = vst.msk [vmem:[#allocation2 + $0x168] sm:$0xff] %vm198_vm0, %v4030_v0  ;;  %246 = vst.msk [vmem:[#allocation2 + $0x170] sm:$0xff] %vm198_vm0, %v4030_v0 }
  0x24   : > { %248 = vst.msk [vmem:[#allocation2 + $0x180] sm:$0xff] %vm198_vm0, %v4030_v0  ;;  %249 = vst.msk [vmem:[#allocation2 + $0x188] sm:$0xff] %vm198_vm0, %v4030_v0 }
  0x25   : > { %251 = vst.msk [vmem:[#allocation2 + $0x198] sm:$0xff] %vm198_vm0, %v4030_v0  ;;  %252 = vst.msk [vmem:[#allocation2 + $0x1a0] sm:$0xff] %vm198_vm0, %v4030_v0 }
  0x26   : > { %202 = vst.msk [vmem:[#allocation2 + $0x10] sm:$0x3] %vm201_vm1, %v4030_v0  ;;  %205 = vst.msk [vmem:[#allocation2 + $0x28] sm:$0x3] %vm201_vm1, %v4030_v0 }
  0x27   : > { %208 = vst.msk [vmem:[#allocation2 + $0x40] sm:$0x3] %vm201_vm1, %v4030_v0  ;;  %211 = vst.msk [vmem:[#allocation2 + $0x58] sm:$0x3] %vm201_vm1, %v4030_v0 }
  0x28   : > { %214 = vst.msk [vmem:[#allocation2 + $0x70] sm:$0x3] %vm201_vm1, %v4030_v0  ;;  %217 = vst.msk [vmem:[#allocation2 + $0x88] sm:$0x3] %vm201_vm1, %v4030_v0 }
  0x29   : > { %220 = vst.msk [vmem:[#allocation2 + $0xa0] sm:$0x3] %vm201_vm1, %v4030_v0  ;;  %223 = vst.msk [vmem:[#allocation2 + $0xb8] sm:$0x3] %vm201_vm1, %v4030_v0 }
  0x2a   : > { %226 = vst.msk [vmem:[#allocation2 + $0xd0] sm:$0x3] %vm201_vm1, %v4030_v0  ;;  %229 = vst.msk [vmem:[#allocation2 + $0xe8] sm:$0x3] %vm201_vm1, %v4030_v0 }
  0x2b   : > { %232 = vst.msk [vmem:[#allocation2 + $0x100] sm:$0x3] %vm201_vm1, %v4030_v0  ;;  %235 = vst.msk [vmem:[#allocation2 + $0x118] sm:$0x3] %vm201_vm1, %v4030_v0 }
  0x2c   : > { %238 = vst.msk [vmem:[#allocation2 + $0x130] sm:$0x3] %vm201_vm1, %v4030_v0  ;;  %241 = vst.msk [vmem:[#allocation2 + $0x148] sm:$0x3] %vm201_vm1, %v4030_v0 }
  0x2d   : > { %244 = vst.msk [vmem:[#allocation2 + $0x160] sm:$0x3] %vm201_vm1, %v4030_v0  ;;  %247 = vst.msk [vmem:[#allocation2 + $0x178] sm:$0x3] %vm201_vm1, %v4030_v0 }
  0x2e   : > { %250 = vst.msk [vmem:[#allocation2 + $0x190] sm:$0x3] %vm201_vm1, %v4030_v0  ;;  %253 = vst.msk [vmem:[#allocation2 + $0x1a8] sm:$0x3] %vm201_vm1, %v4030_v0 }
  0x2f   : > { %255 = vst.msk [vmem:[%s5270_s3] sm:$0x1] %vm254_vm2, %v4030_v0  ;;  %256 = vst.msk [vmem:[%s5271_s4] sm:$0x1] %vm254_vm2, %v4030_v0 }
  0x30 PF: > { %v3322_v1 = vld [vmem:[%s5268_s1 + $0x2] sm:$0x3]  ;;  %vm470_vm3 = vcmask 1041408   ;;  %vm290_vm4 = vcmask 31744   ;;  %v373_v3 = vld [vmem:[#allocation2 + $0x9] sm:$0xff]  ;;  %v272_v9 = vld [vmem:[%s4067_s22 + $0x78] sm:$0xff] }
  0x31   : > { %v372_v2 = vld [vmem:[#allocation2 + $0x1] sm:$0xff]  ;;  %4003 = vmatprep.subr.msk.bf16.mxu0 %vm470_vm3, %v3322_v1  ;;  %4004 = vmatprep.subr.msk.bf16.mxu1 %vm470_vm3, %v3322_v1  ;;  %v472_v4 = vsel %vm470_vm3, %v3322_v1, 0  ;;  %v271_v8 = vld [vmem:[%s4067_s22 + $0x70] sm:$0xff]  ;;  %306 = vst.msk [vmem:[#allocation2 + $0xc9] sm:$0xff] %vm290_vm4, %v272_v9  ;;  %v260_v15 = vld [vmem:[%s4067_s22 + $0x18] sm:$0xff]  ;;  %vm3034_vm5 = vcmask 60416  }
  0x32   : > { %v404_v5 = vpack.c.bf16 %v373_v3, %v372_v2  ;;  %v257_v6 = vld [vmem:[%s4067_s22] sm:$0xff]  ;;  %v258_v7 = vld [vmem:[%s4067_s22 + $0x8] sm:$0xff]  ;;  %3696 = vmatpush3.bf16.msra.mxu0 %v472_v4  ;;  %4002 = vmatpush3.bf16.msra.mxu1 %v472_v4  ;;  %305 = vst.msk [vmem:[#allocation2 + $0xc1] sm:$0xff] %vm290_vm4, %v271_v8  ;;  %v259_v14 = vld [vmem:[%s4067_s22 + $0x10] sm:$0xff]  ;;  %vm3068_vm6 = vcmask 64512   ;;  %vm3139_vm7 = vcmask 57344  }
  0x33   : > { %291 = vst.msk [vmem:[#allocation2 + $0x19] sm:$0xff] %vm290_vm4, %v257_v6  ;;  %292 = vst.msk [vmem:[#allocation2 + $0x21] sm:$0xff] %vm290_vm4, %v258_v7  ;;  %v371_v10 = vld [vmem:[%s5268_s1] sm:$0x3]  ;;  %v274_v12 = vld [vmem:[%s4067_s22 + $0x88] sm:$0xff] }
  0x34   : > { %v273_v11 = vld [vmem:[%s4067_s22 + $0x80] sm:$0xff]  ;;  %3697 = vmatprep.mubr.msk.bf16.mxu0 %vm290_vm4, %v404_v5  ;;  %4005 = vmatprep.subr.msk.bf16.mxu1 %vm470_vm3, %v371_v10  ;;  %308 = vst.msk [vmem:[#allocation2 + $0xe1] sm:$0xff] %vm290_vm4, %v274_v12  ;;  %293 = vst.msk [vmem:[#allocation2 + $0x31] sm:$0xff] %vm290_vm4, %v259_v14  ;;  %v262_v17 = vld [vmem:[%s4067_s22 + $0x28] sm:$0xff]  ;;  %v684_v43 = vsel %vm470_vm3, %v371_v10, 0 }
  0x35   : > { %307 = vst.msk [vmem:[#allocation2 + $0xd9] sm:$0xff] %vm290_vm4, %v273_v11  ;;  %v3355_v13 = vld [vmem:[%s5268_s1 + $0x4] sm:$0x3]  ;;  %294 = vst.msk [vmem:[#allocation2 + $0x39] sm:$0xff] %vm290_vm4, %v260_v15  ;;  %v275_v18 = vld [vmem:[%s4067_s22 + $0x90] sm:$0xff] }
  0x36   : > { %4006 = vmatprep.subr.msk.bf16.mxu0 %vm470_vm3, %v3355_v13  ;;  %v261_v16 = vld [vmem:[%s4067_s22 + $0x20] sm:$0xff]  ;;  %296 = vst.msk [vmem:[#allocation2 + $0x51] sm:$0xff] %vm290_vm4, %v262_v17  ;;  %v276_v19 = vld [vmem:[%s4067_s22 + $0x98] sm:$0xff]  ;;  %309 = vst.msk [vmem:[#allocation2 + $0xf1] sm:$0xff] %vm290_vm4, %v275_v18  ;;  %v946_v36 = vsel %vm470_vm3, %v3355_v13, 0 }
  0x37   : > { %295 = vst.msk [vmem:[#allocation2 + $0x49] sm:$0xff] %vm290_vm4, %v261_v16  ;;  %v277_v20 = vld [vmem:[%s4067_s22 + $0xa0] sm:$0xff]  ;;  %310 = vst.msk [vmem:[#allocation2 + $0xf9] sm:$0xff] %vm290_vm4, %v276_v19  ;;  %v278_v21 = vld [vmem:[%s4067_s22 + $0xa8] sm:$0xff] }
  0x38   : > { %311 = vst.msk [vmem:[#allocation2 + $0x109] sm:$0xff] %vm290_vm4, %v277_v20  ;;  %v263_v22 = vld [vmem:[%s4067_s22 + $0x30] sm:$0xff]  ;;  %v264_v23 = vld [vmem:[%s4067_s22 + $0x38] sm:$0xff]  ;;  %312 = vst.msk [vmem:[#allocation2 + $0x111] sm:$0xff] %vm290_vm4, %v278_v21 }
  0x39   : > { %297 = vst.msk [vmem:[#allocation2 + $0x61] sm:$0xff] %vm290_vm4, %v263_v22  ;;  %298 = vst.msk [vmem:[#allocation2 + $0x69] sm:$0xff] %vm290_vm4, %v264_v23  ;;  %v265_v24 = vld [vmem:[%s4067_s22 + $0x40] sm:$0xff]  ;;  %v266_v25 = vld [vmem:[%s4067_s22 + $0x48] sm:$0xff] }
  0x3a   : > { %v279_v26 = vld [vmem:[%s4067_s22 + $0xb0] sm:$0xff]  ;;  %299 = vst.msk [vmem:[#allocation2 + $0x79] sm:$0xff] %vm290_vm4, %v265_v24  ;;  %300 = vst.msk [vmem:[#allocation2 + $0x81] sm:$0xff] %vm290_vm4, %v266_v25  ;;  %v280_v27 = vld [vmem:[%s4067_s22 + $0xb8] sm:$0xff] }
  0x3b   : > { %313 = vst.msk [vmem:[#allocation2 + $0x121] sm:$0xff] %vm290_vm4, %v279_v26  ;;  %v281_v28 = vld [vmem:[%s4067_s22 + $0xc0] sm:$0xff]  ;;  %v282_v29 = vld [vmem:[%s4067_s22 + $0xc8] sm:$0xff]  ;;  %314 = vst.msk [vmem:[#allocation2 + $0x129] sm:$0xff] %vm290_vm4, %v280_v27 }
  0x3c   : > { %v374_v30 = vld [vmem:[#allocation2 + $0x19] sm:$0xff]  ;;  %v375_v31 = vld [vmem:[#allocation2 + $0x21] sm:$0xff]  ;;  %315 = vst.msk [vmem:[#allocation2 + $0x139] sm:$0xff] %vm290_vm4, %v281_v28  ;;  %316 = vst.msk [vmem:[#allocation2 + $0x141] sm:$0xff] %vm290_vm4, %v282_v29 }
  0x3d   : > { %v388_v32 = vld [vmem:[#allocation2 + $0xc1] sm:$0xff]  ;;  %v4195_v33 = vpack.c.bf16 %v375_v31, %v374_v30  ;;  %v389_v34 = vld [vmem:[#allocation2 + $0xc9] sm:$0xff]  ;;  %v390_v35 = vld [vmem:[#allocation2 + $0xd9] sm:$0xff] }
  0x3e   : > { %v267_v37 = vld [vmem:[%s4067_s22 + $0x50] sm:$0xff]  ;;  %v4199_v38 = vpack.c.bf16 %v389_v34, %v388_v32  ;;  %v391_v39 = vld [vmem:[#allocation2 + $0xe1] sm:$0xff]  ;;  %v268_v41 = vld [vmem:[%s4067_s22 + $0x58] sm:$0xff] }
  0x3f   : > { %v376_v40 = vld [vmem:[#allocation2 + $0x31] sm:$0xff]  ;;  %301 = vst.msk [vmem:[#allocation2 + $0x91] sm:$0xff] %vm290_vm4, %v267_v37  ;;  %3698 = vmatmul.mubr.msk.bf16.vlgmr.msra.gmra.mxu0 %vm290_vm4, %v4195_v33  ;;  %v4205_v42 = vpack.c.bf16 %v391_v39, %v390_v35  ;;  %v377_v44 = vld [vmem:[#allocation2 + $0x39] sm:$0xff]  ;;  %v378_v45 = vld [vmem:[#allocation2 + $0x49] sm:$0xff] }
  0x40   : > { %302 = vst.msk [vmem:[#allocation2 + $0x99] sm:$0xff] %vm290_vm4, %v268_v41  ;;  %3713 = vmatprep.mubr.msk.bf16.mxu1 %vm290_vm4, %v4199_v38  ;;  %3764 = vmatpush3.bf16.msra.mxu0 %v946_v36  ;;  %v4211_v46 = vpack.c.bf16 %v377_v44, %v376_v40  ;;  %v379_v47 = vld [vmem:[#allocation2 + $0x51] sm:$0xff]  ;;  %v393_v49 = vld [vmem:[#allocation2 + $0xf9] sm:$0xff]  ;;  %v380_v51 = vld [vmem:[#allocation2 + $0x61] sm:$0xff] }
  0x41   : > { %v392_v48 = vld [vmem:[#allocation2 + $0xf1] sm:$0xff]  ;;  %3714 = vmatmul.mubr.msk.bf16.vlgmr.msra.gmra.mxu1 %vm290_vm4, %v4205_v42  ;;  %v381_v52 = vld [vmem:[#allocation2 + $0x69] sm:$0xff]  ;;  %v4219_v55 = vpack.c.bf16 %v379_v47, %v378_v45  ;;  %v269_v59 = vld [vmem:[%s4067_s22 + $0x60] sm:$0xff] }
  0x42   : > { %v4215_v50 = vpack.c.bf16 %v393_v49, %v392_v48  ;;  %3730 = vmatpush3.bf16.msra.mxu1 %v684_v43  ;;  %3701 = vmatprep.mubr.msk.bf16.mxu0 %vm290_vm4, %v4211_v46  ;;  %v394_v53 = vld [vmem:[#allocation2 + $0x109] sm:$0xff]  ;;  %v395_v54 = vld [vmem:[#allocation2 + $0x111] sm:$0xff]  ;;  %v396_v56 = vld [vmem:[#allocation2 + $0x121] sm:$0xff]  ;;  %v4223_v58 = vpack.c.bf16 %v381_v52, %v380_v51  ;;  %303 = vst.msk [vmem:[#allocation2 + $0xa9] sm:$0xff] %vm290_vm4, %v269_v59 }
  0x43   : > { %v397_v57 = vld [vmem:[#allocation2 + $0x129] sm:$0xff]  ;;  %v4228_v62 = vpack.c.bf16 %v395_v54, %v394_v53  ;;  %v284_v63 = vld [vmem:[%s4067_s22 + $0xd8] sm:$0xff]  ;;  %v285_v0 = vld [vmem:[%s4067_s22 + $0xe0] sm:$0xff] }
  0x44   : > { %3717 = vmatprep.mubr.msk.bf16.mxu1 %vm290_vm4, %v4215_v50  ;;  %v270_v60 = vld [vmem:[%s4067_s22 + $0x68] sm:$0xff]  ;;  %v283_v61 = vld [vmem:[%s4067_s22 + $0xd0] sm:$0xff]  ;;  %v4235_v1 = vpack.c.bf16 %v397_v57, %v396_v56  ;;  %318 = vst.msk [vmem:[#allocation2 + $0x159] sm:$0xff] %vm290_vm4, %v284_v63  ;;  %319 = vst.msk [vmem:[#allocation2 + $0x169] sm:$0xff] %vm290_vm4, %v285_v0 }
  0x45   : > { %304 = vst.msk [vmem:[#allocation2 + $0xb1] sm:$0xff] %vm290_vm4, %v270_v60  ;;  %317 = vst.msk [vmem:[#allocation2 + $0x151] sm:$0xff] %vm290_vm4, %v283_v61  ;;  %v286_v2 = vld [vmem:[%s4067_s22 + $0xe8] sm:$0xff]  ;;  %v382_v3 = vld [vmem:[#allocation2 + $0x79] sm:$0xff] }
  0x46   : > { %320 = vst.msk [vmem:[#allocation2 + $0x171] sm:$0xff] %vm290_vm4, %v286_v2  ;;  %v383_v4 = vld [vmem:[#allocation2 + $0x81] sm:$0xff]  ;;  %v384_v6 = vld [vmem:[#allocation2 + $0x91] sm:$0xff]  ;;  %v398_v9 = vld [vmem:[#allocation2 + $0x139] sm:$0xff] }
  0x47   : > { %3702 = vmatmul.mubr.msk.bf16.gmra.mxu0 %vm290_vm4, %v4219_v55  ;;  %v3372_v5 = vld [vmem:[%s5268_s1 + $0x6] sm:$0x3]  ;;  %v385_v7 = vld [vmem:[#allocation2 + $0x99] sm:$0xff]  ;;  %v3389_v8 = vld [vmem:[%s5268_s1 + $0x8] sm:$0x3]  ;;  %v4257_v11 = vpack.c.bf16 %v383_v4, %v382_v3 }
  0x48   : > { %3705 = vmatprep.mubr.msk.bf16.mxu0 %vm290_vm4, %v4223_v58  ;;  %4007 = vmatprep.subr.msk.bf16.mxu1 %vm470_vm3, %v3372_v5  ;;  %v399_v10 = vld [vmem:[#allocation2 + $0x141] sm:$0xff]  ;;  %v4259_v12 = vpack.c.bf16 %v385_v7, %v384_v6  ;;  %v848_v20 = vld [vmem:[#allocation2 + $0xa] sm:$0xff]  ;;  %v851_v31 = vld [vmem:[#allocation2 + $0x32] sm:$0xff]  ;;  %v1534_v43 = vsel %vm470_vm3, %v3389_v8, 0  ;;  %v1240_v45 = vsel %vm470_vm3, %v3372_v5, 0 }
  0x49   : > { %3718 = vmatmul.mubr.msk.bf16.gmra.mxu1 %vm290_vm4, %v4228_v62  ;;  %4008 = vmatprep.subr.msk.bf16.mxu0 %vm470_vm3, %v3389_v8  ;;  %v4261_v14 = vpack.c.bf16 %v399_v10, %v398_v9  ;;  %v386_v17 = vld [vmem:[#allocation2 + $0xa9] sm:$0xff]  ;;  %v323_v24 = vld [vmem:[#allocation2] sm:$0xff]  ;;  %v325_v34 = vld [vmem:[#allocation2 + $0x18] sm:$0xff] }
  0x4a   : > { %3721 = vmatprep.mubr.msk.bf16.mxu1 %vm290_vm4, %v4235_v1  ;;  %v847_v19 = vld [vmem:[#allocation2 + $0x2] sm:$0xff]  ;;  %v849_v29 = vld [vmem:[#allocation2 + $0x1a] sm:$0xff]  ;;  %v327_v37 = vld [vmem:[#allocation2 + $0x30] sm:$0xff] }
  0x4b   : > { %v401_v15 = vld [vmem:[#allocation2 + $0x159] sm:$0xff]  ;;  %v402_v21 = vld [vmem:[#allocation2 + $0x169] sm:$0xff]  ;;  %v879_v26 = vpack.c.bf16 %v848_v20, %v847_v19 }
  0x4c   : > { %v400_v13 = vld [vmem:[#allocation2 + $0x151] sm:$0xff]  ;;  %v324_v25 = vld [vmem:[#allocation2 + $0x8] sm:$0xff]  ;;  %v852_v32 = vld [vmem:[#allocation2 + $0x3a] sm:$0xff] }
  0x4d   : > { %v4263_v16 = vpack.c.bf16 %v401_v15, %v400_v13  ;;  %v387_v18 = vld [vmem:[#allocation2 + $0xb1] sm:$0xff]  ;;  %v355_v28 = vpack.c.bf16 %v324_v25, %v323_v24  ;;  %v850_v30 = vld [vmem:[#allocation2 + $0x22] sm:$0xff]  ;;  %v4285_v40 = vpack.c.bf16 %v852_v32, %v851_v31  ;;  %v4298_v47 = vld [vmem:[%s5268_s1 + $0xc] sm:$0x3] }
  0x4e   : > { %v403_v22 = vld [vmem:[#allocation2 + $0x171] sm:$0xff]  ;;  %v4273_v23 = vpack.c.bf16 %v387_v18, %v386_v17  ;;  %v326_v35 = vld [vmem:[#allocation2 + $0x20] sm:$0xff]  ;;  %v4283_v36 = vpack.c.bf16 %v850_v30, %v849_v29  ;;  %v4307_v53 = vld [vmem:[%s5268_s1 + $0xa] sm:$0x3] }
  0x4f   : > { %3706 = vmatmul.mubr.msk.bf16.gmra.mxu0 %vm290_vm4, %v4257_v11  ;;  %v4275_v27 = vpack.c.bf16 %v403_v22, %v402_v21  ;;  %v328_v39 = vld [vmem:[#allocation2 + $0x38] sm:$0xff]  ;;  %v4287_v41 = vpack.c.bf16 %v326_v35, %v325_v34  ;;  %v287_v48 = vld [vmem:[%s4067_s22 + $0xf0] sm:$0xff]  ;;  %v855_v54 = vld [vmem:[#allocation2 + $0x62] sm:$0xff] }
  0x50   : > { %3709 = vmatprep.mubr.msk.bf16.mxu0 %vm290_vm4, %v4259_v12  ;;  %v4290_v44 = vpack.c.bf16 %v328_v39, %v327_v37  ;;  %v288_v49 = vld [vmem:[%s4067_s22 + $0xf8] sm:$0xff]  ;;  %v853_v51 = vld [vmem:[#allocation2 + $0x4a] sm:$0xff]  ;;  %321 = vst.msk [vmem:[#allocation2 + $0x181] sm:$0xff] %vm290_vm4, %v287_v48  ;;  %v331_v61 = vld [vmem:[#allocation2 + $0x60] sm:$0xff] }
  0x51   : > { %3722 = vmatmul.mubr.msk.bf16.gmra.mxu1 %vm290_vm4, %v4261_v14  ;;  %v854_v52 = vld [vmem:[#allocation2 + $0x52] sm:$0xff]  ;;  %322 = vst.msk [vmem:[#allocation2 + $0x189] sm:$0xff] %vm290_vm4, %v288_v49  ;;  %v856_v56 = vld [vmem:[#allocation2 + $0x6a] sm:$0xff]  ;;  %v857_v4 = vld [vmem:[#allocation2 + $0x7a] sm:$0xff] }
  0x52   : > { %3725 = vmatprep.mubr.msk.bf16.mxu1 %vm290_vm4, %v4263_v16  ;;  %v329_v57 = vld [vmem:[#allocation2 + $0x48] sm:$0xff]  ;;  %v330_v59 = vld [vmem:[#allocation2 + $0x50] sm:$0xff]  ;;  %v4317_v60 = vpack.c.bf16 %v854_v52, %v853_v51  ;;  %v4321_v0 = vpack.c.bf16 %v856_v56, %v855_v54  ;;  %v860_v7 = vld [vmem:[#allocation2 + $0x9a] sm:$0xff] }
  0x53   : > { %v332_v63 = vld [vmem:[#allocation2 + $0x68] sm:$0xff]  ;;  %v4323_v2 = vpack.c.bf16 %v330_v59, %v329_v57  ;;  %v859_v6 = vld [vmem:[#allocation2 + $0x92] sm:$0xff]  ;;  %v334_v9 = vld [vmem:[#allocation2 + $0x80] sm:$0xff] }
  0x54   : > { %v4325_v3 = vpack.c.bf16 %v332_v63, %v331_v61  ;;  %v858_v5 = vld [vmem:[#allocation2 + $0x82] sm:$0xff]  ;;  %v333_v8 = vld [vmem:[#allocation2 + $0x78] sm:$0xff]  ;;  %v335_v13 = vld [vmem:[#allocation2 + $0x90] sm:$0xff]  ;;  %v4337_v17 = vpack.c.bf16 %v860_v7, %v859_v6 }
  0x55   : > { %v4335_v10 = vpack.c.bf16 %v858_v5, %v857_v4  ;;  %v336_v15 = vld [vmem:[#allocation2 + $0x98] sm:$0xff]  ;;  %v4339_v18 = vpack.c.bf16 %v334_v9, %v333_v8  ;;  %v861_v20 = vld [vmem:[#allocation2 + $0xaa] sm:$0xff]  ;;  %v863_v22 = vld [vmem:[#allocation2 + $0xc2] sm:$0xff] }
  0x56   : > { %v4341_v19 = vpack.c.bf16 %v336_v15, %v335_v13  ;;  %v862_v21 = vld [vmem:[#allocation2 + $0xb2] sm:$0xff]  ;;  %v864_v24 = vld [vmem:[#allocation2 + $0xca] sm:$0xff]  ;;  %v339_v29 = vld [vmem:[#allocation2 + $0xc0] sm:$0xff] }
  0x57   : > { %3710 = vmatmul.mubr.msk.bf16.gmra.mxu0 %vm290_vm4, %v4273_v23  ;;  %v337_v25 = vld [vmem:[#allocation2 + $0xa8] sm:$0xff]  ;;  %v4353_v31 = vpack.c.bf16 %v864_v24, %v863_v22  ;;  %v865_v35 = vld [vmem:[#allocation2 + $0xda] sm:$0xff]  ;;  %v867_v39 = vld [vmem:[#allocation2 + $0xf2] sm:$0xff] }
  0x58   : > { %3765 = vmatprep.mubr.msk.bf16.mxu0 %vm290_vm4, %v879_v26  ;;  %v338_v26 = vld [vmem:[#allocation2 + $0xb0] sm:$0xff]  ;;  %v340_v30 = vld [vmem:[#allocation2 + $0xc8] sm:$0xff]  ;;  %v342_v48 = vld [vmem:[#allocation2 + $0xe0] sm:$0xff] }
  0x59   : > { %3726 = vmatmul.mubr.msk.bf16.gmra.mxu1 %vm290_vm4, %v4275_v27  ;;  %v4355_v32 = vpack.c.bf16 %v338_v26, %v337_v25  ;;  %v4357_v34 = vpack.c.bf16 %v340_v30, %v339_v29  ;;  %v866_v37 = vld [vmem:[#allocation2 + $0xe2] sm:$0xff]  ;;  %v343_v51 = vld [vmem:[#allocation2 + $0xf0] sm:$0xff]  ;;  %v344_v52 = vld [vmem:[#allocation2 + $0xf8] sm:$0xff] }
  0x5a   : > { %3731 = vmatprep.mubr.msk.bf16.mxu1 %vm290_vm4, %v355_v28  ;;  %v4351_v28 = vpack.c.bf16 %v862_v21, %v861_v20  ;;  %v4367_v49 = vpack.c.bf16 %v866_v37, %v865_v35  ;;  %v4373_v57 = vpack.c.bf16 %v344_v52, %v343_v51  ;;  %v869_v59 = vld [vmem:[#allocation2 + $0x10a] sm:$0xff]  ;;  %v870_v61 = vld [vmem:[#allocation2 + $0x112] sm:$0xff]  ;;  %v871_v63 = vld [vmem:[#allocation2 + $0x122] sm:$0xff] }
  0x5b   : > { %v872_v4 = vld [vmem:[#allocation2 + $0x12a] sm:$0xff]  ;;  %v4383_v7 = vpack.c.bf16 %v870_v61, %v869_v59  ;;  %v347_v8 = vld [vmem:[#allocation2 + $0x120] sm:$0xff]  ;;  %v875_v24 = vld [vmem:[#allocation2 + $0x152] sm:$0xff] }
  0x5c   : > { %v345_v5 = vld [vmem:[#allocation2 + $0x108] sm:$0xff]  ;;  %v346_v6 = vld [vmem:[#allocation2 + $0x110] sm:$0xff]  ;;  %v4385_v13 = vpack.c.bf16 %v872_v4, %v871_v63  ;;  %v873_v21 = vld [vmem:[#allocation2 + $0x13a] sm:$0xff]  ;;  %v2123_v4 = vsel %vm470_vm3, %v4298_v47, 0 }
  0x5d   : > { %v348_v9 = vld [vmem:[#allocation2 + $0x128] sm:$0xff]  ;;  %v4387_v15 = vpack.c.bf16 %v346_v6, %v345_v5  ;;  %v876_v25 = vld [vmem:[#allocation2 + $0x15a] sm:$0xff]  ;;  %v351_v35 = vld [vmem:[#allocation2 + $0x150] sm:$0xff]  ;;  %v1828_v6 = vsel %vm470_vm3, %v4307_v53, 0 }
  0x5e   : > { %v4389_v20 = vpack.c.bf16 %v348_v9, %v347_v8  ;;  %v874_v22 = vld [vmem:[#allocation2 + $0x142] sm:$0xff]  ;;  %v349_v26 = vld [vmem:[#allocation2 + $0x138] sm:$0xff]  ;;  %v354_v59 = vld [vmem:[#allocation2 + $0x170] sm:$0xff] }
  0x5f   : > { %3766 = vmatmul.mubr.msk.bf16.vlgmr.msra.gmra.mxu0 %vm290_vm4, %v4283_v36  ;;  %v350_v29 = vld [vmem:[#allocation2 + $0x140] sm:$0xff]  ;;  %v4399_v30 = vpack.c.bf16 %v874_v22, %v873_v21  ;;  %v352_v37 = vld [vmem:[#allocation2 + $0x158] sm:$0xff]  ;;  %v353_v52 = vld [vmem:[#allocation2 + $0x168] sm:$0xff] }
  0x60   : > { %3832 = vmatpush3.bf16.msra.mxu0 %v1534_v43  ;;  %3769 = vmatprep.mubr.msk.bf16.mxu0 %vm290_vm4, %v4285_v40  ;;  %v868_v43 = vld [vmem:[#allocation2 + $0xfa] sm:$0xff]  ;;  %v878_v51 = vld [vmem:[#allocation2 + $0x172] sm:$0xff]  ;;  %v4417_v63 = vpack.c.bf16 %v354_v59, %v353_v52  ;;  %v3457_v5 = vld [vmem:[%s5268_s1 + $0x10] sm:$0x3] }
  0x61   : > { %3732 = vmatmul.mubr.msk.bf16.vlgmr.msra.gmra.mxu1 %vm290_vm4, %v4287_v41  ;;  %4010 = vmatprep.subr.msk.bf16.mxu0 %vm470_vm3, %v4298_v47  ;;  %v4369_v54 = vpack.c.bf16 %v868_v43, %v867_v39  ;;  %v4401_v39 = vpack.c.bf16 %v876_v25, %v875_v24  ;;  %v4403_v43 = vpack.c.bf16 %v350_v29, %v349_v26  ;;  %v2318_v25 = vld [vmem:[#allocation2 + $0x31] sm:$0xff]  ;;  %v2319_v26 = vld [vmem:[#allocation2 + $0x39] sm:$0xff]  ;;  %v2320_v59 = vld [vmem:[#allocation2 + $0x49] sm:$0xff] }
  0x62   : > { %3798 = vmatpush3.bf16.msra.mxu1 %v1240_v45  ;;  %3735 = vmatprep.mubr.msk.bf16.mxu1 %vm290_vm4, %v4290_v44  ;;  %v341_v45 = vld [vmem:[#allocation2 + $0xd8] sm:$0xff] }
  0x63   : > { %4009 = vmatprep.subr.msk.bf16.mxu1 %vm470_vm3, %v4307_v53  ;;  %v4371_v56 = vpack.c.bf16 %v342_v48, %v341_v45  ;;  %v4405_v45 = vpack.c.bf16 %v352_v37, %v351_v35  ;;  %v877_v48 = vld [vmem:[#allocation2 + $0x16a] sm:$0xff] }
  0x64   : > { %v4415_v61 = vpack.c.bf16 %v878_v51, %v877_v48 }
  0x67   : > { %3770 = vmatmul.mubr.msk.bf16.gmra.mxu0 %vm290_vm4, %v4317_v60 }
  0x68   : > { %3773 = vmatprep.mubr.msk.bf16.mxu0 %vm290_vm4, %v4321_v0 }
  0x69   : > { %3736 = vmatmul.mubr.msk.bf16.gmra.mxu1 %vm290_vm4, %v4323_v2 }
  0x6a   : > { %3739 = vmatprep.mubr.msk.bf16.mxu1 %vm290_vm4, %v4325_v3 }
  0x6f   : > { %3774 = vmatmul.mubr.msk.bf16.gmra.mxu0 %vm290_vm4, %v4335_v10 }
  0x70   : > { %3777 = vmatprep.mubr.msk.bf16.mxu0 %vm290_vm4, %v4337_v17 }
  0x71   : > { %3740 = vmatmul.mubr.msk.bf16.gmra.mxu1 %vm290_vm4, %v4339_v18 }
  0x72   : > { %3743 = vmatprep.mubr.msk.bf16.mxu1 %vm290_vm4, %v4341_v19 }
  0x77   : > { %3778 = vmatmul.mubr.msk.bf16.gmra.mxu0 %vm290_vm4, %v4351_v28 }
  0x78   : > { %3781 = vmatprep.mubr.msk.bf16.mxu0 %vm290_vm4, %v4353_v31 }
  0x79   : > { %3744 = vmatmul.mubr.msk.bf16.gmra.mxu1 %vm290_vm4, %v4355_v32 }
  0x7a   : > { %3747 = vmatprep.mubr.msk.bf16.mxu1 %vm290_vm4, %v4357_v34 }
  0x7f   : > { %3782 = vmatmul.mubr.msk.bf16.gmra.mxu0 %vm290_vm4, %v4367_v49 }
  0x80   : > { %3785 = vmatprep.mubr.msk.bf16.mxu0 %vm290_vm4, %v4369_v54 }
  0x81   : > { %3748 = vmatmul.mubr.msk.bf16.gmra.mxu1 %vm290_vm4, %v4371_v56 }
  0x82   : > { %3751 = vmatprep.mubr.msk.bf16.mxu1 %vm290_vm4, %v4373_v57 }
  0x87   : > { %3786 = vmatmul.mubr.msk.bf16.gmra.mxu0 %vm290_vm4, %v4383_v7 }
  0x88   : > { %3789 = vmatprep.mubr.msk.bf16.mxu0 %vm290_vm4, %v4385_v13 }
  0x89   : > { %3752 = vmatmul.mubr.msk.bf16.gmra.mxu1 %vm290_vm4, %v4387_v15 }
  0x8a   : > { %3755 = vmatprep.mubr.msk.bf16.mxu1 %vm290_vm4, %v4389_v20 }
  0x8f   : > { %3790 = vmatmul.mubr.msk.bf16.gmra.mxu0 %vm290_vm4, %v4399_v30 }
  0x90   : > { %3793 = vmatprep.mubr.msk.bf16.mxu0 %vm290_vm4, %v4401_v39 }
  0x91   : > { %3756 = vmatmul.mubr.msk.bf16.gmra.mxu1 %vm290_vm4, %v4403_v43 }
  0x92   : > { %3759 = vmatprep.mubr.msk.bf16.mxu1 %vm290_vm4, %v4405_v45 }
  0x97   : > { %3794 = vmatmul.mubr.msk.bf16.gmra.mxu0 %vm290_vm4, %v4415_v61 }
  0x98   : > { %3833 = vmatprep.mubr.msk.bf16.mxu0 %vm290_vm4, %v4195_v33  ;;  %v3440_v33 = vld [vmem:[%s5268_s1 + $0xe] sm:$0x3] }
  0x99   : > { %3760 = vmatmul.mubr.msk.bf16.gmra.mxu1 %vm290_vm4, %v4417_v63 }
  0x9a   : > { %3799 = vmatprep.mubr.msk.bf16.mxu1 %vm290_vm4, %v4287_v41 }
  0x9f   : > { %3834 = vmatmul.mubr.msk.bf16.vlgmr.msra.gmra.mxu0 %vm290_vm4, %v4211_v46  ;;  %v1171_v46 = vld [vmem:[#allocation2 + $0x180] sm:$0xff] }
  0xa0   : > { %3900 = vmatpush3.bf16.msra.mxu0 %v2123_v4  ;;  %3837 = vmatprep.mubr.msk.bf16.mxu0 %vm290_vm4, %v4219_v55 }
  0xa1   : > { %3800 = vmatmul.mubr.msk.bf16.vlgmr.msra.gmra.mxu1 %vm290_vm4, %v4290_v44  ;;  %4012 = vmatprep.subr.msk.bf16.mxu0 %vm470_vm3, %v3457_v5 }
  0xa2   : > { %3866 = vmatpush3.bf16.msra.mxu1 %v1828_v6  ;;  %3803 = vmatprep.mubr.msk.bf16.mxu1 %vm290_vm4, %v4323_v2  ;;  %v2322_v6 = vld [vmem:[#allocation2 + $0x61] sm:$0xff] }
  0xa3   : > { %4011 = vmatprep.subr.msk.bf16.mxu1 %vm470_vm3, %v3440_v33 }
  0xa7   : > { %3838 = vmatmul.mubr.msk.bf16.gmra.mxu0 %vm290_vm4, %v4223_v58 }
  0xa8   : > { %3841 = vmatprep.mubr.msk.bf16.mxu0 %vm290_vm4, %v4257_v11 }
  0xa9   : > { %3804 = vmatmul.mubr.msk.bf16.gmra.mxu1 %vm290_vm4, %v4325_v3 }
  0xaa   : > { %3807 = vmatprep.mubr.msk.bf16.mxu1 %vm290_vm4, %v4339_v18 }
  0xaf   : > { %3842 = vmatmul.mubr.msk.bf16.gmra.mxu0 %vm290_vm4, %v4259_v12 }
  0xb0   : > { %3845 = vmatprep.mubr.msk.bf16.mxu0 %vm290_vm4, %v4273_v23 }
  0xb1   : > { %3808 = vmatmul.mubr.msk.bf16.gmra.mxu1 %vm290_vm4, %v4341_v19 }
  0xb2   : > { %3811 = vmatprep.mubr.msk.bf16.mxu1 %vm290_vm4, %v4355_v32 }
  0xb7   : > { %3846 = vmatmul.mubr.msk.bf16.gmra.mxu0 %vm290_vm4, %v4199_v38  ;;  %v1465_v38 = vld [vmem:[#allocation2 + $0x181] sm:$0xff] }
  0xb8   : > { %3849 = vmatprep.mubr.msk.bf16.mxu0 %vm290_vm4, %v4205_v42  ;;  %v1466_v42 = vld [vmem:[#allocation2 + $0x189] sm:$0xff] }
  0xb9   : > { %3812 = vmatmul.mubr.msk.bf16.gmra.mxu1 %vm290_vm4, %v4357_v34  ;;  %v4495_v55 = vpack.c.bf16 %v1466_v42, %v1465_v38 }
  0xba   : > { %3815 = vmatprep.mubr.msk.bf16.mxu1 %vm290_vm4, %v4371_v56 }
  0xbf   : > { %3850 = vmatmul.mubr.msk.bf16.gmra.mxu0 %vm290_vm4, %v4215_v50  ;;  %v1172_v50 = vld [vmem:[#allocation2 + $0x188] sm:$0xff] }
  0xc0   : > { %3853 = vmatprep.mubr.msk.bf16.mxu0 %vm290_vm4, %v4228_v62  ;;  %v1188_v58 = vpack.c.bf16 %v1172_v50, %v1171_v46  ;;  %v2711_v62 = vsel %vm470_vm3, %v3457_v5, 0 }
  0xc1   : > { %3816 = vmatmul.mubr.msk.bf16.gmra.mxu1 %vm290_vm4, %v4373_v57 }
  0xc2   : > { %3819 = vmatprep.mubr.msk.bf16.mxu1 %vm290_vm4, %v4387_v15 }
  0xc7   : > { %3854 = vmatmul.mubr.msk.bf16.gmra.mxu0 %vm290_vm4, %v4235_v1  ;;  %v2417_v1 = vsel %vm470_vm3, %v3440_v33, 0  ;;  %v2323_v33 = vld [vmem:[#allocation2 + $0x69] sm:$0xff] }
  0xc8   : > { %3857 = vmatprep.mubr.msk.bf16.mxu0 %vm290_vm4, %v4261_v14  ;;  %v2352_v46 = vpack.c.bf16 %v2323_v33, %v2322_v6 }
  0xc9   : > { %3820 = vmatmul.mubr.msk.bf16.gmra.mxu1 %vm290_vm4, %v4389_v20 }
  0xca   : > { %3823 = vmatprep.mubr.msk.bf16.mxu1 %vm290_vm4, %v4403_v43 }
  0xcf   : > { %3858 = vmatmul.mubr.msk.bf16.gmra.mxu0 %vm290_vm4, %v4263_v16 }
  0xd0   : > { %3861 = vmatprep.mubr.msk.bf16.mxu0 %vm290_vm4, %v4275_v27 }
  0xd1   : > { %3824 = vmatmul.mubr.msk.bf16.gmra.mxu1 %vm290_vm4, %v4405_v45 }
  0xd2   : > { %3827 = vmatprep.mubr.msk.bf16.mxu1 %vm290_vm4, %v4417_v63 }
  0xd7   : > { %3862 = vmatmul.mubr.msk.bf16.gmra.mxu0 %vm290_vm4, %v4495_v55 }
  0xd8   : > { %3901 = vmatprep.mubr.msk.bf16.mxu0 %vm290_vm4, %v4290_v44 }
  0xd9   : > { %3828 = vmatmul.mubr.msk.bf16.gmra.mxu1 %vm290_vm4, %v1188_v58 }
  0xda   : > { %3867 = vmatprep.mubr.msk.bf16.mxu1 %vm290_vm4, %v4283_v36 }
  0xdf   : > { %3902 = vmatmul.mubr.msk.bf16.vlgmr.msra.gmra.mxu0 %vm290_vm4, %v4323_v2 }
  0xe0   : > { %3968 = vmatpush3.bf16.msra.mxu0 %v2711_v62  ;;  %3905 = vmatprep.mubr.msk.bf16.mxu0 %vm290_vm4, %v4325_v3 }
  0xe1   : > { %3868 = vmatmul.mubr.msk.bf16.vlgmr.msra.gmra.mxu1 %vm290_vm4, %v4285_v40 }
  0xe2   : > { %3934 = vmatpush3.bf16.msra.mxu1 %v2417_v1  ;;  %3871 = vmatprep.mubr.msk.bf16.mxu1 %vm290_vm4, %v4317_v60 }
  0xe7   : > { %3906 = vmatmul.mubr.msk.bf16.gmra.mxu0 %vm290_vm4, %v4339_v18 }
  0xe8   : > { %3909 = vmatprep.mubr.msk.bf16.mxu0 %vm290_vm4, %v4341_v19 }
  0xe9   : > { %3872 = vmatmul.mubr.msk.bf16.gmra.mxu1 %vm290_vm4, %v4321_v0 }
  0xea   : > { %3875 = vmatprep.mubr.msk.bf16.mxu1 %vm290_vm4, %v4335_v10 }
  0xef   : > { %3910 = vmatmul.mubr.msk.bf16.gmra.mxu0 %vm290_vm4, %v4355_v32 }
  0xf0   : > { %3913 = vmatprep.mubr.msk.bf16.mxu0 %vm290_vm4, %v4357_v34 }
  0xf1   : > { %3876 = vmatmul.mubr.msk.bf16.gmra.mxu1 %vm290_vm4, %v4337_v17 }
  0xf2   : > { %3879 = vmatprep.mubr.msk.bf16.mxu1 %vm290_vm4, %v4351_v28 }
  0xf7   : > { %3914 = vmatmul.mubr.msk.bf16.gmra.mxu0 %vm290_vm4, %v4371_v56  ;;  %v2054_v56 = vld [vmem:[#allocation2 + $0x198] sm:$0xff] }
  0xf8   : > { %3917 = vmatprep.mubr.msk.bf16.mxu0 %vm290_vm4, %v4373_v57  ;;  %v2055_v57 = vld [vmem:[#allocation2 + $0x1a0] sm:$0xff] }
  0xf9   : > { %3880 = vmatmul.mubr.msk.bf16.gmra.mxu1 %vm290_vm4, %v4353_v31  ;;  %v2071_v24 = vpack.c.bf16 %v2055_v57, %v2054_v56  ;;  %v2324_v57 = vld [vmem:[#allocation2 + $0x79] sm:$0xff] }
  0xfa   : > { %3883 = vmatprep.mubr.msk.bf16.mxu1 %vm290_vm4, %v4367_v49 }
  0xff   : > { %v4538_v11 = vpop.f32.mrf.mxu0  ;;  %3918 = vmatmul.mubr.msk.bf16.gmra.mxu0 %vm290_vm4, %v4387_v15  ;;  %v1759_v15 = vld [vmem:[#allocation2 + $0x182] sm:$0xff] }
 0x100   : > { %3921 = vmatprep.mubr.msk.bf16.mxu0 %vm290_vm4, %v4389_v20  ;;  %v1760_v20 = vld [vmem:[#allocation2 + $0x18a] sm:$0xff] }
 0x101   : > { %v4544_v12 = vpop.f32.mrf.mxu1  ;;  %3884 = vmatmul.mubr.msk.bf16.gmra.mxu1 %vm290_vm4, %v4369_v54  ;;  %v4548_v14 = vpop.f32.mrf.mxu0  ;;  %v4607_v37 = vpack.c.bf16 %v1760_v20, %v1759_v15  ;;  %v2325_v15 = vld [vmem:[#allocation2 + $0x81] sm:$0xff] }
 0x102   : > { %3887 = vmatprep.mubr.msk.bf16.mxu1 %vm290_vm4, %v4383_v7 }
 0x103   : > { %v4552_v16 = vpop.f32.mrf.mxu1  ;;  %v4554_v23 = vpop.f32.mrf.mxu0 }
 0x105   : > { %v4556_v27 = vpop.f32.mrf.mxu1  ;;  %v4558_v36 = vpop.f32.mrf.mxu0 }
 0x107   : > { %v4560_v41 = vpop.f32.mrf.mxu1  ;;  %v4562_v44 = vpop.f32.mrf.mxu0  ;;  %3922 = vmatmul.mubr.msk.bf16.gmra.mxu0 %vm290_vm4, %v4403_v43  ;;  %v2350_v43 = vpack.c.bf16 %v2319_v26, %v2318_v25  ;;  %v2326_v25 = vld [vmem:[#allocation2 + $0x91] sm:$0xff]  ;;  %v2327_v26 = vld [vmem:[#allocation2 + $0x99] sm:$0xff] }
 0x108   : > { %3925 = vmatprep.mubr.msk.bf16.mxu0 %vm290_vm4, %v4405_v45  ;;  %v2354_v33 = vpack.c.bf16 %v2327_v26, %v2326_v25  ;;  %v2331_v25 = vld [vmem:[#allocation2 + $0xc9] sm:$0xff] }
 0x109   : > { %v4568_v47 = vpop.f32.mrf.mxu1  ;;  %3888 = vmatmul.mubr.msk.bf16.gmra.mxu1 %vm290_vm4, %v4385_v13  ;;  %v4572_v53 = vpop.f32.mrf.mxu0 }
 0x10a   : > { %3891 = vmatprep.mubr.msk.bf16.mxu1 %vm290_vm4, %v4399_v30 }
 0x10b   : > { %v4576_v2 = vpop.f32.mrf.mxu1  ;;  %v4578_v3 = vpop.f32.mrf.mxu0 }
 0x10d   : > { %v4580_v18 = vpop.f32.mrf.mxu1  ;;  %v4582_v19 = vpop.f32.mrf.mxu0 }
 0x10f   : > { %v4584_v32 = vpop.f32.mrf.mxu1  ;;  %v4586_v34 = vpop.f32.mrf.mxu0  ;;  %3926 = vmatmul.mubr.msk.bf16.gmra.mxu0 %vm290_vm4, %v4417_v63  ;;  %v2321_v63 = vld [vmem:[#allocation2 + $0x51] sm:$0xff] }
 0x110   : > { %3929 = vmatprep.mubr.msk.bf16.mxu0 %vm290_vm4, %v1188_v58  ;;  %v2351_v42 = vpack.c.bf16 %v2321_v63, %v2320_v59  ;;  %v2353_v63 = vpack.c.bf16 %v2325_v15, %v2324_v57  ;;  %v2329_v57 = vld [vmem:[#allocation2 + $0xb1] sm:$0xff] }
 0x111   : > { %v4591_v8 = vpop.f32.mrf.mxu1  ;;  %3892 = vmatmul.mubr.msk.bf16.gmra.mxu1 %vm290_vm4, %v4401_v39  ;;  %v4595_v9 = vpop.f32.mrf.mxu0 }
 0x112   : > { %3895 = vmatprep.mubr.msk.bf16.mxu1 %vm290_vm4, %v4415_v61 }
 0x113   : > { %v4599_v21 = vpop.f32.mrf.mxu1  ;;  %v4601_v22 = vpop.f32.mrf.mxu0 }
 0x115   : > { %v4603_v29 = vpop.f32.mrf.mxu1  ;;  %v4605_v35 = vpop.f32.mrf.mxu0 }
 0x117   : > { %v4609_v45 = vpop.f32.mrf.mxu1  ;;  %v4611_v48 = vpop.f32.mrf.mxu0  ;;  %3930 = vmatmul.mubr.msk.bf16.gmra.mxu0 %vm290_vm4, %v2071_v24 }
 0x118   : > { %3969 = vmatprep.mubr.msk.bf16.mxu0 %vm290_vm4, %v4285_v40 }
 0x119   : > { %v4616_v51 = vpop.f32.mrf.mxu1  ;;  %3896 = vmatmul.mubr.msk.bf16.gmra.mxu1 %vm290_vm4, %v4607_v37  ;;  %v4620_v52 = vpop.f32.mrf.mxu0 }
 0x11a   : > { %3935 = vmatprep.mubr.msk.bf16.mxu1 %vm290_vm4, %v2350_v43 }
 0x11b   : > { %v4623_v4 = vpop.f32.mrf.mxu1  ;;  %v4625_v5 = vpop.f32.mrf.mxu0 }
 0x11d   : > { %v4627_v38 = vpop.f32.mrf.mxu1  ;;  %v4629_v40 = vpop.f32.mrf.mxu0 }
 0x11f   : > { %v4631_v50 = vpop.f32.mrf.mxu1  ;;  %v3767_v58 = vpop.f32.mrf.mxu0  ;;  %3970 = vmatmul.mubr.msk.bf16.vlgmr.msra.gmra.mxu0 %vm290_vm4, %v4317_v60 }
 0x120   : > { %3973 = vmatprep.mubr.msk.bf16.mxu0 %vm290_vm4, %v4321_v0 }
 0x121   : > { %v3733_v62 = vpop.f32.mrf.mxu1  ;;  %3936 = vmatmul.mubr.msk.bf16.vlgmr.msra.gmra.mxu1 %vm290_vm4, %v2351_v42  ;;  %v982_v1 = vpop.f32.mrf.mxu0 }
 0x122   : > { %v729_v56 = vadd.f32 %v3733_v62, %v4538_v11  ;;  %3939 = vmatprep.mubr.msk.bf16.mxu1 %vm290_vm4, %v2352_v46 }
 0x123   : > { %v720_v20 = vpop.f32.mrf.mxu1  ;;  %v3768_v24 = vpop.f32.mrf.mxu0 }
 0x124   : > { %v721_v43 = vadd.f32 %v720_v20, %v4548_v14  ;;  %v4641_v60 = vadd.f32 %v3767_v58, %v729_v56 }
 0x125   : > { %v3734_v59 = vpop.f32.mrf.mxu1  ;;  %v985_v0 = vpop.f32.mrf.mxu0 }
 0x126   : > { %v732_v6 = vadd.f32 %v3734_v59, %v4554_v23  ;;  %v4644_v42 = vadd.f32 %v982_v1, %v721_v43  ;;  %v2328_v1 = vld [vmem:[#allocation2 + $0xa9] sm:$0xff] }
 0x127   : > { %v723_v11 = vpop.f32.mrf.mxu1  ;;  %v3771_v46 = vpop.f32.mrf.mxu0  ;;  %3974 = vmatmul.mubr.msk.bf16.gmra.mxu0 %vm290_vm4, %v4335_v10  ;;  %v2355_v59 = vpack.c.bf16 %v2329_v57, %v2328_v1  ;;  %v2335_v57 = vld [vmem:[#allocation2 + $0xf9] sm:$0xff] }
 0x128   : > { %v724_v62 = vadd.f32 %v723_v11, %v4558_v36  ;;  %3977 = vmatprep.mubr.msk.bf16.mxu0 %vm290_vm4, %v4337_v17  ;;  %v4651_v14 = vadd.f32 %v3768_v24, %v732_v6  ;;  %v2330_v36 = vld [vmem:[#allocation2 + $0xc1] sm:$0xff] }
 0x129   : > { %v3737_v58 = vpop.f32.mrf.mxu1  ;;  %3940 = vmatmul.mubr.msk.bf16.gmra.mxu1 %vm290_vm4, %v2353_v63  ;;  %v998_v56 = vpop.f32.mrf.mxu0 }
 0x12a   : > { %v745_v23 = vadd.f32 %v3737_v58, %v4562_v44  ;;  %3943 = vmatprep.mubr.msk.bf16.mxu1 %vm290_vm4, %v2354_v33  ;;  %v4656_v15 = vadd.f32 %v985_v0, %v724_v62  ;;  %v2356_v44 = vpack.c.bf16 %v2331_v25, %v2330_v36  ;;  %v2332_v58 = vld [vmem:[#allocation2 + $0xd9] sm:$0xff] }
 0x12b   : > { %v736_v10 = vpop.f32.mrf.mxu1  ;;  %v3772_v20 = vpop.f32.mrf.mxu0 }
 0x12c   : > { %v737_v17 = vadd.f32 %v736_v10, %v4572_v53  ;;  %v4659_v24 = vadd.f32 %v3771_v46, %v745_v23 }
 0x12d   : > { %v3738_v26 = vpop.f32.mrf.mxu1  ;;  %v1001_v43 = vpop.f32.mrf.mxu0 }
 0x12e   : > { %v748_v63 = vadd.f32 %v3738_v26, %v4578_v3  ;;  %v4662_v6 = vadd.f32 %v998_v56, %v737_v17  ;;  %v2333_v56 = vld [vmem:[#allocation2 + $0xe1] sm:$0xff] }
 0x12f   : > { %v739_v33 = vpop.f32.mrf.mxu1  ;;  %v3775_v11 = vpop.f32.mrf.mxu0  ;;  %3978 = vmatmul.mubr.msk.bf16.gmra.mxu0 %vm290_vm4, %v4351_v28  ;;  %v2357_v25 = vpack.c.bf16 %v2333_v56, %v2332_v58 }
 0x130   : > { %v740_v0 = vadd.f32 %v739_v33, %v4582_v19  ;;  %3981 = vmatprep.mubr.msk.bf16.mxu0 %vm290_vm4, %v4353_v31  ;;  %v4669_v53 = vadd.f32 %v3772_v20, %v748_v63  ;;  %v2334_v19 = vld [vmem:[#allocation2 + $0xf1] sm:$0xff] }
 0x131   : > { %v3741_v46 = vpop.f32.mrf.mxu1  ;;  %3944 = vmatmul.mubr.msk.bf16.gmra.mxu1 %vm290_vm4, %v2355_v59  ;;  %v1014_v62 = vpop.f32.mrf.mxu0 }
 0x132   : > { %v761_v3 = vadd.f32 %v3741_v46, %v4586_v34  ;;  %3947 = vmatprep.mubr.msk.bf16.mxu1 %vm290_vm4, %v2356_v44  ;;  %v4674_v23 = vadd.f32 %v1001_v43, %v740_v0  ;;  %v2358_v34 = vpack.c.bf16 %v2335_v57, %v2334_v19  ;;  %v2337_v0 = vld [vmem:[#allocation2 + $0x111] sm:$0xff] }
 0x133   : > { %v752_v28 = vpop.f32.mrf.mxu1  ;;  %v3776_v1 = vpop.f32.mrf.mxu0 }
 0x134   : > { %v753_v31 = vadd.f32 %v752_v28, %v4595_v9  ;;  %v4677_v10 = vadd.f32 %v3775_v11, %v761_v3  ;;  %v2336_v11 = vld [vmem:[#allocation2 + $0x109] sm:$0xff] }
 0x135   : > { %v3742_v20 = vpop.f32.mrf.mxu1  ;;  %v1017_v36 = vpop.f32.mrf.mxu0  ;;  %v2339_v3 = vld [vmem:[#allocation2 + $0x129] sm:$0xff] }
 0x136   : > { %v764_v17 = vadd.f32 %v3742_v20, %v4601_v22  ;;  %v4680_v26 = vadd.f32 %v1014_v62, %v753_v31 }
 0x137   : > { %v755_v59 = vpop.f32.mrf.mxu1  ;;  %v3779_v63 = vpop.f32.mrf.mxu0  ;;  %3982 = vmatmul.mubr.msk.bf16.gmra.mxu0 %vm290_vm4, %v4367_v49 }
 0x138   : > { %v756_v43 = vadd.f32 %v755_v59, %v4605_v35  ;;  %3985 = vmatprep.mubr.msk.bf16.mxu0 %vm290_vm4, %v4369_v54  ;;  %v4687_v9 = vadd.f32 %v3776_v1, %v764_v17  ;;  %v2338_v35 = vld [vmem:[#allocation2 + $0x121] sm:$0xff]  ;;  %v2359_v1 = vpack.c.bf16 %v2337_v0, %v2336_v11 }
 0x139   : > { %v3745_v44 = vpop.f32.mrf.mxu1  ;;  %3948 = vmatmul.mubr.msk.bf16.gmra.mxu1 %vm290_vm4, %v2357_v25  ;;  %v1030_v33 = vpop.f32.mrf.mxu0  ;;  %v2341_v59 = vld [vmem:[#allocation2 + $0x141] sm:$0xff] }
 0x13a   : > { %v777_v22 = vadd.f32 %v3745_v44, %v4611_v48  ;;  %3951 = vmatprep.mubr.msk.bf16.mxu1 %vm290_vm4, %v2358_v34  ;;  %v4692_v46 = vadd.f32 %v1017_v36, %v756_v43  ;;  %v2360_v48 = vpack.c.bf16 %v2339_v3, %v2338_v35  ;;  %v2340_v34 = vld [vmem:[#allocation2 + $0x139] sm:$0xff] }
 0x13b   : > { %v768_v49 = vpop.f32.mrf.mxu1  ;;  %v3780_v62 = vpop.f32.mrf.mxu0  ;;  %v2343_v44 = vld [vmem:[#allocation2 + $0x159] sm:$0xff]  ;;  %v2361_v0 = vpack.c.bf16 %v2341_v59, %v2340_v34 }
 0x13c   : > { %v769_v54 = vadd.f32 %v768_v49, %v4620_v52  ;;  %v4695_v58 = vadd.f32 %v3779_v63, %v777_v22 }
 0x13d   : > { %v3746_v56 = vpop.f32.mrf.mxu1  ;;  %v1033_v28 = vpop.f32.mrf.mxu0 }
 0x13e   : > { %v780_v19 = vadd.f32 %v3746_v56, %v4625_v5  ;;  %v4698_v57 = vadd.f32 %v1030_v33, %v769_v54 }
 0x13f   : > { %v771_v31 = vpop.f32.mrf.mxu1  ;;  %v3783_v20 = vpop.f32.mrf.mxu0  ;;  %3986 = vmatmul.mubr.msk.bf16.gmra.mxu0 %vm290_vm4, %v4383_v7 }
 0x140   : > { %v772_v36 = vadd.f32 %v771_v31, %v4629_v40  ;;  %3989 = vmatprep.mubr.msk.bf16.mxu0 %vm290_vm4, %v4385_v13  ;;  %v4705_v52 = vadd.f32 %v3780_v62, %v780_v19  ;;  %v2342_v40 = vld [vmem:[#allocation2 + $0x151] sm:$0xff] }
 0x141   : > { %v3749_v25 = vpop.f32.mrf.mxu1  ;;  %3952 = vmatmul.mubr.msk.bf16.gmra.mxu1 %vm290_vm4, %v2359_v1  ;;  %v1046_v17 = vpop.f32.mrf.mxu0  ;;  %v2344_v1 = vld [vmem:[#allocation2 + $0x169] sm:$0xff]  ;;  %v2345_v19 = vld [vmem:[#allocation2 + $0x171] sm:$0xff] }
 0x142   : > { %v793_v5 = vadd.f32 %v3749_v25, %v4544_v12  ;;  %3955 = vmatprep.mubr.msk.bf16.mxu1 %vm290_vm4, %v2360_v48  ;;  %v4710_v63 = vadd.f32 %v1033_v28, %v772_v36  ;;  %v2362_v12 = vpack.c.bf16 %v2343_v44, %v2342_v40  ;;  %v2363_v25 = vpack.c.bf16 %v2345_v19, %v2344_v1 }
 0x143   : > { %v784_v7 = vpop.f32.mrf.mxu1  ;;  %v3784_v43 = vpop.f32.mrf.mxu0 }
 0x144   : > { %v785_v13 = vadd.f32 %v784_v7, %v4552_v16  ;;  %v4713_v33 = vadd.f32 %v3783_v20, %v793_v5  ;;  %v2643_v7 = vld [vmem:[#allocation2 + $0x1a2] sm:$0xff] }
 0x145   : > { %v3750_v22 = vpop.f32.mrf.mxu1  ;;  %v1049_v11 = vpop.f32.mrf.mxu0 }
 0x146   : > { %v796_v49 = vadd.f32 %v3750_v22, %v4556_v27  ;;  %v4716_v62 = vadd.f32 %v1046_v17, %v785_v13  ;;  %v2348_v13 = vld [vmem:[#allocation2 + $0x199] sm:$0xff] }
 0x147   : > { %v787_v35 = vpop.f32.mrf.mxu1  ;;  %v3787_v3 = vpop.f32.mrf.mxu0  ;;  %3990 = vmatmul.mubr.msk.bf16.gmra.mxu0 %vm290_vm4, %v4399_v30 }
 0x148   : > { %v788_v54 = vadd.f32 %v787_v35, %v4560_v41  ;;  %3993 = vmatprep.mubr.msk.bf16.mxu0 %vm290_vm4, %v4401_v39  ;;  %v4723_v16 = vadd.f32 %v3784_v43, %v796_v49 }
 0x149   : > { %v3753_v56 = vpop.f32.mrf.mxu1  ;;  %3956 = vmatmul.mubr.msk.bf16.gmra.mxu1 %vm290_vm4, %v2361_v0  ;;  %v1062_v28 = vpop.f32.mrf.mxu0 }
 0x14a   : > { %v809_v27 = vadd.f32 %v3753_v56, %v4568_v47  ;;  %3959 = vmatprep.mubr.msk.bf16.mxu1 %vm290_vm4, %v2362_v12  ;;  %v4728_v48 = vadd.f32 %v1049_v11, %v788_v54 }
 0x14b   : > { %v800_v30 = vpop.f32.mrf.mxu1  ;;  %v3788_v31 = vpop.f32.mrf.mxu0 }
 0x14c   : > { %v801_v41 = vadd.f32 %v800_v30, %v4576_v2  ;;  %v4731_v20 = vadd.f32 %v3787_v3, %v809_v27  ;;  %v2642_v2 = vld [vmem:[#allocation2 + $0x19a] sm:$0xff] }
 0x14d   : > { %v3754_v39 = vpop.f32.mrf.mxu1  ;;  %v1065_v36 = vpop.f32.mrf.mxu0 }
 0x14e   : > { %v812_v17 = vadd.f32 %v3754_v39, %v4580_v18  ;;  %v4734_v5 = vadd.f32 %v1062_v28, %v801_v41 }
 0x14f   : > { %v803_v47 = vpop.f32.mrf.mxu1  ;;  %v3791_v34 = vpop.f32.mrf.mxu0  ;;  %3994 = vmatmul.mubr.msk.bf16.gmra.mxu0 %vm290_vm4, %v4415_v61  ;;  %v2349_v61 = vld [vmem:[#allocation2 + $0x1a1] sm:$0xff] }
 0x150   : > { %v804_v59 = vadd.f32 %v803_v47, %v4584_v32  ;;  %3997 = vmatprep.mubr.msk.bf16.mxu0 %vm290_vm4, %v4607_v37  ;;  %v4741_v43 = vadd.f32 %v3788_v31, %v812_v17  ;;  %v2659_v37 = vpack.c.bf16 %v2643_v7, %v2642_v2  ;;  %v2365_v3 = vpack.c.bf16 %v2349_v61, %v2348_v13 }
 0x151   : > { %v3757_v40 = vpop.f32.mrf.mxu1  ;;  %3960 = vmatmul.mubr.msk.bf16.gmra.mxu1 %vm290_vm4, %v2363_v25  ;;  %v1078_v18 = vpop.f32.mrf.mxu0 }
 0x152   : > { %v825_v44 = vadd.f32 %v3757_v40, %v4591_v8  ;;  %3963 = vmatprep.mubr.msk.bf16.mxu1 %vm290_vm4, %v4495_v55  ;;  %v4747_v22 = vadd.f32 %v1065_v36, %v804_v59 }
 0x153   : > { %v816_v32 = vpop.f32.mrf.mxu1  ;;  %v3792_v11 = vpop.f32.mrf.mxu0 }
 0x154   : > { %v817_v0 = vadd.f32 %v816_v32, %v4599_v21  ;;  %v4750_v49 = vadd.f32 %v3791_v34, %v825_v44 }
 0x155   : > { %v3758_v12 = vpop.f32.mrf.mxu1  ;;  %v1081_v35 = vpop.f32.mrf.mxu0 }
 0x156   : > { %v828_v54 = vadd.f32 %v3758_v12, %v4603_v29  ;;  %v4753_v8 = vadd.f32 %v1078_v18, %v817_v0 }
 0x157   : > { %v819_v56 = vpop.f32.mrf.mxu1  ;;  %v3795_v55 = vpop.f32.mrf.mxu0  ;;  %3998 = vmatmul.mubr.msk.bf16.gmra.mxu0 %vm290_vm4, %v2659_v37 }
 0x158   : > { %v820_v28 = vadd.f32 %v819_v56, %v4609_v45  ;;  %v4757_v27 = vadd.f32 %v3792_v11, %v828_v54 }
 0x159   : > { %v3761_v1 = vpop.f32.mrf.mxu1  ;;  %3964 = vmatmul.mubr.msk.bf16.gmra.mxu1 %vm290_vm4, %v2365_v3  ;;  %v1094_v21 = vpop.f32.mrf.mxu0 }
 0x15a   : > { %v841_v19 = vadd.f32 %v3761_v1, %v4616_v51  ;;  %v4761_v30 = vadd.f32 %v1081_v35, %v820_v28 }
 0x15b   : > { %v832_v31 = vpop.f32.mrf.mxu1  ;;  %v3796_v29 = vpop.f32.mrf.mxu0 }
 0x15c   : > { %v833_v41 = vadd.f32 %v832_v31, %v4623_v4  ;;  %v4764_v39 = vadd.f32 %v3795_v55, %v841_v19 }
 0x15d   : > { %v3762_v36 = vpop.f32.mrf.mxu1  ;;  %v1097_v25 = vpop.f32.mrf.mxu0 }
 0x15e   : > { %v844_v45 = vadd.f32 %v3762_v36, %v4627_v38  ;;  %v4767_v17 = vadd.f32 %v1094_v21, %v833_v41 }
 0x15f   : > { %v835_v47 = vpop.f32.mrf.mxu1  ;;  %v3835_v34 = vpop.f32.mrf.mxu0 }
 0x160   : > { %v836_v59 = vadd.f32 %v835_v47, %v4631_v50  ;;  %v4770_v2 = vadd.f32 %v3796_v29, %v844_v45 }
 0x161   : > { %v3801_v51 = vpop.f32.mrf.mxu1  ;;  %v1570_v7 = vpop.f32.mrf.mxu0 }
 0x162   : > { %v1405_v40 = vadd.f32 %v3801_v51, %v4641_v60  ;;  %v4773_v18 = vadd.f32 %v1097_v25, %v836_v59 }
 0x163   : > { %v1276_v4 = vpop.f32.mrf.mxu1  ;;  %v3836_v44 = vpop.f32.mrf.mxu0 }
 0x164   : > { %v1403_v13 = vadd.f32 %v1276_v4, %v4644_v42  ;;  %v4776_v61 = vadd.f32 %v3835_v34, %v1405_v40 }
 0x165   : > { %v3802_v38 = vpop.f32.mrf.mxu1  ;;  %v1573_v32 = vpop.f32.mrf.mxu0 }
 0x166   : > { %v1406_v11 = vadd.f32 %v3802_v38, %v4651_v14  ;;  %v4779_v37 = vadd.f32 %v1570_v7, %v1403_v13 }
 0x167   : > { %v1279_v50 = vpop.f32.mrf.mxu1  ;;  %v3839_v0 = vpop.f32.mrf.mxu0 }
 0x168   : > { %v1404_v12 = vadd.f32 %v1279_v50, %v4656_v15  ;;  %v4782_v35 = vadd.f32 %v3836_v44, %v1406_v11 }
 0x169   : > { %v3805_v60 = vpop.f32.mrf.mxu1  ;;  %v1586_v3 = vpop.f32.mrf.mxu0 }
 0x16a   : > { %v1409_v54 = vadd.f32 %v3805_v60, %v4659_v24  ;;  %v4785_v56 = vadd.f32 %v1573_v32, %v1404_v12 }
 0x16b   : > { %v1292_v42 = vpop.f32.mrf.mxu1  ;;  %v3840_v55 = vpop.f32.mrf.mxu0 }
 0x16c   : > { %v1407_v28 = vadd.f32 %v1292_v42, %v4662_v6  ;;  %v4788_v1 = vadd.f32 %v3839_v0, %v1409_v54 }
 0x16d   : > { %v3806_v14 = vpop.f32.mrf.mxu1  ;;  %v1589_v21 = vpop.f32.mrf.mxu0 }
 0x16e   : > { %v1410_v19 = vadd.f32 %v3806_v14, %v4669_v53  ;;  %v4791_v31 = vadd.f32 %v1586_v3, %v1407_v28 }
 0x16f   : > { %v1295_v15 = vpop.f32.mrf.mxu1  ;;  %v3843_v29 = vpop.f32.mrf.mxu0 }
 0x170   : > { %v1408_v41 = vadd.f32 %v1295_v15, %v4674_v23  ;;  %v4794_v36 = vadd.f32 %v3840_v55, %v1410_v19 }
 0x171   : > { %v3809_v24 = vpop.f32.mrf.mxu1  ;;  %v1602_v25 = vpop.f32.mrf.mxu0 }
 0x172   : > { %v1413_v45 = vadd.f32 %v3809_v24, %v4677_v10  ;;  %v4797_v47 = vadd.f32 %v1589_v21, %v1408_v41 }
 0x173   : > { %v1308_v6 = vpop.f32.mrf.mxu1  ;;  %v3844_v34 = vpop.f32.mrf.mxu0 }
 0x174   : > { %v1411_v59 = vadd.f32 %v1308_v6, %v4680_v26  ;;  %v4800_v51 = vadd.f32 %v3843_v29, %v1413_v45 }
 0x175   : > { %v3810_v53 = vpop.f32.mrf.mxu1  ;;  %v1605_v7 = vpop.f32.mrf.mxu0 }
 0x176   : > { %v1414_v40 = vadd.f32 %v3810_v53, %v4687_v9  ;;  %v4803_v4 = vadd.f32 %v1602_v25, %v1411_v59 }
 0x177   : > { %v1311_v23 = vpop.f32.mrf.mxu1  ;;  %v3847_v44 = vpop.f32.mrf.mxu0 }
 0x178   : > { %v1412_v13 = vadd.f32 %v1311_v23, %v4692_v46  ;;  %v4806_v38 = vadd.f32 %v3844_v34, %v1414_v40 }
 0x179   : > { %v3813_v10 = vpop.f32.mrf.mxu1  ;;  %v1618_v32 = vpop.f32.mrf.mxu0 }
 0x17a   : > { %v1417_v11 = vadd.f32 %v3813_v10, %v4695_v58  ;;  %v4809_v50 = vadd.f32 %v1605_v7, %v1412_v13 }
 0x17b   : > { %v1324_v26 = vpop.f32.mrf.mxu1  ;;  %v3848_v0 = vpop.f32.mrf.mxu0 }
 0x17c   : > { %v1415_v12 = vadd.f32 %v1324_v26, %v4698_v57  ;;  %v4812_v60 = vadd.f32 %v3847_v44, %v1417_v11 }
 0x17d   : > { %v3814_v9 = vpop.f32.mrf.mxu1  ;;  %v1621_v3 = vpop.f32.mrf.mxu0 }
 0x17e   : > { %v1418_v54 = vadd.f32 %v3814_v9, %v4705_v52  ;;  %v4815_v42 = vadd.f32 %v1618_v32, %v1415_v12 }
 0x17f   : > { %v1327_v46 = vpop.f32.mrf.mxu1  ;;  %v3851_v55 = vpop.f32.mrf.mxu0 }
 0x180   : > { %v1416_v28 = vadd.f32 %v1327_v46, %v4710_v63  ;;  %v4818_v14 = vadd.f32 %v3848_v0, %v1418_v54 }
 0x181   : > { %v3817_v58 = vpop.f32.mrf.mxu1  ;;  %v1634_v21 = vpop.f32.mrf.mxu0 }
 0x182   : > { %v1421_v19 = vadd.f32 %v3817_v58, %v4713_v33  ;;  %v4821_v15 = vadd.f32 %v1621_v3, %v1416_v28 }
 0x183   : > { %v1340_v57 = vpop.f32.mrf.mxu1  ;;  %v3852_v29 = vpop.f32.mrf.mxu0 }
 0x184   : > { %v1419_v41 = vadd.f32 %v1340_v57, %v4716_v62  ;;  %v4824_v24 = vadd.f32 %v3851_v55, %v1421_v19 }
 0x185   : > { %v3818_v52 = vpop.f32.mrf.mxu1  ;;  %v1637_v25 = vpop.f32.mrf.mxu0 }
 0x186   : > { %v1422_v45 = vadd.f32 %v3818_v52, %v4723_v16  ;;  %v4827_v6 = vadd.f32 %v1634_v21, %v1419_v41 }
 0x187   : > { %v1343_v63 = vpop.f32.mrf.mxu1  ;;  %v3855_v34 = vpop.f32.mrf.mxu0 }
 0x188   : > { %v1420_v59 = vadd.f32 %v1343_v63, %v4728_v48  ;;  %v4830_v53 = vadd.f32 %v3852_v29, %v1422_v45 }
 0x189   : > { %v3821_v33 = vpop.f32.mrf.mxu1  ;;  %v1650_v7 = vpop.f32.mrf.mxu0 }
 0x18a   : > { %v1425_v40 = vadd.f32 %v3821_v33, %v4731_v20  ;;  %v4833_v23 = vadd.f32 %v1637_v25, %v1420_v59 }
 0x18b   : > { %v1356_v62 = vpop.f32.mrf.mxu1  ;;  %v3856_v44 = vpop.f32.mrf.mxu0 }
 0x18c   : > { %5272 = vst [vmem:[#allocation3_spill] sm:$0xff] %v4833_v23  ;;  %v1423_v13 = vadd.f32 %v1356_v62, %v4734_v5  ;;  %v4836_v10 = vadd.f32 %v3855_v34, %v1425_v40 }
 0x18d   : > { %v3822_v16 = vpop.f32.mrf.mxu1  ;;  %v1653_v32 = vpop.f32.mrf.mxu0 }
 0x18e   : > { %5273 = vst [vmem:[#allocation4_spill] sm:$0xff] %v4836_v10  ;;  %v1426_v11 = vadd.f32 %v3822_v16, %v4741_v43  ;;  %v4839_v26 = vadd.f32 %v1650_v7, %v1423_v13 }
 0x18f   : > { %v1359_v48 = vpop.f32.mrf.mxu1  ;;  %v3859_v0 = vpop.f32.mrf.mxu0 }
 0x190   : > { %5274 = vst [vmem:[#allocation5_spill] sm:$0xff] %v4839_v26  ;;  %v1424_v12 = vadd.f32 %v1359_v48, %v4747_v22  ;;  %v4842_v9 = vadd.f32 %v3856_v44, %v1426_v11 }
 0x191   : > { %v3825_v20 = vpop.f32.mrf.mxu1  ;;  %v1666_v3 = vpop.f32.mrf.mxu0 }
 0x192   : > { %5275 = vst [vmem:[#allocation6_spill] sm:$0xff] %v4842_v9  ;;  %v1429_v54 = vadd.f32 %v3825_v20, %v4750_v49  ;;  %v4845_v46 = vadd.f32 %v1653_v32, %v1424_v12 }
 0x193   : > { %v1372_v5 = vpop.f32.mrf.mxu1  ;;  %v3860_v55 = vpop.f32.mrf.mxu0 }
 0x194   : > { %5276 = vst [vmem:[#allocation7_spill] sm:$0xff] %v4845_v46  ;;  %v1427_v28 = vadd.f32 %v1372_v5, %v4753_v8  ;;  %v4848_v58 = vadd.f32 %v3859_v0, %v1429_v54 }
 0x195   : > { %v3826_v43 = vpop.f32.mrf.mxu1  ;;  %v1669_v21 = vpop.f32.mrf.mxu0 }
 0x196   : > { %5277 = vst [vmem:[#allocation8_spill] sm:$0xff] %v4848_v58  ;;  %v1430_v19 = vadd.f32 %v3826_v43, %v4757_v27  ;;  %v4851_v57 = vadd.f32 %v1666_v3, %v1427_v28 }
 0x197   : > { %v1375_v22 = vpop.f32.mrf.mxu1  ;;  %v3863_v29 = vpop.f32.mrf.mxu0 }
 0x198   : > { %5278 = vst [vmem:[#allocation9_spill] sm:$0xff] %v4851_v57  ;;  %v1428_v41 = vadd.f32 %v1375_v22, %v4761_v30  ;;  %v4854_v52 = vadd.f32 %v3860_v55, %v1430_v19 }
 0x199   : > { %v3829_v49 = vpop.f32.mrf.mxu1  ;;  %v1682_v25 = vpop.f32.mrf.mxu0 }
 0x19a   : > { %5279 = vst [vmem:[#allocation10_spill] sm:$0xff] %v4854_v52  ;;  %v1433_v45 = vadd.f32 %v3829_v49, %v4764_v39  ;;  %v4857_v63 = vadd.f32 %v1669_v21, %v1428_v41 }
 0x19b   : > { %v1388_v8 = vpop.f32.mrf.mxu1  ;;  %v3864_v34 = vpop.f32.mrf.mxu0 }
 0x19c   : > { %5280 = vst [vmem:[#allocation11_spill] sm:$0xff] %v4857_v63  ;;  %v1431_v59 = vadd.f32 %v1388_v8, %v4767_v17  ;;  %v4860_v33 = vadd.f32 %v3863_v29, %v1433_v45 }
 0x19d   : > { %v3830_v27 = vpop.f32.mrf.mxu1  ;;  %v1685_v7 = vpop.f32.mrf.mxu0 }
 0x19e   : > { %5281 = vst [vmem:[#allocation12_spill] sm:$0xff] %v4860_v33  ;;  %v1434_v40 = vadd.f32 %v3830_v27, %v4770_v2  ;;  %v4863_v62 = vadd.f32 %v1682_v25, %v1431_v59 }
 0x19f   : > { %v1391_v30 = vpop.f32.mrf.mxu1  ;;  %v4865_v44 = vpop.f32.mrf.mxu0 }
 0x1a0   : > { %5282 = vst [vmem:[#allocation13_spill] sm:$0xff] %v4863_v62  ;;  %v1432_v13 = vadd.f32 %v1391_v30, %v4773_v18  ;;  %v4868_v39 = vadd.f32 %v3864_v34, %v1434_v40 }
 0x1a1   : > { %v3869_v16 = vpop.f32.mrf.mxu1  ;;  %v4870_v32 = vpop.f32.mrf.mxu0 }
 0x1a2   : > { %5283 = vst [vmem:[#allocation14_spill] sm:$0xff] %v4868_v39  ;;  %v4872_v11 = vadd.f32 %v1685_v7, %v1432_v13 }
 0x1a3   : > { %v1864_v17 = vpop.f32.mrf.mxu1  ;;  %v4874_v48 = vpop.f32.mrf.mxu0 }
 0x1a4   : > { %5284 = vst [vmem:[#allocation15_spill] sm:$0xff] %v4872_v11 }
 0x1a5   : > { %v3870_v0 = vpop.f32.mrf.mxu1  ;;  %v4876_v12 = vpop.f32.mrf.mxu0 }
 0x1a7   : > { %v1867_v2 = vpop.f32.mrf.mxu1  ;;  %v4878_v20 = vpop.f32.mrf.mxu0 }
 0x1a9   : > { %v3873_v3 = vpop.f32.mrf.mxu1  ;;  %v4880_v54 = vpop.f32.mrf.mxu0 }
 0x1ab   : > { %v1880_v18 = vpop.f32.mrf.mxu1  ;;  %v4882_v5 = vpop.f32.mrf.mxu0 }
 0x1ad   : > { %v3874_v55 = vpop.f32.mrf.mxu1  ;;  %v4884_v28 = vpop.f32.mrf.mxu0 }
 0x1af   : > { %v1883_v43 = vpop.f32.mrf.mxu1  ;;  %v4886_v21 = vpop.f32.mrf.mxu0 }
 0x1b1   : > { %v3877_v19 = vpop.f32.mrf.mxu1  ;;  %v4888_v22 = vpop.f32.mrf.mxu0 }
 0x1b3   : > { %v1896_v29 = vpop.f32.mrf.mxu1  ;;  %v4890_v41 = vpop.f32.mrf.mxu0 }
 0x1b5   : > { %v3878_v49 = vpop.f32.mrf.mxu1  ;;  %v4892_v25 = vpop.f32.mrf.mxu0 }
 0x1b7   : > { %v1899_v45 = vpop.f32.mrf.mxu1  ;;  %v4894_v8 = vpop.f32.mrf.mxu0 }
 0x1b9   : > { %v3881_v34 = vpop.f32.mrf.mxu1  ;;  %v4896_v59 = vpop.f32.mrf.mxu0 }
 0x1bb   : > { %v1912_v27 = vpop.f32.mrf.mxu1  ;;  %v4898_v7 = vpop.f32.mrf.mxu0 }
 0x1bd   : > { %v3882_v40 = vpop.f32.mrf.mxu1  ;;  %v4900_v30 = vpop.f32.mrf.mxu0 }
 0x1be   : > { %5285 = vst [vmem:[#allocation16_spill] sm:$0xff] %v4900_v30 }
 0x1bf   : > { %v1915_v13 = vpop.f32.mrf.mxu1  ;;  %v4902_v11 = vpop.f32.mrf.mxu0 }
 0x1c0   : > { %5286 = vst [vmem:[#allocation17_spill] sm:$0xff] %v4902_v11 }
 0x1c1   : > { %v3885_v39 = vpop.f32.mrf.mxu1  ;;  %v4904_v62 = vpop.f32.mrf.mxu0 }
 0x1c2   : > { %5287 = vst [vmem:[#allocation18_spill] sm:$0xff] %v4904_v62 }
 0x1c3   : > { %v1928_v33 = vpop.f32.mrf.mxu1  ;;  %v4906_v63 = vpop.f32.mrf.mxu0 }
 0x1c4   : > { %5288 = vst [vmem:[#allocation19_spill] sm:$0xff] %v4906_v63 }
 0x1c5   : > { %v3886_v52 = vpop.f32.mrf.mxu1  ;;  %v4908_v57 = vpop.f32.mrf.mxu0 }
 0x1c6   : > { %5289 = vst [vmem:[#allocation20_spill] sm:$0xff] %v4908_v57 }
 0x1c7   : > { %v4910_v58 = vpop.f32.mrf.mxu1  ;;  %v4912_v46 = vpop.f32.mrf.mxu0 }
 0x1c8   : > { %5290 = vst [vmem:[#allocation21_spill] sm:$0xff] %v4910_v58  ;;  %5291 = vst [vmem:[#allocation22_spill] sm:$0xff] %v4912_v46 }
 0x1c9   : > { %v4914_v9 = vpop.f32.mrf.mxu1  ;;  %v4916_v26 = vpop.f32.mrf.mxu0 }
 0x1ca   : > { %5292 = vst [vmem:[#allocation23_spill] sm:$0xff] %v4914_v9  ;;  %5293 = vst [vmem:[#allocation24_spill] sm:$0xff] %v4916_v26 }
 0x1cb   : > { %v4918_v10 = vpop.f32.mrf.mxu1  ;;  %v4920_v11 = vpop.f32.mrf.mxu0 }
 0x1cc   : > { %5294 = vst [vmem:[#allocation25_spill] sm:$0xff] %v4918_v10  ;;  %5295 = vst [vmem:[#allocation26_spill] sm:$0xff] %v4920_v11  ;;  %v1993_v11 = vadd.f32 %v3869_v16, %v4776_v61  ;;  %v1998_v61 = vadd.f32 %v3874_v55, %v4794_v36 }
 0x1cd   : > { %v4922_v23 = vpop.f32.mrf.mxu1  ;;  %v4924_v62 = vpop.f32.mrf.mxu0 }
 0x1ce   : > { %5296 = vst [vmem:[#allocation27_spill] sm:$0xff] %v4922_v23  ;;  %5297 = vst [vmem:[#allocation28_spill] sm:$0xff] %v4924_v62 }
 0x1cf   : > { %v4926_v63 = vpop.f32.mrf.mxu1  ;;  %v4928_v30 = vpop.f32.mrf.mxu0 }
 0x1d0   : > { %5298 = vst [vmem:[#allocation29_spill] sm:$0xff] %v4926_v63  ;;  %5299 = vst [vmem:[#allocation30_spill] sm:$0xff] %v4928_v30  ;;  %v1991_v30 = vadd.f32 %v1864_v17, %v4779_v37  ;;  %v2288_v37 = vadd.f32 %v4865_v44, %v1993_v11  ;;  %v2001_v17 = vadd.f32 %v3877_v19, %v4800_v51  ;;  %v5311_v19 = vld [vmem:[#allocation5_spill] sm:$0xff] }
 0x1d1   : > { %v4930_v57 = vpop.f32.mrf.mxu1  ;;  %v4932_v58 = vpop.f32.mrf.mxu0  ;;  %v2006_v51 = vadd.f32 %v3882_v40, %v4818_v14 }
 0x1d2   : > { %5300 = vst [vmem:[#allocation31_spill] sm:$0xff] %v4930_v57  ;;  %5301 = vst [vmem:[#allocation32_spill] sm:$0xff] %v4932_v58  ;;  %v1994_v57 = vadd.f32 %v3870_v0, %v4782_v35  ;;  %v1996_v35 = vadd.f32 %v1883_v43, %v4797_v47  ;;  %v1999_v0 = vadd.f32 %v1896_v29, %v4803_v4  ;;  %v5310_v43 = vld [vmem:[#allocation23_spill] sm:$0xff] }
 0x1d3   : > { %v4934_v46 = vpop.f32.mrf.mxu1  ;;  %v4936_v9 = vpop.f32.mrf.mxu0  ;;  %v2003_v47 = vadd.f32 %v1912_v27, %v4815_v42  ;;  %v2004_v4 = vadd.f32 %v1915_v13, %v4821_v15  ;;  %v4992_v14 = vadd.f32 %v4886_v21, %v2001_v17  ;;  %v5316_v27 = vld [vmem:[#allocation7_spill] sm:$0xff]  ;;  %v5320_v17 = vld [vmem:[#allocation9_spill] sm:$0xff] }
 0x1d4   : > { %5302 = vst [vmem:[#allocation33_spill] sm:$0xff] %v4936_v9  ;;  %v1992_v9 = vadd.f32 %v1867_v2, %v4785_v56  ;;  %v2002_v56 = vadd.f32 %v3878_v49, %v4806_v38  ;;  %v2289_v44 = vadd.f32 %v4874_v48, %v1994_v57  ;;  %v4986_v57 = vadd.f32 %v4882_v5, %v1998_v61  ;;  %v5306_v5 = vld [vmem:[#allocation16_spill] sm:$0xff] }
 0x1d5   : > { %v4938_v26 = vpop.f32.mrf.mxu1  ;;  %v4940_v10 = vpop.f32.mrf.mxu0  ;;  %v4989_v42 = vadd.f32 %v4884_v28, %v1996_v35  ;;  %v4995_v15 = vadd.f32 %v4888_v22, %v1999_v0  ;;  %v5015_v28 = vadd.f32 %v5306_v5, %v2004_v4  ;;  %v5312_v22 = vld [vmem:[#allocation25_spill] sm:$0xff]  ;;  %v5318_v61 = vld [vmem:[#allocation8_spill] sm:$0xff]  ;;  %v2015_v0 = vadd.f32 %v4934_v46, %v5320_v17 }
 0x1d6   : > { %5303 = vst [vmem:[#allocation34_spill] sm:$0xff] %v4938_v26  ;;  %5304 = vst [vmem:[#allocation35_spill] sm:$0xff] %v4940_v10  ;;  %v1997_v26 = vadd.f32 %v3873_v3, %v4788_v1  ;;  %v1995_v10 = vadd.f32 %v1880_v18, %v4791_v31  ;;  %v2000_v1 = vadd.f32 %v1899_v45, %v4809_v50 }
 0x1d7   : > { %v4943_v23 = vpop.f32.mrf.mxu1  ;;  %v4945_v62 = vpop.f32.mrf.mxu0  ;;  %v2005_v31 = vadd.f32 %v3881_v34, %v4812_v60  ;;  %v2286_v3 = vadd.f32 %v4870_v32, %v1991_v30  ;;  %v2287_v38 = vadd.f32 %v4876_v12, %v1992_v9  ;;  %v2009_v50 = vadd.f32 %v3885_v39, %v4824_v24  ;;  %v5315_v34 = vld [vmem:[#allocation27_spill] sm:$0xff]  ;;  %v5333_v17 = vld [vmem:[#allocation30_spill] sm:$0xff] }
 0x1d8   : > { %5305 = vst [vmem:[#allocation36_spill] sm:$0xff] %v4943_v23  ;;  %v2292_v18 = vadd.f32 %v4878_v20, %v1997_v26  ;;  %v4983_v55 = vadd.f32 %v4880_v54, %v1995_v10  ;;  %v4998_v24 = vadd.f32 %v4890_v41, %v2002_v56  ;;  %v2007_v26 = vadd.f32 %v1928_v33, %v4827_v6  ;;  %v5307_v6 = vld [vmem:[#allocation3_spill] sm:$0xff]  ;;  %v5309_v33 = vld [vmem:[#allocation4_spill] sm:$0xff] }
 0x1d9   : > { %v4949_v63 = vpop.f32.mrf.mxu1  ;;  %v4951_v58 = vpop.f32.mrf.mxu0  ;;  %v2010_v10 = vadd.f32 %v3886_v52, %v4830_v53  ;;  %v5003_v32 = vadd.f32 %v4892_v25, %v2000_v1  ;;  %v5006_v48 = vadd.f32 %v4894_v8, %v2005_v31  ;;  %v5009_v20 = vadd.f32 %v4896_v59, %v2003_v47  ;;  %v5308_v53 = vld [vmem:[#allocation21_spill] sm:$0xff]  ;;  %v5314_v8 = vld [vmem:[#allocation6_spill] sm:$0xff] }
 0x1da   : > { %v5012_v54 = vadd.f32 %v4898_v7, %v2006_v51  ;;  %v2008_v52 = vadd.f32 %v5308_v53, %v5307_v6  ;;  %v2013_v21 = vadd.f32 %v5310_v43, %v5309_v33  ;;  %v2011_v29 = vadd.f32 %v5312_v22, %v5311_v19  ;;  %v5313_v25 = vld [vmem:[#allocation17_spill] sm:$0xff]  ;;  %v5321_v31 = vld [vmem:[#allocation18_spill] sm:$0xff]  ;;  %v5322_v51 = vld [vmem:[#allocation19_spill] sm:$0xff] }
 0x1db   : > { %v4957_v16 = vpop.f32.mrf.mxu1  ;;  %v4959_v23 = vpop.f32.mrf.mxu0  ;;  %v5024_v45 = vadd.f32 %v5313_v25, %v2009_v50  ;;  %v2014_v59 = vadd.f32 %v5315_v34, %v5314_v8  ;;  %v5317_v7 = vld [vmem:[#allocation29_spill] sm:$0xff]  ;;  %v5035_v47 = vadd.f32 %v5321_v31, %v2007_v26  ;;  %v5038_v4 = vadd.f32 %v5322_v51, %v2010_v10  ;;  %v5323_v50 = vld [vmem:[#allocation10_spill] sm:$0xff]  ;;  %v5327_v33 = vld [vmem:[#allocation12_spill] sm:$0xff] }
 0x1dc   : > { %v2012_v40 = vadd.f32 %v5317_v7, %v5316_v27  ;;  %v2021_v43 = vadd.f32 %v4949_v63, %v5327_v33  ;;  %v5328_v26 = vld [vmem:[#allocation20_spill] sm:$0xff]  ;;  %v5329_v10 = vld [vmem:[#allocation22_spill] sm:$0xff] }
 0x1dd   : > { %v4968_v2 = vpop.f32.mrf.mxu1  ;;  %v4970_v36 = vpop.f32.mrf.mxu0  ;;  %v5050_v25 = vadd.f32 %v5329_v10, %v2013_v21  ;;  %v5330_v34 = vld [vmem:[#allocation24_spill] sm:$0xff]  ;;  %v5338_v33 = vld [vmem:[#allocation14_spill] sm:$0xff] }
 0x1de   : > { %v5055_v27 = vadd.f32 %v5330_v34, %v2011_v29  ;;  %v5332_v63 = vld [vmem:[#allocation28_spill] sm:$0xff] }
 0x1df   : > { %v4979_v60 = vpop.f32.mrf.mxu1  ;;  %v3971_v11 = vpop.f32.mrf.mxu0  ;;  %v5334_v21 = vld [vmem:[#allocation32_spill] sm:$0xff] }
 0x1e0   : > { %v5067_v31 = vadd.f32 %v5334_v21, %v2015_v0 }
 0x1e1   : > { %v3937_v9 = vpop.f32.mrf.mxu1  ;;  %v2747_v39 = vpop.f32.mrf.mxu0 }
 0x1e2   : > { %v2582_v12 = vadd.f32 %v3937_v9, %v2288_v37  ;;  %v5319_v37 = vld [vmem:[#allocation31_spill] sm:$0xff]  ;;  %v5324_v9 = vld [vmem:[#allocation34_spill] sm:$0xff] }
 0x1e3   : > { %v2453_v41 = vpop.f32.mrf.mxu1  ;;  %v3972_v49 = vpop.f32.mrf.mxu0  ;;  %v2017_v35 = vadd.f32 %v5319_v37, %v5318_v61  ;;  %v2018_v5 = vadd.f32 %v5324_v9, %v5323_v50 }
 0x1e4   : > { %v2876_v30 = vadd.f32 %v3971_v11, %v2582_v12  ;;  %v2580_v13 = vadd.f32 %v2453_v41, %v2286_v3  ;;  %v5325_v11 = vld [vmem:[#allocation11_spill] sm:$0xff]  ;;  %v5326_v3 = vld [vmem:[#allocation36_spill] sm:$0xff]  ;;  %v5047_v41 = vadd.f32 %v5328_v26, %v2008_v52 }
 0x1e5   : > { %v3938_v56 = vpop.f32.mrf.mxu1  ;;  %v2750_v1 = vpop.f32.mrf.mxu0  ;;  %v2016_v12 = vadd.f32 %v5326_v3, %v5325_v11 }
 0x1e6   : > { %v3512_v6 = vpack.c.bf16 %v2876_v30, %v2876_v30  ;;  %v2874_v53 = vadd.f32 %v2747_v39, %v2580_v13  ;;  %v2583_v46 = vadd.f32 %v3938_v56, %v2289_v44  ;;  %v5331_v39 = vld [vmem:[#allocation26_spill] sm:$0xff]  ;;  %v5061_v44 = vadd.f32 %v5332_v63, %v2012_v40  ;;  %v5336_v40 = vld [vmem:[#allocation35_spill] sm:$0xff] }
 0x1e7   : > { %v2456_v19 = vpop.f32.mrf.mxu1  ;;  %v3975_v22 = vpop.f32.mrf.mxu0  ;;  %v5058_v7 = vadd.f32 %v5331_v39, %v2014_v59  ;;  %v5064_v56 = vadd.f32 %v5333_v17, %v2017_v35  ;;  %v5335_v59 = vld [vmem:[#allocation33_spill] sm:$0xff]  ;;  %v5075_v9 = vadd.f32 %v5336_v40, %v2016_v12 }
 0x1e8   : > { %3037 = vst.msk [vmem:[%s4072_s25 + $0x8] sm:$0xf] %vm3034_vm5, %v3512_v6  ;;  %v3510_v8 = vpack.c.bf16 %v2874_v53, %v2874_v53  ;;  %v2877_v13 = vadd.f32 %v3972_v49, %v2583_v46  ;;  %v2581_v61 = vadd.f32 %v2456_v19, %v2287_v38  ;;  %v3142_v29 = vmul.f32 %v2874_v53, %v2874_v53  ;;  %v5337_v38 = vld [vmem:[#allocation13_spill] sm:$0xff] }
 0x1e9   : > { %v3941_v37 = vpop.f32.mrf.mxu1  ;;  %v2763_v52 = vpop.f32.mrf.mxu0  ;;  %v5072_v50 = vadd.f32 %v5335_v59, %v2018_v5  ;;  %v5079_v49 = vadd.f32 %v4957_v16, %v5337_v38  ;;  %v5082_v6 = vadd.f32 %v4945_v62, %v2021_v43  ;;  %v3144_v5 = vmul.f32 %v2876_v30, %v2876_v30 }
 0x1ea   : > { %3035 = vst.msk [vmem:[%s4072_s25] sm:$0xf] %vm3034_vm5, %v3510_v8  ;;  %v2586_v51 = vadd.f32 %v3941_v37, %v2292_v18  ;;  %v3513_v35 = vpack.c.bf16 %v2877_v13, %v2877_v13  ;;  %v2875_v11 = vadd.f32 %v2750_v1, %v2581_v61  ;;  %v5086_v18 = vadd.f32 %v4968_v2, %v5338_v33 }
 0x1eb   : > { %v2469_v3 = vpop.f32.mrf.mxu1  ;;  %v3976_v0 = vpop.f32.mrf.mxu0  ;;  %v3069_v19 = vsel %vm3068_vm6, %v2874_v53, 0.0  ;;  %v3072_v43 = vsel %vm3068_vm6, %v2876_v30, 0.0  ;;  %v3174_v2 = vsel %vm3068_vm6, %v3142_v29, 0.0  ;;  %v3177_v37 = vsel %vm3068_vm6, %v3144_v5, 0.0 }
 0x1ec   : > { %v2880_v46 = vadd.f32 %v3975_v22, %v2586_v51  ;;  %v2584_v12 = vadd.f32 %v2469_v3, %v4983_v55  ;;  %3038 = vst.msk [vmem:[%s4072_s25 + $0xc] sm:$0xf] %vm3034_vm5, %v3513_v35  ;;  %v3511_v16 = vpack.c.bf16 %v2875_v11, %v2875_v11  ;;  %v3070_v1 = vsel %vm3068_vm6, %v2875_v11, 0.0 }
 0x1ed   : > { %v3143_v26 = vmul.f32 %v2875_v11, %v2875_v11  ;;  %v3942_v10 = vpop.f32.mrf.mxu1  ;;  %v2766_v62 = vpop.f32.mrf.mxu0  ;;  %v3071_v8 = vadd.f32 %v3070_v1, %v3069_v19  ;;  %v3145_v22 = vmul.f32 %v2877_v13, %v2877_v13  ;;  %v3074_v29 = vsel %vm3068_vm6, %v2877_v13, 0.0 }
 0x1ee   : > { %v3516_v34 = vpack.c.bf16 %v2880_v46, %v2880_v46  ;;  %3036 = vst.msk [vmem:[%s4072_s25 + $0x4] sm:$0xf] %vm3034_vm5, %v3511_v16  ;;  %v2878_v53 = vadd.f32 %v2763_v52, %v2584_v12  ;;  %v2587_v39 = vadd.f32 %v3942_v10, %v4986_v57  ;;  %v3148_v5 = vmul.f32 %v2880_v46, %v2880_v46 }
 0x1ef   : > { %v3175_v55 = vsel %vm3068_vm6, %v3143_v26, 0.0  ;;  %v2472_v63 = vpop.f32.mrf.mxu1  ;;  %v3979_v61 = vpop.f32.mrf.mxu0  ;;  %v3073_v17 = vadd.f32 %v3072_v43, %v3071_v8  ;;  %v3179_v33 = vsel %vm3068_vm6, %v3145_v22, 0.0 }
 0x1f0   : > { %v3176_v21 = vadd.f32 %v3175_v55, %v3174_v2  ;;  %3041 = vst.msk [vmem:[%s4072_s25 + $0x18] sm:$0xf] %vm3034_vm5, %v3516_v34  ;;  %v2585_v30 = vadd.f32 %v2472_v63, %v4989_v42  ;;  %v3514_v51 = vpack.c.bf16 %v2878_v53, %v2878_v53  ;;  %v3146_v59 = vmul.f32 %v2878_v53, %v2878_v53 }
 0x1f1   : > { %v2881_v40 = vadd.f32 %v3976_v0, %v2587_v39  ;;  %v3945_v38 = vpop.f32.mrf.mxu1  ;;  %v2779_v52 = vpop.f32.mrf.mxu0  ;;  %v3075_v57 = vadd.f32 %v3074_v29, %v3073_v17  ;;  %v3076_v42 = vsel %vm3068_vm6, %v2878_v53, 0.0  ;;  %v5119_v53 = vadd.f32 %v4951_v58, %v5079_v49 }
 0x1f2   : > { %v3178_v35 = vadd.f32 %v3177_v37, %v3176_v21  ;;  %v2879_v11 = vadd.f32 %v2766_v62, %v2585_v30  ;;  %v2590_v3 = vadd.f32 %v3945_v38, %v4992_v14  ;;  %3039 = vst.msk [vmem:[%s4072_s25 + $0x10] sm:$0xf] %vm3034_vm5, %v3514_v51  ;;  %v3181_v10 = vsel %vm3068_vm6, %v3146_v59, 0.0  ;;  %v5339_v59 = vld [vmem:[#allocation15_spill] sm:$0xff] }
 0x1f3   : > { %v3517_v13 = vpack.c.bf16 %v2881_v40, %v2881_v40  ;;  %v2485_v12 = vpop.f32.mrf.mxu1  ;;  %v3980_v19 = vpop.f32.mrf.mxu0  ;;  %v3077_v0 = vadd.f32 %v3076_v42, %v3075_v57  ;;  %v3080_v39 = vsel %vm3068_vm6, %v2880_v46, 0.0  ;;  %v3149_v63 = vmul.f32 %v2881_v40, %v2881_v40 }
 0x1f4   : > { %v3180_v16 = vadd.f32 %v3179_v33, %v3178_v35  ;;  %v3515_v1 = vpack.c.bf16 %v2879_v11, %v2879_v11  ;;  %v3078_v26 = vsel %vm3068_vm6, %v2879_v11, 0.0  ;;  %v3147_v14 = vmul.f32 %v2879_v11, %v2879_v11 }
 0x1f5   : > { %3042 = vst.msk [vmem:[%s4072_s25 + $0x1c] sm:$0xf] %vm3034_vm5, %v3517_v13  ;;  %v2884_v62 = vadd.f32 %v3979_v61, %v2590_v3  ;;  %v2588_v43 = vadd.f32 %v2485_v12, %v4995_v15  ;;  %v3946_v2 = vpop.f32.mrf.mxu1  ;;  %v2782_v8 = vpop.f32.mrf.mxu0  ;;  %v3079_v22 = vadd.f32 %v3078_v26, %v3077_v0  ;;  %v2020_v38 = vadd.f32 %v4979_v60, %v5339_v59 }
 0x1f6   : > { %v3182_v34 = vadd.f32 %v3181_v10, %v3180_v16  ;;  %3040 = vst.msk [vmem:[%s4072_s25 + $0x14] sm:$0xf] %vm3034_vm5, %v3515_v1  ;;  %v2591_v55 = vadd.f32 %v3946_v2, %v4998_v24  ;;  %v3183_v61 = vsel %vm3068_vm6, %v3147_v14, 0.0  ;;  %v3185_v24 = vsel %vm3068_vm6, %v3148_v5, 0.0 }
 0x1f7   : > { %v3520_v37 = vpack.c.bf16 %v2884_v62, %v2884_v62  ;;  %v2488_v15 = vpop.f32.mrf.mxu1  ;;  %v3983_v17 = vpop.f32.mrf.mxu0  ;;  %v3081_v21 = vadd.f32 %v3080_v39, %v3079_v22  ;;  %v2882_v29 = vadd.f32 %v2779_v52, %v2588_v43  ;;  %v3082_v58 = vsel %vm3068_vm6, %v2881_v40, 0.0 }
 0x1f8   : > { %v3184_v30 = vadd.f32 %v3183_v61, %v3182_v34  ;;  %v2885_v51 = vadd.f32 %v3980_v19, %v2591_v55  ;;  %v2589_v49 = vadd.f32 %v2488_v15, %v5003_v32  ;;  %v5132_v52 = vadd.f32 %v4959_v23, %v5086_v18 }
 0x1f9   : > { %3045 = vst.msk [vmem:[%s4072_s25 + $0x28] sm:$0xf] %vm3034_vm5, %v3520_v37  ;;  %v3949_v46 = vpop.f32.mrf.mxu1  ;;  %v2795_v35 = vpop.f32.mrf.mxu0  ;;  %v3518_v11 = vpack.c.bf16 %v2882_v29, %v2882_v29  ;;  %v3083_v3 = vadd.f32 %v3082_v58, %v3081_v21  ;;  %v3187_v60 = vsel %vm3068_vm6, %v3149_v63, 0.0  ;;  %v3084_v33 = vsel %vm3068_vm6, %v2882_v29, 0.0 }
 0x1fa   : > { %v3186_v57 = vadd.f32 %v3185_v24, %v3184_v30  ;;  %v3150_v5 = vmul.f32 %v2882_v29, %v2882_v29  ;;  %v3521_v40 = vpack.c.bf16 %v2885_v51, %v2885_v51  ;;  %v2883_v19 = vadd.f32 %v2782_v8, %v2589_v49 }
 0x1fb   : > { %v2501_v42 = vpop.f32.mrf.mxu1  ;;  %v3984_v13 = vpop.f32.mrf.mxu0  ;;  %3043 = vst.msk [vmem:[%s4072_s25 + $0x20] sm:$0xf] %vm3034_vm5, %v3518_v11  ;;  %v3085_v32 = vadd.f32 %v3084_v33, %v3083_v3  ;;  %v2594_v0 = vadd.f32 %v3949_v46, %v5006_v48  ;;  %v3152_v16 = vmul.f32 %v2884_v62, %v2884_v62  ;;  %v3153_v23 = vmul.f32 %v2885_v51, %v2885_v51 }
 0x1fc   : > { %v3188_v12 = vadd.f32 %v3187_v60, %v3186_v57  ;;  %v3189_v1 = vsel %vm3068_vm6, %v3150_v5, 0.0  ;;  %3046 = vst.msk [vmem:[%s4072_s25 + $0x2c] sm:$0xf] %vm3034_vm5, %v3521_v40  ;;  %v2592_v18 = vadd.f32 %v2501_v42, %v5009_v20  ;;  %v3519_v43 = vpack.c.bf16 %v2883_v19, %v2883_v19 }
 0x1fd   : > { %v3950_v26 = vpop.f32.mrf.mxu1  ;;  %v2798_v10 = vpop.f32.mrf.mxu0  ;;  %v3086_v2 = vsel %vm3068_vm6, %v2883_v19, 0.0  ;;  %v3151_v34 = vmul.f32 %v2883_v19, %v2883_v19  ;;  %v2888_v8 = vadd.f32 %v3983_v17, %v2594_v0  ;;  %v3088_v61 = vsel %vm3068_vm6, %v2884_v62, 0.0 }
 0x1fe   : > { %v3190_v14 = vadd.f32 %v3189_v1, %v3188_v12  ;;  %v3087_v22 = vadd.f32 %v3086_v2, %v3085_v32  ;;  %v2886_v55 = vadd.f32 %v2795_v35, %v2592_v18  ;;  %v2595_v48 = vadd.f32 %v3950_v26, %v5012_v54  ;;  %3044 = vst.msk [vmem:[%s4072_s25 + $0x24] sm:$0xf] %vm3034_vm5, %v3519_v43 }
 0x1ff   : > { %v2504_v39 = vpop.f32.mrf.mxu1  ;;  %v3987_v63 = vpop.f32.mrf.mxu0  ;;  %v3191_v20 = vsel %vm3068_vm6, %v3151_v34, 0.0  ;;  %v5151_v15 = vadd.f32 %v4970_v36, %v2020_v38  ;;  %v3193_v21 = vsel %vm3068_vm6, %v3152_v16, 0.0  ;;  %v3524_v54 = vpack.c.bf16 %v2888_v8, %v2888_v8 }
 0x200   : > { %v2593_v37 = vadd.f32 %v2504_v39, %v5015_v28  ;;  %v3089_v17 = vadd.f32 %v3088_v61, %v3087_v22  ;;  %v3192_v30 = vadd.f32 %v3191_v20, %v3190_v14  ;;  %v3090_v62 = vsel %vm3068_vm6, %v2885_v51, 0.0 }
 0x201   : > { %v3953_v29 = vpop.f32.mrf.mxu1  ;;  %v2811_v59 = vpop.f32.mrf.mxu0  ;;  %v3195_v24 = vsel %vm3068_vm6, %v3153_v23, 0.0  ;;  %v3522_v58 = vpack.c.bf16 %v2886_v55, %v2886_v55  ;;  %v3154_v49 = vmul.f32 %v2886_v55, %v2886_v55  ;;  %3049 = vst.msk [vmem:[%s4072_s25 + $0x38] sm:$0xf] %vm3034_vm5, %v3524_v54  ;;  %v2889_v36 = vadd.f32 %v3984_v13, %v2595_v48 }
 0x202   : > { %v3194_v46 = vadd.f32 %v3193_v21, %v3192_v30  ;;  %v3091_v28 = vadd.f32 %v3090_v62, %v3089_v17  ;;  %v2887_v38 = vadd.f32 %v2798_v10, %v2593_v37  ;;  %v3156_v11 = vmul.f32 %v2888_v8, %v2888_v8 }
 0x203   : > { %v2517_v35 = vpop.f32.mrf.mxu1  ;;  %v3988_v57 = vpop.f32.mrf.mxu0  ;;  %3047 = vst.msk [vmem:[%s4072_s25 + $0x30] sm:$0xf] %vm3034_vm5, %v3522_v58  ;;  %v3092_v3 = vsel %vm3068_vm6, %v2886_v55, 0.0  ;;  %v2598_v51 = vadd.f32 %v3953_v29, %v5024_v45  ;;  %v3197_v40 = vsel %vm3068_vm6, %v3154_v49, 0.0  ;;  %v3525_v42 = vpack.c.bf16 %v2889_v36, %v2889_v36 }
 0x204   : > { %v2596_v60 = vadd.f32 %v2517_v35, %v5035_v47  ;;  %v3093_v33 = vadd.f32 %v3092_v3, %v3091_v28  ;;  %v3196_v5 = vadd.f32 %v3195_v24, %v3194_v46  ;;  %v3157_v12 = vmul.f32 %v2889_v36, %v2889_v36 }
 0x205   : > { %v3954_v13 = vpop.f32.mrf.mxu1  ;;  %v2814_v32 = vpop.f32.mrf.mxu0  ;;  %v3523_v19 = vpack.c.bf16 %v2887_v38, %v2887_v38  ;;  %v3094_v0 = vsel %vm3068_vm6, %v2887_v38, 0.0  ;;  %v3155_v16 = vmul.f32 %v2887_v38, %v2887_v38  ;;  %3050 = vst.msk [vmem:[%s4072_s25 + $0x3c] sm:$0xf] %vm3034_vm5, %v3525_v42  ;;  %v2892_v45 = vadd.f32 %v3987_v63, %v2598_v51 }
 0x206   : > { %v3198_v1 = vadd.f32 %v3197_v40, %v3196_v5  ;;  %v3095_v23 = vadd.f32 %v3094_v0, %v3093_v33  ;;  %v2890_v18 = vadd.f32 %v2811_v59, %v2596_v60  ;;  %v3096_v10 = vsel %vm3068_vm6, %v2888_v8, 0.0 }
 0x207   : > { %v2520_v47 = vpop.f32.mrf.mxu1  ;;  %v3991_v26 = vpop.f32.mrf.mxu0  ;;  %3048 = vst.msk [vmem:[%s4072_s25 + $0x34] sm:$0xf] %vm3034_vm5, %v3523_v19  ;;  %v3199_v14 = vsel %vm3068_vm6, %v3155_v16, 0.0  ;;  %v2599_v43 = vadd.f32 %v3954_v13, %v5038_v4  ;;  %v3201_v34 = vsel %vm3068_vm6, %v3156_v11, 0.0  ;;  %v3528_v48 = vpack.c.bf16 %v2892_v45, %v2892_v45 }
 0x208   : > { %v2597_v2 = vadd.f32 %v2520_v47, %v5047_v41  ;;  %v3097_v22 = vadd.f32 %v3096_v10, %v3095_v23  ;;  %v3200_v55 = vadd.f32 %v3199_v14, %v3198_v1  ;;  %v3098_v61 = vsel %vm3068_vm6, %v2889_v36, 0.0 }
 0x209   : > { %v3957_v39 = vpop.f32.mrf.mxu1  ;;  %v2827_v63 = vpop.f32.mrf.mxu0  ;;  %v3203_v8 = vsel %vm3068_vm6, %v3157_v12, 0.0  ;;  %v3526_v20 = vpack.c.bf16 %v2890_v18, %v2890_v18  ;;  %v3158_v37 = vmul.f32 %v2890_v18, %v2890_v18  ;;  %3053 = vst.msk [vmem:[%s4072_s25 + $0x48] sm:$0xf] %vm3034_vm5, %v3528_v48  ;;  %v2893_v17 = vadd.f32 %v3988_v57, %v2599_v43 }
 0x20a   : > { %v3202_v21 = vadd.f32 %v3201_v34, %v3200_v55  ;;  %v3099_v4 = vadd.f32 %v3098_v61, %v3097_v22  ;;  %v2891_v41 = vadd.f32 %v2814_v32, %v2597_v2  ;;  %v3160_v29 = vmul.f32 %v2892_v45, %v2892_v45 }
 0x20b   : > { %v2533_v30 = vpop.f32.mrf.mxu1  ;;  %v3992_v54 = vpop.f32.mrf.mxu0  ;;  %3051 = vst.msk [vmem:[%s4072_s25 + $0x40] sm:$0xf] %vm3034_vm5, %v3526_v20  ;;  %v3100_v59 = vsel %vm3068_vm6, %v2890_v18, 0.0  ;;  %v2602_v62 = vadd.f32 %v3957_v39, %v5050_v25  ;;  %v3205_v46 = vsel %vm3068_vm6, %v3158_v37, 0.0  ;;  %v3529_v28 = vpack.c.bf16 %v2893_v17, %v2893_v17 }
 0x20c   : > { %v2600_v24 = vadd.f32 %v2533_v30, %v5055_v27  ;;  %v3101_v58 = vadd.f32 %v3100_v59, %v3099_v4  ;;  %v3204_v49 = vadd.f32 %v3203_v8, %v3202_v21  ;;  %v3161_v35 = vmul.f32 %v2893_v17, %v2893_v17 }
 0x20d   : > { %v3958_v36 = vpop.f32.mrf.mxu1  ;;  %v2830_v38 = vpop.f32.mrf.mxu0  ;;  %v3527_v57 = vpack.c.bf16 %v2891_v41, %v2891_v41  ;;  %v3102_v11 = vsel %vm3068_vm6, %v2891_v41, 0.0  ;;  %v3159_v3 = vmul.f32 %v2891_v41, %v2891_v41  ;;  %3054 = vst.msk [vmem:[%s4072_s25 + $0x4c] sm:$0xf] %vm3034_vm5, %v3529_v28  ;;  %v2896_v25 = vadd.f32 %v3991_v26, %v2602_v62 }
 0x20e   : > { %v3206_v51 = vadd.f32 %v3205_v46, %v3204_v49  ;;  %v3103_v60 = vadd.f32 %v3102_v11, %v3101_v58  ;;  %v2894_v33 = vadd.f32 %v2827_v63, %v2600_v24  ;;  %v3104_v40 = vsel %vm3068_vm6, %v2892_v45, 0.0 }
 0x20f   : > { %v2536_v27 = vpop.f32.mrf.mxu1  ;;  %v3995_v5 = vpop.f32.mrf.mxu0  ;;  %3052 = vst.msk [vmem:[%s4072_s25 + $0x44] sm:$0xf] %vm3034_vm5, %v3527_v57  ;;  %v3207_v42 = vsel %vm3068_vm6, %v3159_v3, 0.0  ;;  %v2603_v13 = vadd.f32 %v3958_v36, %v5058_v7  ;;  %v3209_v12 = vsel %vm3068_vm6, %v3160_v29, 0.0  ;;  %v3532_v16 = vpack.c.bf16 %v2896_v25, %v2896_v25 }
 0x210   : > { %v2601_v32 = vadd.f32 %v2536_v27, %v5061_v44  ;;  %v3105_v19 = vadd.f32 %v3104_v40, %v3103_v60  ;;  %v3208_v0 = vadd.f32 %v3207_v42, %v3206_v51  ;;  %v3106_v18 = vsel %vm3068_vm6, %v2893_v17, 0.0 }
 0x211   : > { %v3961_v1 = vpop.f32.mrf.mxu1  ;;  %v2843_v23 = vpop.f32.mrf.mxu0  ;;  %v3211_v45 = vsel %vm3068_vm6, %v3161_v35, 0.0  ;;  %v3530_v47 = vpack.c.bf16 %v2894_v33, %v2894_v33  ;;  %v3162_v26 = vmul.f32 %v2894_v33, %v2894_v33  ;;  %3057 = vst.msk [vmem:[%s4072_s25 + $0x58] sm:$0xf] %vm3034_vm5, %v3532_v16  ;;  %v2897_v14 = vadd.f32 %v3992_v54, %v2603_v13 }
 0x212   : > { %v3210_v10 = vadd.f32 %v3209_v12, %v3208_v0  ;;  %v3107_v7 = vadd.f32 %v3106_v18, %v3105_v19  ;;  %v2895_v44 = vadd.f32 %v2830_v38, %v2601_v32  ;;  %v3164_v34 = vmul.f32 %v2896_v25, %v2896_v25 }
 0x213   : > { %v2549_v43 = vpop.f32.mrf.mxu1  ;;  %v3996_v2 = vpop.f32.mrf.mxu0  ;;  %3055 = vst.msk [vmem:[%s4072_s25 + $0x50] sm:$0xf] %vm3034_vm5, %v3530_v47  ;;  %v3108_v22 = vsel %vm3068_vm6, %v2894_v33, 0.0  ;;  %v2606_v55 = vadd.f32 %v3961_v1, %v5064_v56  ;;  %v3213_v61 = vsel %vm3068_vm6, %v3162_v26, 0.0  ;;  %v3533_v8 = vpack.c.bf16 %v2897_v14, %v2897_v14 }
 0x214   : > { %v2604_v48 = vadd.f32 %v2549_v43, %v5067_v31  ;;  %v3109_v39 = vadd.f32 %v3108_v22, %v3107_v7  ;;  %v3212_v63 = vadd.f32 %v3211_v45, %v3210_v10  ;;  %v3165_v21 = vmul.f32 %v2897_v14, %v2897_v14 }
 0x215   : > { %v3962_v20 = vpop.f32.mrf.mxu1  ;;  %v2846_v37 = vpop.f32.mrf.mxu0  ;;  %v3531_v4 = vpack.c.bf16 %v2895_v44, %v2895_v44  ;;  %v3110_v17 = vsel %vm3068_vm6, %v2895_v44, 0.0  ;;  %v3163_v41 = vmul.f32 %v2895_v44, %v2895_v44  ;;  %3058 = vst.msk [vmem:[%s4072_s25 + $0x5c] sm:$0xf] %vm3034_vm5, %v3533_v8  ;;  %v2900_v56 = vadd.f32 %v3995_v5, %v2606_v55 }
 0x216   : > { %v3214_v30 = vadd.f32 %v3213_v61, %v3212_v63  ;;  %v3111_v54 = vadd.f32 %v3110_v17, %v3109_v39  ;;  %v2898_v29 = vadd.f32 %v2843_v23, %v2604_v48  ;;  %v3112_v62 = vsel %vm3068_vm6, %v2896_v25, 0.0 }
 0x217   : > { %v2552_v31 = vpop.f32.mrf.mxu1  ;;  %v3999_v59 = vpop.f32.mrf.mxu0  ;;  %3056 = vst.msk [vmem:[%s4072_s25 + $0x54] sm:$0xf] %vm3034_vm5, %v3531_v4  ;;  %v3215_v24 = vsel %vm3068_vm6, %v3163_v41, 0.0  ;;  %v2607_v58 = vadd.f32 %v3962_v20, %v5072_v50  ;;  %v3217_v46 = vsel %vm3068_vm6, %v3164_v34, 0.0  ;;  %v3536_v38 = vpack.c.bf16 %v2900_v56, %v2900_v56 }
 0x218   : > { %v2605_v49 = vadd.f32 %v2552_v31, %v5075_v9  ;;  %v3113_v28 = vadd.f32 %v3112_v62, %v3111_v54  ;;  %v3216_v36 = vadd.f32 %v3215_v24, %v3214_v30  ;;  %v3114_v57 = vsel %vm3068_vm6, %v2897_v14, 0.0 }
 0x219   : > { %v3965_v35 = vpop.f32.mrf.mxu1  ;;  %v3219_v11 = vsel %vm3068_vm6, %v3165_v21, 0.0  ;;  %v3534_v3 = vpack.c.bf16 %v2898_v29, %v2898_v29  ;;  %v3166_v51 = vmul.f32 %v2898_v29, %v2898_v29  ;;  %v2859_v60 = vpop.f32.mrf.mxu0  ;;  %3061 = vst.msk [vmem:[%s4072_s25 + $0x68] sm:$0xf] %vm3034_vm5, %v3536_v38  ;;  %v2901_v33 = vadd.f32 %v3996_v2, %v2607_v58 }
 0x21a   : > { %v3218_v25 = vadd.f32 %v3217_v46, %v3216_v36  ;;  %v3115_v50 = vadd.f32 %v3114_v57, %v3113_v28  ;;  %v2899_v9 = vadd.f32 %v2846_v37, %v2605_v49  ;;  %v3120_v5 = vsel %vm3068_vm6, %v2900_v56, 0.0 }
 0x21b   : > { %v2565_v27 = vpop.f32.mrf.mxu1  ;;  %3059 = vst.msk [vmem:[%s4072_s25 + $0x60] sm:$0xf] %vm3034_vm5, %v3534_v3  ;;  %v3116_v40 = vsel %vm3068_vm6, %v2898_v29, 0.0  ;;  %v2610_v42 = vadd.f32 %v3965_v35, %v5082_v6  ;;  %v3168_v32 = vmul.f32 %v2900_v56, %v2900_v56  ;;  %v3537_v0 = vpack.c.bf16 %v2901_v33, %v2901_v33  ;;  %v4000_v47 = vpop.f32.mrf.mxu0 }
 0x21c   : > { %v2608_v13 = vadd.f32 %v2565_v27, %v5119_v53  ;;  %v3117_v12 = vadd.f32 %v3116_v40, %v3115_v50  ;;  %v3220_v19 = vadd.f32 %v3219_v11, %v3218_v25  ;;  %v3221_v1 = vsel %vm3068_vm6, %v3166_v51, 0.0 }
 0x21d   : > { %v3966_v16 = vpop.f32.mrf.mxu1  ;;  %v3535_v23 = vpack.c.bf16 %v2899_v9, %v2899_v9  ;;  %v3118_v18 = vsel %vm3068_vm6, %v2899_v9, 0.0  ;;  %v3167_v45 = vmul.f32 %v2899_v9, %v2899_v9  ;;  %3062 = vst.msk [vmem:[%s4072_s25 + $0x6c] sm:$0xf] %vm3034_vm5, %v3537_v0  ;;  %v2904_v6 = vadd.f32 %v3999_v59, %v2610_v42  ;;  %v2862_v8 = vpop.f32.mrf.mxu0 }
 0x21e   : > { %v3222_v26 = vadd.f32 %v3221_v1, %v3220_v19  ;;  %v3119_v10 = vadd.f32 %v3118_v18, %v3117_v12  ;;  %v2902_v7 = vadd.f32 %v2859_v60, %v2608_v13  ;;  %v3169_v14 = vmul.f32 %v2901_v33, %v2901_v33  ;;  %v3067_v13 = vld [vmem:[%s5270_s3] sm:$0x1] }
 0x21f   : > { %v2568_v53 = vpop.f32.mrf.mxu1  ;;  %3060 = vst.msk [vmem:[%s4072_s25 + $0x64] sm:$0xf] %vm3034_vm5, %v3535_v23  ;;  %v3223_v44 = vsel %vm3068_vm6, %v3167_v45, 0.0  ;;  %v2611_v43 = vadd.f32 %v3966_v16, %v5132_v52  ;;  %v3540_v55 = vpack.c.bf16 %v2904_v6, %v2904_v6  ;;  %v3225_v48 = vsel %vm3068_vm6, %v3168_v32, 0.0  ;;  %v3141_v19 = vld [vmem:[%s5271_s4] sm:$0x1] }
 0x220   : > { %v2609_v2 = vadd.f32 %v2568_v53, %v5151_v15  ;;  %v3121_v34 = vadd.f32 %v3120_v5, %v3119_v10  ;;  %v3224_v22 = vadd.f32 %v3223_v44, %v3222_v26  ;;  %v3122_v39 = vsel %vm3068_vm6, %v2901_v33, 0.0 }
 0x221   : > { %v3538_v63 = vpack.c.bf16 %v2902_v7, %v2902_v7  ;;  %v3170_v61 = vmul.f32 %v2902_v7, %v2902_v7  ;;  %3065 = vst.msk [vmem:[%s4072_s25 + $0x78] sm:$0xf] %vm3034_vm5, %v3540_v55  ;;  %v2905_v21 = vadd.f32 %v4000_v47, %v2611_v43  ;;  %v3227_v4 = vsel %vm3068_vm6, %v3169_v14, 0.0 }
 0x222   : > { %v3226_v20 = vadd.f32 %v3225_v48, %v3224_v22  ;;  %v3123_v37 = vadd.f32 %v3122_v39, %v3121_v34  ;;  %v2903_v52 = vadd.f32 %v2862_v8, %v2609_v2  ;;  %v3124_v15 = vsel %vm3068_vm6, %v2902_v7, 0.0 }
 0x223   : > { %3063 = vst.msk [vmem:[%s4072_s25 + $0x70] sm:$0xf] %vm3034_vm5, %v3538_v63  ;;  %v3172_v17 = vmul.f32 %v2904_v6, %v2904_v6  ;;  %v3541_v54 = vpack.c.bf16 %v2905_v21, %v2905_v21  ;;  %v3229_v56 = vsel %vm3068_vm6, %v3170_v61, 0.0  ;;  %v3128_v58 = vsel %vm3068_vm6, %v2904_v6, 0.0 }
 0x224   : > { %v3125_v41 = vadd.f32 %v3124_v15, %v3123_v37  ;;  %v3228_v30 = vadd.f32 %v3227_v4, %v3226_v20  ;;  %v3539_v29 = vpack.c.bf16 %v2903_v52, %v2903_v52  ;;  %v3126_v31 = vsel %vm3068_vm6, %v2903_v52, 0.0 }
 0x225   : > { %v3171_v59 = vmul.f32 %v2903_v52, %v2903_v52  ;;  %3066 = vst.msk [vmem:[%s4072_s25 + $0x7c] sm:$0xf] %vm3034_vm5, %v3541_v54  ;;  %v3173_v49 = vmul.f32 %v2905_v21, %v2905_v21  ;;  %v3233_v38 = vsel %vm3068_vm6, %v3172_v17, 0.0  ;;  %v3130_v35 = vsel %vm3068_vm6, %v2905_v21, 0.0 }
 0x226   : > { %v3230_v62 = vadd.f32 %v3229_v56, %v3228_v30  ;;  %v3127_v24 = vadd.f32 %v3126_v31, %v3125_v41  ;;  %3064 = vst.msk [vmem:[%s4072_s25 + $0x74] sm:$0xf] %vm3034_vm5, %v3539_v29 }
 0x227   : > { %v3231_v46 = vsel %vm3068_vm6, %v3171_v59, 0.0  ;;  %v3235_v3 = vsel %vm3068_vm6, %v3173_v49, 0.0 }
 0x228   : > { %v3129_v28 = vadd.f32 %v3128_v58, %v3127_v24  ;;  %v3232_v36 = vadd.f32 %v3231_v46, %v3230_v62 }
 0x22a   : > { %v3131_v57 = vadd.f32 %v3130_v35, %v3129_v28  ;;  %v3234_v11 = vadd.f32 %v3233_v38, %v3232_v36 }
 0x22c   : > { %v3132_v51 = vrot.slane %v3131_v57, 4  ;;  %v3236_v60 = vadd.f32 %v3235_v3, %v3234_v11 }
 0x22e   : > { %v3133_v25 = vadd.f32 %v3132_v51, %v3131_v57  ;;  %v3237_v50 = vrot.slane %v3236_v60, 4 }
 0x230   : > { %v3134_v33 = vrot.slane %v3133_v25, 2  ;;  %v3238_v9 = vadd.f32 %v3237_v50, %v3236_v60 }
 0x232   : > { %v3135_v27 = vadd.f32 %v3134_v33, %v3133_v25  ;;  %v3239_v5 = vrot.slane %v3238_v9, 2 }
 0x234   : > { %v3136_v40 = vrot.slane %v3135_v27, 1  ;;  %v3240_v42 = vadd.f32 %v3239_v5, %v3238_v9 }
 0x236   : > { %v3137_v32 = vadd.f32 %v3136_v40, %v3135_v27  ;;  %v3241_v12 = vrot.slane %v3240_v42, 1 }
 0x238   : > { %v3138_v0 = vadd.f32 %v3137_v32, %v3067_v13  ;;  %v3242_v16 = vadd.f32 %v3241_v12, %v3240_v42 }
 0x23a   : > { %3140 = vst.msk [vmem:[%s5270_s3] sm:$0x1] %vm3139_vm7, %v3138_v0  ;;  %v3243_v1 = vadd.f32 %v3242_v16, %v3141_v19 }
 0x23c   : > { %3244 = vst.msk [vmem:[%s5271_s4] sm:$0x1] %vm3139_vm7, %v3243_v1 }
 0x23d PF: > { %s15_s15 = sadd.s32 1, %s4028_s15  }
 0x23e   : > { %p12_p5 = scmp.ge.s32.totalorder %s15_s15, 4  }
 0x240   :  { %14 = sbr.rel (!%p12_p5) target bundleno = 1 (0x1), region = 88 }

// kernel: _double_conv.4
= control target key start
LH: loop header
LB: loop body
LE: loop exit
PB: predicated region body
PF: predicated region fallthrough
CT: control target
= control target key end

     0   :  { %s4455_s27 = smov 0   ;;  %s5851_s0 = inlined_call_operand.vmem [shape: bf16[2,256,8], index: 0, kind: input, shape index: {}]   ;;  %s5852_s1 = inlined_call_operand.vmem [shape: f32[1,8], index: 1, kind: input, shape index: {}]   ;;  %s5853_s2 = inlined_call_operand.vmem [shape: f32[1,8], index: 2, kind: input, shape index: {}]   ;;  %s5854_s3 = inlined_call_operand.vmem [shape: f32[1,8], index: 3, kind: input, shape index: {}]   ;;  %s5855_s4 = inlined_call_operand.vmem [shape: f32[1,8], index: 4, kind: input, shape index: {}]   ;;  %s5856_s5 = inlined_call_operand.vmem [shape: bf16[9,8,8], index: 5, kind: input, shape index: {}]   ;;  %s5857_s6 = inlined_call_operand.vmem [shape: bf16[2,256,8], index: 6, kind: output, shape index: {0}]   ;;  %s5858_s7 = inlined_call_operand.vmem [shape: f32[1,8], index: 7, kind: output, shape index: {1}]   ;;  %s5859_s8 = inlined_call_operand.vmem [shape: f32[1,8], index: 8, kind: output, shape index: {2}]  }
   0x1 LB: > { %s3609_s28 = sadd.s32 4294967295, %s4407_s27   ;;  %p3613_p0 = scmp.ge.s32.totalorder %s4407_s27, 1  ;;  %s4407_s27 = sphi %s4455_s27, %s19_s27  }
   0x2   : > { %p257_p1 = scmp.lt.s32.totalorder %s4407_s27, 3 }
   0x4   : > { %p258_p2 = pnand %p3613_p0, %p257_p1 }
   0x6   : > { %261 = sbr.rel (%p258_p2) target bundleno = 605 (0x25d), region = 44 }
   0xb   : > { %p291_p3 = scmp.lt.s32.totalorder %s3609_s28, 1  ;;  %p3618_p4 = scmp.ne.s32.totalorder %s3609_s28, 0 }
   0xd   : > { %s292_s29 = scalar_select %p291_p3, %s3609_s28, 1 }
   0xe   : > { %305 = sbr.rel (%p3618_p4) target bundleno = 48 (0x30), region = 48 }
   0xf   : > { %s3806_s30 = sshll.u32 %s292_s29, 7 }
  0x10   : > { %s4466_s11 = scalar_lea.vmem %s5851_s0, %s3806_s30  ;;  %s4471_s14 = scalar_lea.vmem %s5857_s6, %s3806_s30 }
  0x13   : > { %vm306_vm0 = vcmask 64512   ;;  %vm309_vm1 = vcmask 58368   ;;  %vm362_vm2 = vcmask 57344   ;;  %v4409_v0 = vmov 0.0  }
  0x14   : > { %307 = vst.msk [vmem:[#allocation2] sm:$0xff] %vm306_vm0, %v4409_v0  ;;  %308 = vst.msk [vmem:[#allocation2 + $0x8] sm:$0xff] %vm306_vm0, %v4409_v0 }
  0x15   : > { %311 = vst.msk [vmem:[#allocation2 + $0x18] sm:$0xff] %vm306_vm0, %v4409_v0  ;;  %312 = vst.msk [vmem:[#allocation2 + $0x20] sm:$0xff] %vm306_vm0, %v4409_v0 }
  0x16   : > { %314 = vst.msk [vmem:[#allocation2 + $0x30] sm:$0xff] %vm306_vm0, %v4409_v0  ;;  %315 = vst.msk [vmem:[#allocation2 + $0x38] sm:$0xff] %vm306_vm0, %v4409_v0 }
  0x17   : > { %317 = vst.msk [vmem:[#allocation2 + $0x48] sm:$0xff] %vm306_vm0, %v4409_v0  ;;  %318 = vst.msk [vmem:[#allocation2 + $0x50] sm:$0xff] %vm306_vm0, %v4409_v0 }
  0x18   : > { %320 = vst.msk [vmem:[#allocation2 + $0x60] sm:$0xff] %vm306_vm0, %v4409_v0  ;;  %321 = vst.msk [vmem:[#allocation2 + $0x68] sm:$0xff] %vm306_vm0, %v4409_v0 }
  0x19   : > { %323 = vst.msk [vmem:[#allocation2 + $0x78] sm:$0xff] %vm306_vm0, %v4409_v0  ;;  %324 = vst.msk [vmem:[#allocation2 + $0x80] sm:$0xff] %vm306_vm0, %v4409_v0 }
  0x1a   : > { %326 = vst.msk [vmem:[#allocation2 + $0x90] sm:$0xff] %vm306_vm0, %v4409_v0  ;;  %327 = vst.msk [vmem:[#allocation2 + $0x98] sm:$0xff] %vm306_vm0, %v4409_v0 }
  0x1b   : > { %329 = vst.msk [vmem:[#allocation2 + $0xa8] sm:$0xff] %vm306_vm0, %v4409_v0  ;;  %330 = vst.msk [vmem:[#allocation2 + $0xb0] sm:$0xff] %vm306_vm0, %v4409_v0 }
  0x1c   : > { %332 = vst.msk [vmem:[#allocation2 + $0xc0] sm:$0xff] %vm306_vm0, %v4409_v0  ;;  %333 = vst.msk [vmem:[#allocation2 + $0xc8] sm:$0xff] %vm306_vm0, %v4409_v0 }
  0x1d   : > { %335 = vst.msk [vmem:[#allocation2 + $0xd8] sm:$0xff] %vm306_vm0, %v4409_v0  ;;  %336 = vst.msk [vmem:[#allocation2 + $0xe0] sm:$0xff] %vm306_vm0, %v4409_v0 }
  0x1e   : > { %338 = vst.msk [vmem:[#allocation2 + $0xf0] sm:$0xff] %vm306_vm0, %v4409_v0  ;;  %339 = vst.msk [vmem:[#allocation2 + $0xf8] sm:$0xff] %vm306_vm0, %v4409_v0 }
  0x1f   : > { %341 = vst.msk [vmem:[#allocation2 + $0x108] sm:$0xff] %vm306_vm0, %v4409_v0  ;;  %342 = vst.msk [vmem:[#allocation2 + $0x110] sm:$0xff] %vm306_vm0, %v4409_v0 }
  0x20   : > { %344 = vst.msk [vmem:[#allocation2 + $0x120] sm:$0xff] %vm306_vm0, %v4409_v0  ;;  %345 = vst.msk [vmem:[#allocation2 + $0x128] sm:$0xff] %vm306_vm0, %v4409_v0 }
  0x21   : > { %347 = vst.msk [vmem:[#allocation2 + $0x138] sm:$0xff] %vm306_vm0, %v4409_v0  ;;  %348 = vst.msk [vmem:[#allocation2 + $0x140] sm:$0xff] %vm306_vm0, %v4409_v0 }
  0x22   : > { %350 = vst.msk [vmem:[#allocation2 + $0x150] sm:$0xff] %vm306_vm0, %v4409_v0  ;;  %351 = vst.msk [vmem:[#allocation2 + $0x158] sm:$0xff] %vm306_vm0, %v4409_v0 }
  0x23   : > { %353 = vst.msk [vmem:[#allocation2 + $0x168] sm:$0xff] %vm306_vm0, %v4409_v0  ;;  %354 = vst.msk [vmem:[#allocation2 + $0x170] sm:$0xff] %vm306_vm0, %v4409_v0 }
  0x24   : > { %356 = vst.msk [vmem:[#allocation2 + $0x180] sm:$0xff] %vm306_vm0, %v4409_v0  ;;  %357 = vst.msk [vmem:[#allocation2 + $0x188] sm:$0xff] %vm306_vm0, %v4409_v0 }
  0x25   : > { %359 = vst.msk [vmem:[#allocation2 + $0x198] sm:$0xff] %vm306_vm0, %v4409_v0  ;;  %360 = vst.msk [vmem:[#allocation2 + $0x1a0] sm:$0xff] %vm306_vm0, %v4409_v0 }
  0x26   : > { %310 = vst.msk [vmem:[#allocation2 + $0x10] sm:$0x3] %vm309_vm1, %v4409_v0  ;;  %313 = vst.msk [vmem:[#allocation2 + $0x28] sm:$0x3] %vm309_vm1, %v4409_v0 }
  0x27   : > { %316 = vst.msk [vmem:[#allocation2 + $0x40] sm:$0x3] %vm309_vm1, %v4409_v0  ;;  %319 = vst.msk [vmem:[#allocation2 + $0x58] sm:$0x3] %vm309_vm1, %v4409_v0 }
  0x28   : > { %322 = vst.msk [vmem:[#allocation2 + $0x70] sm:$0x3] %vm309_vm1, %v4409_v0  ;;  %325 = vst.msk [vmem:[#allocation2 + $0x88] sm:$0x3] %vm309_vm1, %v4409_v0 }
  0x29   : > { %328 = vst.msk [vmem:[#allocation2 + $0xa0] sm:$0x3] %vm309_vm1, %v4409_v0  ;;  %331 = vst.msk [vmem:[#allocation2 + $0xb8] sm:$0x3] %vm309_vm1, %v4409_v0 }
  0x2a   : > { %334 = vst.msk [vmem:[#allocation2 + $0xd0] sm:$0x3] %vm309_vm1, %v4409_v0  ;;  %337 = vst.msk [vmem:[#allocation2 + $0xe8] sm:$0x3] %vm309_vm1, %v4409_v0 }
  0x2b   : > { %340 = vst.msk [vmem:[#allocation2 + $0x100] sm:$0x3] %vm309_vm1, %v4409_v0  ;;  %343 = vst.msk [vmem:[#allocation2 + $0x118] sm:$0x3] %vm309_vm1, %v4409_v0 }
  0x2c   : > { %346 = vst.msk [vmem:[#allocation2 + $0x130] sm:$0x3] %vm309_vm1, %v4409_v0  ;;  %349 = vst.msk [vmem:[#allocation2 + $0x148] sm:$0x3] %vm309_vm1, %v4409_v0 }
  0x2d   : > { %352 = vst.msk [vmem:[#allocation2 + $0x160] sm:$0x3] %vm309_vm1, %v4409_v0  ;;  %355 = vst.msk [vmem:[#allocation2 + $0x178] sm:$0x3] %vm309_vm1, %v4409_v0 }
  0x2e   : > { %358 = vst.msk [vmem:[#allocation2 + $0x190] sm:$0x3] %vm309_vm1, %v4409_v0  ;;  %361 = vst.msk [vmem:[#allocation2 + $0x1a8] sm:$0x3] %vm309_vm1, %v4409_v0 }
  0x2f   : > { %363 = vst.msk [vmem:[%s5858_s7] sm:$0x1] %vm362_vm2, %v4409_v0  ;;  %364 = vst.msk [vmem:[%s5859_s8] sm:$0x1] %vm362_vm2, %v4409_v0 }
  0x30 PF: > { %v3620_v1 = vld [vmem:[%s5856_s5 + $0x4] sm:$0xf]  ;;  %vm768_vm3 = vcmask 1043456   ;;  %v671_v3 = vld [vmem:[#allocation2 + $0x9] sm:$0xff]  ;;  %v429_v6 = vld [vmem:[%s5852_s1] sm:$0x1]  ;;  %v439_v10 = vlaneseq }
  0x31   : > { %v670_v2 = vld [vmem:[#allocation2 + $0x1] sm:$0xff]  ;;  %4380 = vmatprep.subr.msk.bf16.mxu0 %vm768_vm3, %v3620_v1  ;;  %4381 = vmatprep.subr.msk.bf16.mxu1 %vm768_vm3, %v3620_v1  ;;  %v770_v4 = vsel %vm768_vm3, %v3620_v1, 0  ;;  %v431_v7 = vld [vmem:[%s5853_s2] sm:$0x1]  ;;  %vm588_vm4 = vcmask 64512   ;;  %v430_v8 = vmul.f32 0.001953125, %v429_v6 }
  0x32   : > { %v702_v5 = vpack.c.bf16 %v671_v3, %v670_v2  ;;  %4073 = vmatpush3.bf16.msra.mxu0 %v770_v4  ;;  %4379 = vmatpush3.bf16.msra.mxu1 %v770_v4  ;;  %v432_v9 = vmul.f32 0.001953125, %v431_v7  ;;  %v669_v11 = vld [vmem:[%s5856_s5] sm:$0xf]  ;;  %v3653_v13 = vld [vmem:[%s5856_s5 + $0x8] sm:$0xf]  ;;  %v4556_v15 = vshrl.u32 %v439_v10, 7 }
  0x33   : > { %v433_v12 = vmul.f32 %v430_v8, %v430_v8  ;;  %4382 = vmatprep.subr.msk.bf16.mxu1 %vm768_vm3, %v669_v11  ;;  %4383 = vmatprep.subr.msk.bf16.mxu0 %vm768_vm3, %v3653_v13  ;;  %v3841_v17 = vld [vmem:[%s4466_s11] sm:$0xff]   ;;  %v3910_v20 = vld [vmem:[%s4466_s11 + $0x38] sm:$0xff]   ;;  %v3904_v22 = vld [vmem:[%s4466_s11 + $0x8] sm:$0xff]   ;;  %v4571_v33 = vsel %vm768_vm3, %v669_v11, 0  ;;  %v4575_v36 = vsel %vm768_vm3, %v3653_v13, 0  ;;  %vm3332_vm5 = vcmask 60416  }
  0x34   : > { %4074 = vmatprep.mubr.msk.bf16.mxu0 %vm588_vm4, %v702_v5  ;;  %v441_v19 = vsub.s32 0, %v4556_v15  ;;  %v3911_v21 = vld [vmem:[%s4466_s11 + $0x40] sm:$0xff]   ;;  %v3842_v23 = vunpack.c.l.bf16 %v3841_v17  ;;  %v3905_v24 = vld [vmem:[%s4466_s11 + $0x10] sm:$0xff]   ;;  %v3843_v25 = vunpack.c.h.bf16 %v3841_v17  ;;  %v3870_v27 = vunpack.c.l.bf16 %v3910_v20  ;;  %v3912_v29 = vld [vmem:[%s4466_s11 + $0x48] sm:$0xff]  }
  0x35   : > { %v434_v14 = vsub.f32 %v432_v9, %v433_v12  ;;  %v3871_v28 = vunpack.c.h.bf16 %v3910_v20  ;;  %v3913_v30 = vld [vmem:[%s4466_s11 + $0x50] sm:$0xff]   ;;  %v3874_v31 = vunpack.c.l.bf16 %v3911_v21  ;;  %v3875_v32 = vunpack.c.h.bf16 %v3911_v21  ;;  %v3906_v35 = vld [vmem:[%s4466_s11 + $0x18] sm:$0xff]   ;;  %v3907_v52 = vld [vmem:[%s4466_s11 + $0x20] sm:$0xff]  }
  0x36   : > { %v4566_v26 = vrot.slane %v430_v8, %v441_v19  ;;  %v3846_v34 = vunpack.c.l.bf16 %v3904_v22  ;;  %v3847_v37 = vunpack.c.h.bf16 %v3904_v22  ;;  %v3850_v38 = vunpack.c.l.bf16 %v3905_v24  ;;  %v3914_v53 = vld [vmem:[%s4466_s11 + $0x58] sm:$0xff]   ;;  %v3915_v58 = vld [vmem:[%s4466_s11 + $0x60] sm:$0xff]   ;;  %v3908_v59 = vld [vmem:[%s4466_s11 + $0x28] sm:$0xff]  }
  0x37   : > { %v435_v16 = vmax.f32 %v434_v14, 0.0  ;;  %v3851_v39 = vunpack.c.h.bf16 %v3905_v24  ;;  %v3878_v40 = vunpack.c.l.bf16 %v3912_v29  ;;  %v3879_v41 = vunpack.c.h.bf16 %v3912_v29  ;;  %v3909_v0 = vld [vmem:[%s4466_s11 + $0x30] sm:$0xff]   ;;  %v3916_v5 = vld [vmem:[%s4466_s11 + $0x68] sm:$0xff]   ;;  %v476_v7 = vld [vmem:[%s5854_s3] sm:$0x1] }
  0x38   : > { %v3882_v42 = vunpack.c.l.bf16 %v3913_v30  ;;  %v3883_v43 = vunpack.c.h.bf16 %v3913_v30  ;;  %v444_v44 = vsub.f32 %v3842_v23, %v4566_v26  ;;  %v445_v45 = vsub.f32 %v3843_v25, %v4566_v26  ;;  %v3917_v6 = vld [vmem:[%s4466_s11 + $0x70] sm:$0xff]  }
  0x39   : > { %v436_v18 = vadd.f32 1e-05, %v435_v16  ;;  %v458_v46 = vsub.f32 %v3870_v27, %v4566_v26  ;;  %v3854_v47 = vunpack.c.l.bf16 %v3906_v35  ;;  %v459_v48 = vsub.f32 %v3871_v28, %v4566_v26 }
  0x3a   : > { %v460_v49 = vsub.f32 %v3874_v31, %v4566_v26  ;;  %v461_v50 = vsub.f32 %v3875_v32, %v4566_v26  ;;  %v446_v51 = vsub.f32 %v3846_v34, %v4566_v26  ;;  %v447_v54 = vsub.f32 %v3847_v37, %v4566_v26 }
  0x3b   : > { %4399 = vrsqrt.f32 %v436_v18  ;;  %v4588_v55 = vsub.f32 %v3850_v38, %v4566_v26  ;;  %v4591_v56 = vsub.f32 %v3851_v39, %v4566_v26  ;;  %v3855_v57 = vunpack.c.h.bf16 %v3906_v35  ;;  %v4656_v38 = vld [vmem:[%s5855_s4] ss:$0 sm:$0xff] }
  0x3c   : > { %v4596_v60 = vsub.f32 %v3878_v40, %v4566_v26  ;;  %v4599_v61 = vsub.f32 %v3879_v41, %v4566_v26  ;;  %v4602_v62 = vsub.f32 %v3882_v42, %v4566_v26  ;;  %v4605_v63 = vsub.f32 %v3883_v43, %v4566_v26 }
  0x3d   : > { %v4609_v1 = vsub.f32 %v3854_v47, %v4566_v26  ;;  %v3858_v2 = vunpack.c.l.bf16 %v3907_v52  ;;  %v3859_v3 = vunpack.c.h.bf16 %v3907_v52  ;;  %v3886_v4 = vunpack.c.l.bf16 %v3914_v53 }
  0x3e   : > { %v3887_v8 = vunpack.c.h.bf16 %v3914_v53  ;;  %v3890_v9 = vunpack.c.l.bf16 %v3915_v58  ;;  %v3891_v10 = vunpack.c.h.bf16 %v3915_v58  ;;  %v3862_v11 = vunpack.c.l.bf16 %v3908_v59 }
  0x3f   : > { %v4617_v12 = vsub.f32 %v3855_v57, %v4566_v26  ;;  %v3863_v13 = vunpack.c.h.bf16 %v3908_v59  ;;  %v3866_v14 = vunpack.c.l.bf16 %v3909_v0  ;;  %v3867_v16 = vunpack.c.h.bf16 %v3909_v0 }
  0x40   : > { %v3894_v18 = vunpack.c.l.bf16 %v3916_v5  ;;  %v3895_v20 = vunpack.c.h.bf16 %v3916_v5  ;;  %v3898_v21 = vunpack.c.l.bf16 %v3917_v6  ;;  %v3899_v22 = vunpack.c.h.bf16 %v3917_v6 }
  0x41   : > { %v4620_v24 = vsub.f32 %v3858_v2, %v4566_v26  ;;  %v4623_v25 = vsub.f32 %v3859_v3, %v4566_v26  ;;  %v4626_v27 = vsub.f32 %v3886_v4, %v4566_v26  ;;  %v4629_v28 = vsub.f32 %v3887_v8, %v4566_v26 }
  0x42   : > { %v4632_v29 = vsub.f32 %v3890_v9, %v4566_v26  ;;  %v4635_v30 = vsub.f32 %v3891_v10, %v4566_v26  ;;  %v4638_v31 = vsub.f32 %v3862_v11, %v4566_v26  ;;  %v4645_v34 = vsub.f32 %v3863_v13, %v4566_v26 }
  0x43   : > { %v4648_v35 = vsub.f32 %v3866_v14, %v4566_v26  ;;  %v4651_v37 = vsub.f32 %v3867_v16, %v4566_v26  ;;  %v4659_v39 = vsub.f32 %v3894_v18, %v4566_v26  ;;  %v4662_v15 = vsub.f32 %v3895_v20, %v4566_v26 }
  0x44   : > { %v4668_v40 = vsub.f32 %v3899_v22, %v4566_v26  ;;  %vm3436_vm6 = vcmask 57344  }
  0x48   : > { %v4400_v17 = vpop.eup %4399 }
  0x49   : > { %v477_v23 = vmul.f32 %v4400_v17, %v476_v7 }
  0x4b   : > { %v4642_v32 = vrot.slane %v477_v23, %v441_v19  ;;  %v4665_v19 = vsub.f32 %v3898_v21, %v4566_v26 }
  0x4d   : > { %v484_v41 = vmul.f32 %v4642_v32, %v444_v44  ;;  %v485_v42 = vmul.f32 %v4642_v32, %v445_v45  ;;  %v498_v43 = vmul.f32 %v4642_v32, %v458_v46  ;;  %v499_v47 = vmul.f32 %v4642_v32, %v459_v48 }
  0x4e   : > { %v500_v52 = vmul.f32 %v4642_v32, %v460_v49  ;;  %v501_v53 = vmul.f32 %v4642_v32, %v461_v50  ;;  %v486_v57 = vmul.f32 %v4642_v32, %v446_v51  ;;  %v487_v58 = vmul.f32 %v4642_v32, %v447_v54 }
  0x4f   : > { %v523_v59 = vadd.f32 %v4656_v38, %v484_v41  ;;  %v524_v0 = vadd.f32 %v4656_v38, %v485_v42  ;;  %v537_v44 = vadd.f32 %v4656_v38, %v498_v43  ;;  %v538_v45 = vadd.f32 %v4656_v38, %v499_v47 }
  0x50   : > { %v539_v46 = vadd.f32 %v4656_v38, %v500_v52  ;;  %v540_v48 = vadd.f32 %v4656_v38, %v501_v53  ;;  %v525_v49 = vadd.f32 %v4656_v38, %v486_v57  ;;  %v526_v50 = vadd.f32 %v4656_v38, %v487_v58 }
  0x51   : > { %v555_v2 = vmax.f32 %v523_v59, 0.0  ;;  %v556_v51 = vmax.f32 %v524_v0, 0.0  ;;  %v569_v3 = vmax.f32 %v537_v44, 0.0  ;;  %v570_v54 = vmax.f32 %v538_v45, 0.0 }
  0x52   : > { %v571_v4 = vmax.f32 %v539_v46, 0.0  ;;  %v572_v5 = vmax.f32 %v540_v48, 0.0  ;;  %v557_v6 = vmax.f32 %v525_v49, 0.0  ;;  %v558_v7 = vmax.f32 %v526_v50, 0.0 }
  0x53   : > { %589 = vst.msk [vmem:[#allocation2 + $0x19] sm:$0xff] %vm588_vm4, %v555_v2  ;;  %590 = vst.msk [vmem:[#allocation2 + $0x21] sm:$0xff] %vm588_vm4, %v556_v51  ;;  %v488_v8 = vmul.f32 %v4642_v32, %v4588_v55  ;;  %v489_v9 = vmul.f32 %v4642_v32, %v4591_v56  ;;  %v502_v10 = vmul.f32 %v4642_v32, %v4596_v60 }
  0x54   : > { %603 = vst.msk [vmem:[#allocation2 + $0xc1] sm:$0xff] %vm588_vm4, %v569_v3  ;;  %604 = vst.msk [vmem:[#allocation2 + $0xc9] sm:$0xff] %vm588_vm4, %v570_v54  ;;  %v503_v11 = vmul.f32 %v4642_v32, %v4599_v61  ;;  %v504_v55 = vmul.f32 %v4642_v32, %v4602_v62  ;;  %v505_v56 = vmul.f32 %v4642_v32, %v4605_v63 }
  0x55   : > { %605 = vst.msk [vmem:[#allocation2 + $0xd9] sm:$0xff] %vm588_vm4, %v571_v4  ;;  %606 = vst.msk [vmem:[#allocation2 + $0xe1] sm:$0xff] %vm588_vm4, %v572_v5  ;;  %v490_v60 = vmul.f32 %v4642_v32, %v4609_v1  ;;  %v491_v61 = vmul.f32 %v4642_v32, %v4617_v12  ;;  %v527_v13 = vadd.f32 %v4656_v38, %v488_v8 }
  0x56   : > { %591 = vst.msk [vmem:[#allocation2 + $0x31] sm:$0xff] %vm588_vm4, %v557_v6  ;;  %592 = vst.msk [vmem:[#allocation2 + $0x39] sm:$0xff] %vm588_vm4, %v558_v7  ;;  %v528_v14 = vadd.f32 %v4656_v38, %v489_v9  ;;  %v541_v16 = vadd.f32 %v4656_v38, %v502_v10  ;;  %v542_v17 = vadd.f32 %v4656_v38, %v503_v11  ;;  %v4760_v7 = vld [vmem:[%s5856_s5 + $0x10] sm:$0xf] }
  0x57   : > { %v543_v18 = vadd.f32 %v4656_v38, %v504_v55  ;;  %v544_v62 = vadd.f32 %v4656_v38, %v505_v56  ;;  %v529_v63 = vadd.f32 %v4656_v38, %v490_v60  ;;  %v530_v20 = vadd.f32 %v4656_v38, %v491_v61  ;;  %v4770_v55 = vld [vmem:[%s5856_s5 + $0xc] sm:$0xf] }
  0x58   : > { %v559_v1 = vmax.f32 %v527_v13, 0.0  ;;  %v560_v21 = vmax.f32 %v528_v14, 0.0  ;;  %v573_v22 = vmax.f32 %v541_v16, 0.0  ;;  %v574_v12 = vmax.f32 %v542_v17, 0.0 }
  0x59   : > { %v575_v23 = vmax.f32 %v543_v18, 0.0  ;;  %v576_v41 = vmax.f32 %v544_v62, 0.0  ;;  %v561_v42 = vmax.f32 %v529_v63, 0.0  ;;  %v562_v43 = vmax.f32 %v530_v20, 0.0 }
  0x5a   : > { %593 = vst.msk [vmem:[#allocation2 + $0x49] sm:$0xff] %vm588_vm4, %v559_v1  ;;  %594 = vst.msk [vmem:[#allocation2 + $0x51] sm:$0xff] %vm588_vm4, %v560_v21  ;;  %v492_v47 = vmul.f32 %v4642_v32, %v4620_v24  ;;  %v493_v52 = vmul.f32 %v4642_v32, %v4623_v25  ;;  %v506_v53 = vmul.f32 %v4642_v32, %v4626_v27  ;;  %v672_v58 = vld [vmem:[#allocation2 + $0x19] sm:$0xff]  ;;  %v673_v59 = vld [vmem:[#allocation2 + $0x21] sm:$0xff] }
  0x5b   : > { %607 = vst.msk [vmem:[#allocation2 + $0xf1] sm:$0xff] %vm588_vm4, %v573_v22  ;;  %608 = vst.msk [vmem:[#allocation2 + $0xf9] sm:$0xff] %vm588_vm4, %v574_v12  ;;  %v507_v57 = vmul.f32 %v4642_v32, %v4629_v28  ;;  %v686_v0 = vld [vmem:[#allocation2 + $0xc1] sm:$0xff]  ;;  %v508_v24 = vmul.f32 %v4642_v32, %v4632_v29  ;;  %v509_v25 = vmul.f32 %v4642_v32, %v4635_v30  ;;  %v687_v45 = vld [vmem:[#allocation2 + $0xc9] sm:$0xff] }
  0x5c   : > { %609 = vst.msk [vmem:[#allocation2 + $0x109] sm:$0xff] %vm588_vm4, %v575_v23  ;;  %610 = vst.msk [vmem:[#allocation2 + $0x111] sm:$0xff] %vm588_vm4, %v576_v41  ;;  %v494_v27 = vmul.f32 %v4642_v32, %v4638_v31  ;;  %v495_v28 = vmul.f32 %v4642_v32, %v4645_v34  ;;  %v4742_v44 = vpack.c.bf16 %v673_v59, %v672_v58  ;;  %v688_v46 = vld [vmem:[#allocation2 + $0xd9] sm:$0xff]  ;;  %v689_v48 = vld [vmem:[#allocation2 + $0xe1] sm:$0xff] }
  0x5d   : > { %595 = vst.msk [vmem:[#allocation2 + $0x61] sm:$0xff] %vm588_vm4, %v561_v42  ;;  %596 = vst.msk [vmem:[#allocation2 + $0x69] sm:$0xff] %vm588_vm4, %v562_v43  ;;  %v531_v49 = vadd.f32 %v4656_v38, %v492_v47  ;;  %v532_v50 = vadd.f32 %v4656_v38, %v493_v52  ;;  %v545_v29 = vadd.f32 %v4656_v38, %v506_v53  ;;  %v674_v51 = vld [vmem:[#allocation2 + $0x31] sm:$0xff]  ;;  %v675_v31 = vld [vmem:[#allocation2 + $0x39] sm:$0xff] }
  0x5e   : > { %v4747_v2 = vpack.c.bf16 %v687_v45, %v686_v0  ;;  %v4749_v30 = vpack.c.bf16 %v689_v48, %v688_v46  ;;  %v546_v3 = vadd.f32 %v4656_v38, %v507_v57  ;;  %v547_v34 = vadd.f32 %v4656_v38, %v508_v24  ;;  %4075 = vmatmul.mubr.msk.bf16.vlgmr.msra.gmra.mxu0 %vm588_vm4, %v4742_v44 }
  0x5f   : > { %v4755_v54 = vpack.c.bf16 %v675_v31, %v674_v51  ;;  %v563_v4 = vmax.f32 %v531_v49, 0.0  ;;  %v564_v5 = vmax.f32 %v532_v50, 0.0  ;;  %v577_v6 = vmax.f32 %v545_v29, 0.0  ;;  %4141 = vmatpush3.bf16.msra.mxu0 %v4575_v36 }
  0x60   : > { %4090 = vmatprep.mubr.msk.bf16.mxu1 %vm588_vm4, %v4747_v2  ;;  %v578_v8 = vmax.f32 %v546_v3, 0.0  ;;  %v548_v9 = vadd.f32 %v4656_v38, %v509_v25  ;;  %v579_v10 = vmax.f32 %v547_v34, 0.0  ;;  %v533_v11 = vadd.f32 %v4656_v38, %v494_v27  ;;  %4385 = vmatprep.subr.msk.bf16.mxu0 %vm768_vm3, %v4760_v7 }
  0x61   : > { %4091 = vmatmul.mubr.msk.bf16.vlgmr.msra.gmra.mxu1 %vm588_vm4, %v4749_v30  ;;  %4078 = vmatprep.mubr.msk.bf16.mxu0 %vm588_vm4, %v4755_v54  ;;  %597 = vst.msk [vmem:[#allocation2 + $0x79] sm:$0xff] %vm588_vm4, %v563_v4  ;;  %598 = vst.msk [vmem:[#allocation2 + $0x81] sm:$0xff] %vm588_vm4, %v564_v5  ;;  %v534_v36 = vadd.f32 %v4656_v38, %v495_v28  ;;  %v496_v56 = vmul.f32 %v4642_v32, %v4648_v35  ;;  %v676_v61 = vld [vmem:[#allocation2 + $0x49] sm:$0xff]  ;;  %v677_v13 = vld [vmem:[#allocation2 + $0x51] sm:$0xff] }
  0x62   : > { %611 = vst.msk [vmem:[#allocation2 + $0x121] sm:$0xff] %vm588_vm4, %v577_v6  ;;  %v497_v60 = vmul.f32 %v4642_v32, %v4651_v37  ;;  %4107 = vmatpush3.bf16.msra.mxu1 %v4571_v33  ;;  %v690_v14 = vld [vmem:[#allocation2 + $0xf1] sm:$0xff]  ;;  %612 = vst.msk [vmem:[#allocation2 + $0x129] sm:$0xff] %vm588_vm4, %v578_v8  ;;  %v580_v16 = vmax.f32 %v548_v9, 0.0  ;;  %v565_v17 = vmax.f32 %v533_v11, 0.0  ;;  %v510_v18 = vmul.f32 %v4642_v32, %v4659_v39  ;;  %v691_v33 = vld [vmem:[#allocation2 + $0xf9] sm:$0xff] }
  0x63   : > { %613 = vst.msk [vmem:[#allocation2 + $0x139] sm:$0xff] %vm588_vm4, %v579_v10  ;;  %v511_v35 = vmul.f32 %v4642_v32, %v4662_v15  ;;  %v4793_v37 = vpack.c.bf16 %v677_v13, %v676_v61  ;;  %v692_v62 = vld [vmem:[#allocation2 + $0x109] sm:$0xff]  ;;  %v693_v63 = vld [vmem:[#allocation2 + $0x111] sm:$0xff]  ;;  %v566_v20 = vmax.f32 %v534_v36, 0.0  ;;  %v535_v1 = vadd.f32 %v4656_v38, %v496_v56  ;;  %4384 = vmatprep.subr.msk.bf16.mxu1 %vm768_vm3, %v4770_v55  ;;  %v621_v56 = vld [vmem:[#allocation2] sm:$0xff] }
  0x64   : > { %v536_v21 = vadd.f32 %v4656_v38, %v497_v60  ;;  %v4799_v39 = vpack.c.bf16 %v691_v33, %v690_v14  ;;  %v4801_v22 = vpack.c.bf16 %v693_v63, %v692_v62  ;;  %v678_v15 = vld [vmem:[#allocation2 + $0x61] sm:$0xff]  ;;  %v679_v12 = vld [vmem:[#allocation2 + $0x69] sm:$0xff]  ;;  %614 = vst.msk [vmem:[#allocation2 + $0x141] sm:$0xff] %vm588_vm4, %v580_v16  ;;  %599 = vst.msk [vmem:[#allocation2 + $0x91] sm:$0xff] %vm588_vm4, %v565_v17 }
  0x65   : > { %v549_v23 = vadd.f32 %v4656_v38, %v510_v18  ;;  %v550_v41 = vadd.f32 %v4656_v38, %v511_v35  ;;  %v4807_v42 = vpack.c.bf16 %v679_v12, %v678_v15  ;;  %600 = vst.msk [vmem:[#allocation2 + $0x99] sm:$0xff] %vm588_vm4, %v566_v20  ;;  %v567_v43 = vmax.f32 %v535_v1, 0.0  ;;  %v1145_v8 = vld [vmem:[#allocation2 + $0x2] sm:$0xff]  ;;  %v1146_v9 = vld [vmem:[#allocation2 + $0xa] sm:$0xff]  ;;  %v1147_v16 = vld [vmem:[#allocation2 + $0x1a] sm:$0xff] }
  0x66   : > { %v568_v47 = vmax.f32 %v536_v21, 0.0  ;;  %v512_v52 = vmul.f32 %v4642_v32, %v4665_v19  ;;  %4094 = vmatprep.mubr.msk.bf16.mxu1 %vm588_vm4, %v4799_v39  ;;  %v513_v58 = vmul.f32 %v4642_v32, %v4668_v40  ;;  %4079 = vmatmul.mubr.msk.bf16.gmra.mxu0 %vm588_vm4, %v4793_v37  ;;  %v622_v60 = vld [vmem:[#allocation2 + $0x8] sm:$0xff]  ;;  %v1177_v61 = vpack.c.bf16 %v1146_v9, %v1145_v8  ;;  %v1149_v18 = vld [vmem:[#allocation2 + $0x32] sm:$0xff]  ;;  %v1150_v35 = vld [vmem:[#allocation2 + $0x3a] sm:$0xff] }
  0x67   : > { %v581_v53 = vmax.f32 %v549_v23, 0.0  ;;  %v582_v57 = vmax.f32 %v550_v41, 0.0  ;;  %601 = vst.msk [vmem:[#allocation2 + $0xa9] sm:$0xff] %vm588_vm4, %v567_v43  ;;  %4082 = vmatprep.mubr.msk.bf16.mxu0 %vm588_vm4, %v4807_v42  ;;  %v653_v14 = vpack.c.bf16 %v622_v60, %v621_v56  ;;  %v1148_v17 = vld [vmem:[#allocation2 + $0x22] sm:$0xff]  ;;  %v623_v33 = vld [vmem:[#allocation2 + $0x18] sm:$0xff]  ;;  %v625_v1 = vld [vmem:[#allocation2 + $0x30] sm:$0xff]  ;;  %v4863_v23 = vpack.c.bf16 %v1150_v35, %v1149_v18 }
  0x68   : > { %602 = vst.msk [vmem:[#allocation2 + $0xb1] sm:$0xff] %vm588_vm4, %v568_v47  ;;  %v551_v59 = vadd.f32 %v4656_v38, %v512_v52  ;;  %v680_v19 = vld [vmem:[#allocation2 + $0x79] sm:$0xff]  ;;  %v681_v0 = vld [vmem:[#allocation2 + $0x81] sm:$0xff]  ;;  %v552_v40 = vadd.f32 %v4656_v38, %v513_v58  ;;  %v4861_v20 = vpack.c.bf16 %v1148_v17, %v1147_v16  ;;  %v1832_v43 = vsel %vm768_vm3, %v4760_v7, 0 }
  0x69   : > { %v694_v24 = vld [vmem:[#allocation2 + $0x121] sm:$0xff]  ;;  %615 = vst.msk [vmem:[#allocation2 + $0x151] sm:$0xff] %vm588_vm4, %v581_v53  ;;  %616 = vst.msk [vmem:[#allocation2 + $0x159] sm:$0xff] %vm588_vm4, %v582_v57  ;;  %4095 = vmatmul.mubr.msk.bf16.gmra.mxu1 %vm588_vm4, %v4801_v22  ;;  %v695_v25 = vld [vmem:[#allocation2 + $0x129] sm:$0xff]  ;;  %v4830_v48 = vpack.c.bf16 %v681_v0, %v680_v19  ;;  %v1538_v58 = vsel %vm768_vm3, %v4770_v55, 0 }
  0x6a   : > { %v583_v27 = vmax.f32 %v551_v59, 0.0  ;;  %v4828_v28 = vpack.c.bf16 %v695_v25, %v694_v24  ;;  %v696_v45 = vld [vmem:[#allocation2 + $0x139] sm:$0xff]  ;;  %v584_v46 = vmax.f32 %v552_v40, 0.0  ;;  %v4889_v0 = vld [vmem:[%s5856_s5 + $0x14] sm:$0xf]  ;;  %v1153_v24 = vld [vmem:[#allocation2 + $0x62] sm:$0xff] }
  0x6b   : > { %v697_v49 = vld [vmem:[#allocation2 + $0x141] sm:$0xff]  ;;  %v682_v50 = vld [vmem:[#allocation2 + $0x91] sm:$0xff] }
  0x6c   : > { %617 = vst.msk [vmem:[#allocation2 + $0x169] sm:$0xff] %vm588_vm4, %v583_v27  ;;  %4098 = vmatprep.mubr.msk.bf16.mxu1 %vm588_vm4, %v4828_v28  ;;  %v683_v29 = vld [vmem:[#allocation2 + $0x99] sm:$0xff]  ;;  %618 = vst.msk [vmem:[#allocation2 + $0x171] sm:$0xff] %vm588_vm4, %v584_v46  ;;  %v4836_v51 = vpack.c.bf16 %v697_v49, %v696_v45  ;;  %v1154_v55 = vld [vmem:[#allocation2 + $0x6a] sm:$0xff] }
  0x6d   : > { %v4838_v31 = vpack.c.bf16 %v683_v29, %v682_v50  ;;  %v624_v62 = vld [vmem:[#allocation2 + $0x20] sm:$0xff]  ;;  %v3918_v63 = vld [vmem:[%s4466_s11 + $0x78] sm:$0xff]   ;;  %v627_v25 = vld [vmem:[#allocation2 + $0x48] sm:$0xff] }
  0x6e   : > { %4083 = vmatmul.mubr.msk.bf16.gmra.mxu0 %vm588_vm4, %v4830_v48  ;;  %v684_v4 = vld [vmem:[#allocation2 + $0xa9] sm:$0xff]  ;;  %v626_v21 = vld [vmem:[#allocation2 + $0x38] sm:$0xff]  ;;  %v3902_v15 = vunpack.c.l.bf16 %v3918_v63  ;;  %v3903_v12 = vunpack.c.h.bf16 %v3918_v63  ;;  %v4865_v41 = vpack.c.bf16 %v624_v62, %v623_v33  ;;  %v629_v46 = vld [vmem:[#allocation2 + $0x60] sm:$0xff] }
  0x6f   : > { %4086 = vmatprep.mubr.msk.bf16.mxu0 %vm588_vm4, %v4838_v31  ;;  %v685_v5 = vld [vmem:[#allocation2 + $0xb1] sm:$0xff]  ;;  %v4871_v53 = vpack.c.bf16 %v626_v21, %v625_v1  ;;  %v630_v49 = vld [vmem:[#allocation2 + $0x68] sm:$0xff]  ;;  %v1158_v9 = vld [vmem:[#allocation2 + $0x9a] sm:$0xff] }
  0x70   : > { %v698_v3 = vld [vmem:[#allocation2 + $0x151] sm:$0xff]  ;;  %v699_v34 = vld [vmem:[#allocation2 + $0x159] sm:$0xff]  ;;  %v4850_v11 = vpack.c.bf16 %v685_v5, %v684_v4  ;;  %v474_v47 = vsub.f32 %v3902_v15, %v4566_v26  ;;  %v475_v52 = vsub.f32 %v3903_v12, %v4566_v26  ;;  %v1156_v5 = vld [vmem:[#allocation2 + $0x82] sm:$0xff] }
  0x71   : > { %v4844_v6 = vpack.c.bf16 %v699_v34, %v698_v3  ;;  %4099 = vmatmul.mubr.msk.bf16.gmra.mxu1 %vm588_vm4, %v4836_v51  ;;  %v4876_v57 = vld [vmem:[%s5856_s5 + $0x18] sm:$0xf]  ;;  %v1151_v26 = vld [vmem:[#allocation2 + $0x4a] sm:$0xff]  ;;  %v4903_v3 = vpack.c.bf16 %v1154_v55, %v1153_v24  ;;  %v1161_v33 = vld [vmem:[#allocation2 + $0xc2] sm:$0xff] }
  0x72   : > { %v514_v59 = vmul.f32 %v4642_v32, %v474_v47  ;;  %v515_v7 = vmul.f32 %v4642_v32, %v475_v52  ;;  %v1152_v19 = vld [vmem:[#allocation2 + $0x52] sm:$0xff]  ;;  %v1155_v4 = vld [vmem:[#allocation2 + $0x7a] sm:$0xff]  ;;  %v1159_v18 = vld [vmem:[#allocation2 + $0xaa] sm:$0xff] }
  0x73   : > { %4102 = vmatprep.mubr.msk.bf16.mxu1 %vm588_vm4, %v4844_v6  ;;  %v700_v10 = vld [vmem:[#allocation2 + $0x169] sm:$0xff]  ;;  %v701_v36 = vld [vmem:[#allocation2 + $0x171] sm:$0xff]  ;;  %v4899_v45 = vpack.c.bf16 %v1152_v19, %v1151_v26  ;;  %v4919_v56 = vpack.c.bf16 %v1156_v5, %v1155_v4  ;;  %v637_v15 = vld [vmem:[#allocation2 + $0xc0] sm:$0xff] }
  0x74   : > { %v4852_v13 = vpack.c.bf16 %v701_v36, %v700_v10  ;;  %v553_v32 = vadd.f32 %v4656_v38, %v514_v59  ;;  %v554_v40 = vadd.f32 %v4656_v38, %v515_v7  ;;  %v628_v27 = vld [vmem:[#allocation2 + $0x50] sm:$0xff]  ;;  %v4909_v38 = vpack.c.bf16 %v630_v49, %v629_v46  ;;  %v631_v10 = vld [vmem:[#allocation2 + $0x78] sm:$0xff]  ;;  %v632_v36 = vld [vmem:[#allocation2 + $0x80] sm:$0xff] }
  0x75   : > { %v4905_v34 = vpack.c.bf16 %v628_v27, %v627_v25  ;;  %v1157_v8 = vld [vmem:[#allocation2 + $0x92] sm:$0xff]  ;;  %v4923_v16 = vpack.c.bf16 %v632_v36, %v631_v10  ;;  %v1162_v62 = vld [vmem:[#allocation2 + $0xca] sm:$0xff]  ;;  %v1164_v59 = vld [vmem:[#allocation2 + $0xe2] sm:$0xff] }
  0x76   : > { %4087 = vmatmul.mubr.msk.bf16.gmra.mxu0 %vm588_vm4, %v4850_v11  ;;  %v585_v50 = vmax.f32 %v553_v32, 0.0  ;;  %v586_v29 = vmax.f32 %v554_v40, 0.0  ;;  %v633_v60 = vld [vmem:[#allocation2 + $0x90] sm:$0xff]  ;;  %v635_v63 = vld [vmem:[#allocation2 + $0xa8] sm:$0xff]  ;;  %v1166_v26 = vld [vmem:[#allocation2 + $0xfa] sm:$0xff] }
  0x77   : > { %4142 = vmatprep.mubr.msk.bf16.mxu0 %vm588_vm4, %v1177_v61  ;;  %v634_v61 = vld [vmem:[#allocation2 + $0x98] sm:$0xff]  ;;  %v636_v1 = vld [vmem:[#allocation2 + $0xb0] sm:$0xff]  ;;  %v638_v12 = vld [vmem:[#allocation2 + $0xc8] sm:$0xff] }
  0x78   : > { %619 = vst.msk [vmem:[#allocation2 + $0x181] sm:$0xff] %vm588_vm4, %v585_v50  ;;  %620 = vst.msk [vmem:[#allocation2 + $0x189] sm:$0xff] %vm588_vm4, %v586_v29  ;;  %v4925_v17 = vpack.c.bf16 %v634_v61, %v633_v60  ;;  %v1160_v35 = vld [vmem:[#allocation2 + $0xb2] sm:$0xff]  ;;  %v4939_v47 = vpack.c.bf16 %v636_v1, %v635_v63  ;;  %v4941_v52 = vpack.c.bf16 %v638_v12, %v637_v15  ;;  %v640_v24 = vld [vmem:[#allocation2 + $0xe0] sm:$0xff] }
  0x79   : > { %4103 = vmatmul.mubr.msk.bf16.gmra.mxu1 %vm588_vm4, %v4852_v13  ;;  %v4935_v21 = vpack.c.bf16 %v1160_v35, %v1159_v18  ;;  %v1165_v7 = vld [vmem:[#allocation2 + $0xf2] sm:$0xff]  ;;  %v1167_v49 = vld [vmem:[#allocation2 + $0x10a] sm:$0xff]  ;;  %v1169_v29 = vld [vmem:[#allocation2 + $0x122] sm:$0xff] }
  0x7a   : > { %4108 = vmatprep.mubr.msk.bf16.mxu1 %vm588_vm4, %v653_v14  ;;  %v4921_v14 = vpack.c.bf16 %v1158_v9, %v1157_v8  ;;  %v639_v19 = vld [vmem:[#allocation2 + $0xd8] sm:$0xff]  ;;  %v641_v32 = vld [vmem:[#allocation2 + $0xf0] sm:$0xff]  ;;  %v4953_v25 = vpack.c.bf16 %v1166_v26, %v1165_v7  ;;  %v643_v5 = vld [vmem:[#allocation2 + $0x108] sm:$0xff] }
  0x7b   : > { %v642_v40 = vld [vmem:[#allocation2 + $0xf8] sm:$0xff]  ;;  %v4955_v27 = vpack.c.bf16 %v640_v24, %v639_v19  ;;  %v1170_v4 = vld [vmem:[#allocation2 + $0x12a] sm:$0xff]  ;;  %v645_v10 = vld [vmem:[#allocation2 + $0x120] sm:$0xff] }
  0x7c   : > { %v4957_v46 = vpack.c.bf16 %v642_v40, %v641_v32  ;;  %v1168_v50 = vld [vmem:[#allocation2 + $0x112] sm:$0xff]  ;;  %v646_v36 = vld [vmem:[#allocation2 + $0x128] sm:$0xff]  ;;  %v4969_v60 = vpack.c.bf16 %v1170_v4, %v1169_v29  ;;  %v1171_v35 = vld [vmem:[#allocation2 + $0x13a] sm:$0xff]  ;;  %v2421_v4 = vsel %vm768_vm3, %v4876_v57, 0 }
  0x7d   : > { %v644_v8 = vld [vmem:[#allocation2 + $0x110] sm:$0xff]  ;;  %v4967_v9 = vpack.c.bf16 %v1168_v50, %v1167_v49  ;;  %v4973_v18 = vpack.c.bf16 %v646_v36, %v645_v10  ;;  %v1174_v63 = vld [vmem:[#allocation2 + $0x15a] sm:$0xff]  ;;  %v651_v40 = vld [vmem:[#allocation2 + $0x168] sm:$0xff] }
  0x7e   : > { %4143 = vmatmul.mubr.msk.bf16.vlgmr.msra.gmra.mxu0 %vm588_vm4, %v4861_v20  ;;  %v4971_v61 = vpack.c.bf16 %v644_v8, %v643_v5  ;;  %v647_v1 = vld [vmem:[#allocation2 + $0x138] sm:$0xff]  ;;  %v648_v15 = vld [vmem:[#allocation2 + $0x140] sm:$0xff]  ;;  %v1175_v24 = vld [vmem:[#allocation2 + $0x16a] sm:$0xff]  ;;  %v2126_v8 = vsel %vm768_vm3, %v4889_v0, 0 }
  0x7f   : > { %4209 = vmatpush3.bf16.msra.mxu0 %v1832_v43  ;;  %4146 = vmatprep.mubr.msk.bf16.mxu0 %vm588_vm4, %v4863_v23  ;;  %v4937_v43 = vpack.c.bf16 %v1162_v62, %v1161_v33  ;;  %v1172_v33 = vld [vmem:[#allocation2 + $0x142] sm:$0xff]  ;;  %v1173_v62 = vld [vmem:[#allocation2 + $0x152] sm:$0xff]  ;;  %v4987_v26 = vpack.c.bf16 %v648_v15, %v647_v1 }
  0x80   : > { %4387 = vmatprep.subr.msk.bf16.mxu0 %vm768_vm3, %v4876_v57  ;;  %v4983_v12 = vpack.c.bf16 %v1172_v33, %v1171_v35  ;;  %v4985_v7 = vpack.c.bf16 %v1174_v63, %v1173_v62  ;;  %v1176_v32 = vld [vmem:[#allocation2 + $0x172] sm:$0xff]  ;;  %v3755_v5 = vld [vmem:[%s5856_s5 + $0x20] sm:$0xf] }
  0x81   : > { %4109 = vmatmul.mubr.msk.bf16.vlgmr.msra.gmra.mxu1 %vm588_vm4, %v4865_v41  ;;  %v652_v49 = vld [vmem:[#allocation2 + $0x170] sm:$0xff]  ;;  %v4999_v50 = vpack.c.bf16 %v1176_v32, %v1175_v24  ;;  %v2617_v1 = vld [vmem:[#allocation2 + $0x39] sm:$0xff] }
  0x82   : > { %4175 = vmatpush3.bf16.msra.mxu1 %v1538_v58  ;;  %4112 = vmatprep.mubr.msk.bf16.mxu1 %vm588_vm4, %v4871_v53  ;;  %v1163_v58 = vld [vmem:[#allocation2 + $0xda] sm:$0xff]  ;;  %v5001_v29 = vpack.c.bf16 %v652_v49, %v651_v40  ;;  %v2616_v63 = vld [vmem:[#allocation2 + $0x31] sm:$0xff]  ;;  %v2618_v49 = vld [vmem:[#allocation2 + $0x49] sm:$0xff] }
  0x83   : > { %4386 = vmatprep.subr.msk.bf16.mxu1 %vm768_vm3, %v4889_v0  ;;  %v4951_v55 = vpack.c.bf16 %v1164_v59, %v1163_v58  ;;  %v649_v58 = vld [vmem:[#allocation2 + $0x150] sm:$0xff]  ;;  %v650_v59 = vld [vmem:[#allocation2 + $0x158] sm:$0xff] }
  0x84   : > { %v4989_v19 = vpack.c.bf16 %v650_v59, %v649_v58 }
  0x86   : > { %4147 = vmatmul.mubr.msk.bf16.gmra.mxu0 %vm588_vm4, %v4899_v45 }
  0x87   : > { %4150 = vmatprep.mubr.msk.bf16.mxu0 %vm588_vm4, %v4903_v3 }
  0x89   : > { %4113 = vmatmul.mubr.msk.bf16.gmra.mxu1 %vm588_vm4, %v4905_v34 }
  0x8a   : > { %4116 = vmatprep.mubr.msk.bf16.mxu1 %vm588_vm4, %v4909_v38 }
  0x8e   : > { %4151 = vmatmul.mubr.msk.bf16.gmra.mxu0 %vm588_vm4, %v4919_v56 }
  0x8f   : > { %4154 = vmatprep.mubr.msk.bf16.mxu0 %vm588_vm4, %v4921_v14 }
  0x91   : > { %4117 = vmatmul.mubr.msk.bf16.gmra.mxu1 %vm588_vm4, %v4923_v16 }
  0x92   : > { %4120 = vmatprep.mubr.msk.bf16.mxu1 %vm588_vm4, %v4925_v17 }
  0x96   : > { %4155 = vmatmul.mubr.msk.bf16.gmra.mxu0 %vm588_vm4, %v4935_v21 }
  0x97   : > { %4158 = vmatprep.mubr.msk.bf16.mxu0 %vm588_vm4, %v4937_v43 }
  0x99   : > { %4121 = vmatmul.mubr.msk.bf16.gmra.mxu1 %vm588_vm4, %v4939_v47 }
  0x9a   : > { %4124 = vmatprep.mubr.msk.bf16.mxu1 %vm588_vm4, %v4941_v52 }
  0x9e   : > { %4159 = vmatmul.mubr.msk.bf16.gmra.mxu0 %vm588_vm4, %v4951_v55 }
  0x9f   : > { %4162 = vmatprep.mubr.msk.bf16.mxu0 %vm588_vm4, %v4953_v25 }
  0xa1   : > { %4125 = vmatmul.mubr.msk.bf16.gmra.mxu1 %vm588_vm4, %v4955_v27 }
  0xa2   : > { %4128 = vmatprep.mubr.msk.bf16.mxu1 %vm588_vm4, %v4957_v46 }
  0xa6   : > { %4163 = vmatmul.mubr.msk.bf16.gmra.mxu0 %vm588_vm4, %v4967_v9 }
  0xa7   : > { %4166 = vmatprep.mubr.msk.bf16.mxu0 %vm588_vm4, %v4969_v60 }
  0xa9   : > { %4129 = vmatmul.mubr.msk.bf16.gmra.mxu1 %vm588_vm4, %v4971_v61 }
  0xaa   : > { %4132 = vmatprep.mubr.msk.bf16.mxu1 %vm588_vm4, %v4973_v18 }
  0xae   : > { %4167 = vmatmul.mubr.msk.bf16.gmra.mxu0 %vm588_vm4, %v4983_v12 }
  0xaf   : > { %4170 = vmatprep.mubr.msk.bf16.mxu0 %vm588_vm4, %v4985_v7 }
  0xb1   : > { %4133 = vmatmul.mubr.msk.bf16.gmra.mxu1 %vm588_vm4, %v4987_v26 }
  0xb2   : > { %4136 = vmatprep.mubr.msk.bf16.mxu1 %vm588_vm4, %v4989_v19 }
  0xb6   : > { %4171 = vmatmul.mubr.msk.bf16.gmra.mxu0 %vm588_vm4, %v4999_v50 }
  0xb7   : > { %4210 = vmatprep.mubr.msk.bf16.mxu0 %vm588_vm4, %v4742_v44  ;;  %v3738_v44 = vld [vmem:[%s5856_s5 + $0x1c] sm:$0xf] }
  0xb9   : > { %4137 = vmatmul.mubr.msk.bf16.gmra.mxu1 %vm588_vm4, %v5001_v29 }
  0xba   : > { %4176 = vmatprep.mubr.msk.bf16.mxu1 %vm588_vm4, %v4865_v41 }
  0xbe   : > { %4211 = vmatmul.mubr.msk.bf16.vlgmr.msra.gmra.mxu0 %vm588_vm4, %v4755_v54  ;;  %v1469_v54 = vld [vmem:[#allocation2 + $0x180] sm:$0xff] }
  0xbf   : > { %4277 = vmatpush3.bf16.msra.mxu0 %v2421_v4  ;;  %4214 = vmatprep.mubr.msk.bf16.mxu0 %vm588_vm4, %v4793_v37  ;;  %v1470_v37 = vld [vmem:[#allocation2 + $0x188] sm:$0xff] }
  0xc0   : > { %4389 = vmatprep.subr.msk.bf16.mxu0 %vm768_vm3, %v3755_v5 }
  0xc1   : > { %4177 = vmatmul.mubr.msk.bf16.vlgmr.msra.gmra.mxu1 %vm588_vm4, %v4871_v53 }
  0xc2   : > { %4243 = vmatpush3.bf16.msra.mxu1 %v2126_v8  ;;  %4180 = vmatprep.mubr.msk.bf16.mxu1 %vm588_vm4, %v4905_v34  ;;  %v2620_v8 = vld [vmem:[#allocation2 + $0x61] sm:$0xff] }
  0xc3   : > { %4388 = vmatprep.subr.msk.bf16.mxu1 %vm768_vm3, %v3738_v44 }
  0xc6   : > { %4215 = vmatmul.mubr.msk.bf16.gmra.mxu0 %vm588_vm4, %v4807_v42  ;;  %v3009_v42 = vsel %vm768_vm3, %v3755_v5, 0 }
  0xc7   : > { %4218 = vmatprep.mubr.msk.bf16.mxu0 %vm588_vm4, %v4830_v48 }
  0xc9   : > { %4181 = vmatmul.mubr.msk.bf16.gmra.mxu1 %vm588_vm4, %v4909_v38 }
  0xca   : > { %4184 = vmatprep.mubr.msk.bf16.mxu1 %vm588_vm4, %v4923_v16 }
  0xce   : > { %4219 = vmatmul.mubr.msk.bf16.gmra.mxu0 %vm588_vm4, %v4838_v31 }
  0xcf   : > { %4222 = vmatprep.mubr.msk.bf16.mxu0 %vm588_vm4, %v4850_v11 }
  0xd1   : > { %4185 = vmatmul.mubr.msk.bf16.gmra.mxu1 %vm588_vm4, %v4925_v17 }
  0xd2   : > { %4188 = vmatprep.mubr.msk.bf16.mxu1 %vm588_vm4, %v4939_v47 }
  0xd6   : > { %4223 = vmatmul.mubr.msk.bf16.gmra.mxu0 %vm588_vm4, %v4747_v2  ;;  %v1763_v2 = vld [vmem:[#allocation2 + $0x181] sm:$0xff] }
  0xd7   : > { %4226 = vmatprep.mubr.msk.bf16.mxu0 %vm588_vm4, %v4749_v30  ;;  %v1764_v30 = vld [vmem:[#allocation2 + $0x189] sm:$0xff] }
  0xd9   : > { %4189 = vmatmul.mubr.msk.bf16.gmra.mxu1 %vm588_vm4, %v4941_v52 }
  0xda   : > { %4192 = vmatprep.mubr.msk.bf16.mxu1 %vm588_vm4, %v4955_v27 }
  0xde   : > { %4227 = vmatmul.mubr.msk.bf16.gmra.mxu0 %vm588_vm4, %v4799_v39  ;;  %v5079_v39 = vpack.c.bf16 %v1764_v30, %v1763_v2 }
  0xdf   : > { %4230 = vmatprep.mubr.msk.bf16.mxu0 %vm588_vm4, %v4801_v22  ;;  %v1486_v22 = vpack.c.bf16 %v1470_v37, %v1469_v54 }
  0xe1   : > { %4193 = vmatmul.mubr.msk.bf16.gmra.mxu1 %vm588_vm4, %v4957_v46 }
  0xe2   : > { %4196 = vmatprep.mubr.msk.bf16.mxu1 %vm588_vm4, %v4971_v61 }
  0xe6   : > { %4231 = vmatmul.mubr.msk.bf16.gmra.mxu0 %vm588_vm4, %v4828_v28  ;;  %v2715_v28 = vsel %vm768_vm3, %v3738_v44, 0  ;;  %v2621_v44 = vld [vmem:[#allocation2 + $0x69] sm:$0xff] }
  0xe7   : > { %4234 = vmatprep.mubr.msk.bf16.mxu0 %vm588_vm4, %v4836_v51  ;;  %v2650_v54 = vpack.c.bf16 %v2621_v44, %v2620_v8 }
  0xe9   : > { %4197 = vmatmul.mubr.msk.bf16.gmra.mxu1 %vm588_vm4, %v4973_v18 }
  0xea   : > { %4200 = vmatprep.mubr.msk.bf16.mxu1 %vm588_vm4, %v4987_v26 }
  0xee   : > { %4235 = vmatmul.mubr.msk.bf16.gmra.mxu0 %vm588_vm4, %v4844_v6 }
  0xef   : > { %4238 = vmatprep.mubr.msk.bf16.mxu0 %vm588_vm4, %v4852_v13 }
  0xf1   : > { %4201 = vmatmul.mubr.msk.bf16.gmra.mxu1 %vm588_vm4, %v4989_v19 }
  0xf2   : > { %4204 = vmatprep.mubr.msk.bf16.mxu1 %vm588_vm4, %v5001_v29 }
  0xf6   : > { %4239 = vmatmul.mubr.msk.bf16.gmra.mxu0 %vm588_vm4, %v5079_v39 }
  0xf7   : > { %4278 = vmatprep.mubr.msk.bf16.mxu0 %vm588_vm4, %v4871_v53 }
  0xf9   : > { %4205 = vmatmul.mubr.msk.bf16.gmra.mxu1 %vm588_vm4, %v1486_v22 }
  0xfa   : > { %4244 = vmatprep.mubr.msk.bf16.mxu1 %vm588_vm4, %v4861_v20 }
  0xfe   : > { %4279 = vmatmul.mubr.msk.bf16.vlgmr.msra.gmra.mxu0 %vm588_vm4, %v4905_v34 }
  0xff   : > { %4345 = vmatpush3.bf16.msra.mxu0 %v3009_v42  ;;  %4282 = vmatprep.mubr.msk.bf16.mxu0 %vm588_vm4, %v4909_v38 }
 0x101   : > { %4245 = vmatmul.mubr.msk.bf16.vlgmr.msra.gmra.mxu1 %vm588_vm4, %v4863_v23 }
 0x102   : > { %4311 = vmatpush3.bf16.msra.mxu1 %v2715_v28  ;;  %4248 = vmatprep.mubr.msk.bf16.mxu1 %vm588_vm4, %v4899_v45 }
 0x106   : > { %4283 = vmatmul.mubr.msk.bf16.gmra.mxu0 %vm588_vm4, %v4923_v16 }
 0x107   : > { %4286 = vmatprep.mubr.msk.bf16.mxu0 %vm588_vm4, %v4925_v17 }
 0x109   : > { %4249 = vmatmul.mubr.msk.bf16.gmra.mxu1 %vm588_vm4, %v4903_v3 }
 0x10a   : > { %4252 = vmatprep.mubr.msk.bf16.mxu1 %vm588_vm4, %v4919_v56 }
 0x10e   : > { %4287 = vmatmul.mubr.msk.bf16.gmra.mxu0 %vm588_vm4, %v4939_v47 }
 0x10f   : > { %4290 = vmatprep.mubr.msk.bf16.mxu0 %vm588_vm4, %v4941_v52 }
 0x111   : > { %4253 = vmatmul.mubr.msk.bf16.gmra.mxu1 %vm588_vm4, %v4921_v14 }
 0x112   : > { %4256 = vmatprep.mubr.msk.bf16.mxu1 %vm588_vm4, %v4935_v21 }
 0x116   : > { %4291 = vmatmul.mubr.msk.bf16.gmra.mxu0 %vm588_vm4, %v4955_v27  ;;  %v2352_v27 = vld [vmem:[#allocation2 + $0x198] sm:$0xff] }
 0x117   : > { %4294 = vmatprep.mubr.msk.bf16.mxu0 %vm588_vm4, %v4957_v46  ;;  %v2353_v46 = vld [vmem:[#allocation2 + $0x1a0] sm:$0xff] }
 0x118   : > { %v2369_v62 = vpack.c.bf16 %v2353_v46, %v2352_v27  ;;  %v2622_v46 = vld [vmem:[#allocation2 + $0x79] sm:$0xff] }
 0x119   : > { %4257 = vmatmul.mubr.msk.bf16.gmra.mxu1 %vm588_vm4, %v4937_v43 }
 0x11a   : > { %4260 = vmatprep.mubr.msk.bf16.mxu1 %vm588_vm4, %v4951_v55 }
 0x11e   : > { %v5122_v48 = vpop.f32.mrf.mxu0  ;;  %4295 = vmatmul.mubr.msk.bf16.gmra.mxu0 %vm588_vm4, %v4971_v61  ;;  %v2057_v61 = vld [vmem:[#allocation2 + $0x182] sm:$0xff] }
 0x11f   : > { %4298 = vmatprep.mubr.msk.bf16.mxu0 %vm588_vm4, %v4973_v18  ;;  %v2058_v18 = vld [vmem:[#allocation2 + $0x18a] sm:$0xff] }
 0x120   : > { %v5132_v31 = vpop.f32.mrf.mxu0  ;;  %v5191_v59 = vpack.c.bf16 %v2058_v18, %v2057_v61  ;;  %v2623_v61 = vld [vmem:[#allocation2 + $0x81] sm:$0xff] }
 0x121   : > { %v5128_v51 = vpop.f32.mrf.mxu1  ;;  %4261 = vmatmul.mubr.msk.bf16.gmra.mxu1 %vm588_vm4, %v4953_v25 }
 0x122   : > { %4264 = vmatprep.mubr.msk.bf16.mxu1 %vm588_vm4, %v4967_v9  ;;  %v5138_v11 = vpop.f32.mrf.mxu0 }
 0x123   : > { %v5136_v6 = vpop.f32.mrf.mxu1 }
 0x124   : > { %v5142_v20 = vpop.f32.mrf.mxu0 }
 0x125   : > { %v5140_v13 = vpop.f32.mrf.mxu1 }
 0x126   : > { %v5146_v53 = vpop.f32.mrf.mxu0  ;;  %4299 = vmatmul.mubr.msk.bf16.gmra.mxu0 %vm588_vm4, %v4987_v26  ;;  %v2648_v26 = vpack.c.bf16 %v2617_v1, %v2616_v63  ;;  %v2624_v63 = vld [vmem:[#allocation2 + $0x91] sm:$0xff]  ;;  %v2625_v1 = vld [vmem:[#allocation2 + $0x99] sm:$0xff] }
 0x127   : > { %v5144_v41 = vpop.f32.mrf.mxu1  ;;  %4302 = vmatprep.mubr.msk.bf16.mxu0 %vm588_vm4, %v4989_v19  ;;  %v2652_v44 = vpack.c.bf16 %v2625_v1, %v2624_v63  ;;  %v2629_v63 = vld [vmem:[#allocation2 + $0xc9] sm:$0xff] }
 0x128   : > { %v5156_v0 = vpop.f32.mrf.mxu0 }
 0x129   : > { %v5152_v57 = vpop.f32.mrf.mxu1  ;;  %4265 = vmatmul.mubr.msk.bf16.gmra.mxu1 %vm588_vm4, %v4969_v60 }
 0x12a   : > { %4268 = vmatprep.mubr.msk.bf16.mxu1 %vm588_vm4, %v4983_v12  ;;  %v5162_v38 = vpop.f32.mrf.mxu0 }
 0x12b   : > { %v5160_v34 = vpop.f32.mrf.mxu1 }
 0x12c   : > { %v5166_v17 = vpop.f32.mrf.mxu0 }
 0x12d   : > { %v5164_v16 = vpop.f32.mrf.mxu1 }
 0x12e   : > { %v5170_v52 = vpop.f32.mrf.mxu0  ;;  %4303 = vmatmul.mubr.msk.bf16.gmra.mxu0 %vm588_vm4, %v5001_v29  ;;  %v2619_v29 = vld [vmem:[#allocation2 + $0x51] sm:$0xff] }
 0x12f   : > { %v5168_v47 = vpop.f32.mrf.mxu1  ;;  %4306 = vmatprep.mubr.msk.bf16.mxu0 %vm588_vm4, %v1486_v22  ;;  %v2649_v30 = vpack.c.bf16 %v2619_v29, %v2618_v49  ;;  %v2651_v29 = vpack.c.bf16 %v2623_v61, %v2622_v46  ;;  %v2627_v46 = vld [vmem:[#allocation2 + $0xb1] sm:$0xff] }
 0x130   : > { %v5179_v36 = vpop.f32.mrf.mxu0 }
 0x131   : > { %v5175_v10 = vpop.f32.mrf.mxu1  ;;  %4269 = vmatmul.mubr.msk.bf16.gmra.mxu1 %vm588_vm4, %v4985_v7 }
 0x132   : > { %4272 = vmatprep.mubr.msk.bf16.mxu1 %vm588_vm4, %v4999_v50  ;;  %v5185_v33 = vpop.f32.mrf.mxu0 }
 0x133   : > { %v5183_v35 = vpop.f32.mrf.mxu1 }
 0x134   : > { %v5189_v58 = vpop.f32.mrf.mxu0 }
 0x135   : > { %v5187_v15 = vpop.f32.mrf.mxu1 }
 0x136   : > { %v5195_v24 = vpop.f32.mrf.mxu0  ;;  %4307 = vmatmul.mubr.msk.bf16.gmra.mxu0 %vm588_vm4, %v2369_v62 }
 0x137   : > { %v5193_v19 = vpop.f32.mrf.mxu1  ;;  %4346 = vmatprep.mubr.msk.bf16.mxu0 %vm588_vm4, %v4863_v23 }
 0x138   : > { %v5204_v40 = vpop.f32.mrf.mxu0 }
 0x139   : > { %v5200_v32 = vpop.f32.mrf.mxu1  ;;  %4273 = vmatmul.mubr.msk.bf16.gmra.mxu1 %vm588_vm4, %v5191_v59 }
 0x13a   : > { %4312 = vmatprep.mubr.msk.bf16.mxu1 %vm588_vm4, %v2648_v26  ;;  %v5209_v5 = vpop.f32.mrf.mxu0 }
 0x13b   : > { %v5207_v4 = vpop.f32.mrf.mxu1 }
 0x13c   : > { %v5213_v23 = vpop.f32.mrf.mxu0 }
 0x13d   : > { %v5211_v2 = vpop.f32.mrf.mxu1 }
 0x13e   : > { %v4144_v22 = vpop.f32.mrf.mxu0  ;;  %4347 = vmatmul.mubr.msk.bf16.vlgmr.msra.gmra.mxu0 %vm588_vm4, %v4899_v45 }
 0x13f   : > { %v5215_v37 = vpop.f32.mrf.mxu1  ;;  %4350 = vmatprep.mubr.msk.bf16.mxu0 %vm588_vm4, %v4903_v3 }
 0x140   : > { %v1280_v28 = vpop.f32.mrf.mxu0 }
 0x141   : > { %v4110_v42 = vpop.f32.mrf.mxu1  ;;  %4313 = vmatmul.mubr.msk.bf16.vlgmr.msra.gmra.mxu1 %vm588_vm4, %v2649_v30 }
 0x142   : > { %v1027_v27 = vadd.f32 %v4110_v42, %v5122_v48  ;;  %4316 = vmatprep.mubr.msk.bf16.mxu1 %vm588_vm4, %v2650_v54  ;;  %v4145_v62 = vpop.f32.mrf.mxu0 }
 0x143   : > { %v1018_v18 = vpop.f32.mrf.mxu1 }
 0x144   : > { %v1019_v26 = vadd.f32 %v1018_v18, %v5132_v31  ;;  %v5225_v45 = vadd.f32 %v4144_v22, %v1027_v27  ;;  %v1283_v3 = vpop.f32.mrf.mxu0 }
 0x145   : > { %v4111_v49 = vpop.f32.mrf.mxu1 }
 0x146   : > { %v1030_v8 = vadd.f32 %v4111_v49, %v5138_v11  ;;  %v5228_v30 = vadd.f32 %v1280_v28, %v1019_v26  ;;  %v4148_v54 = vpop.f32.mrf.mxu0  ;;  %4351 = vmatmul.mubr.msk.bf16.gmra.mxu0 %vm588_vm4, %v4919_v56  ;;  %v2626_v28 = vld [vmem:[#allocation2 + $0xa9] sm:$0xff] }
 0x147   : > { %v1021_v48 = vpop.f32.mrf.mxu1  ;;  %4354 = vmatprep.mubr.msk.bf16.mxu0 %vm588_vm4, %v4921_v14  ;;  %v2653_v49 = vpack.c.bf16 %v2627_v46, %v2626_v28  ;;  %v2633_v46 = vld [vmem:[#allocation2 + $0xf9] sm:$0xff] }
 0x148   : > { %v1022_v42 = vadd.f32 %v1021_v48, %v5142_v20  ;;  %v5235_v31 = vadd.f32 %v4145_v62, %v1030_v8  ;;  %v1296_v27 = vpop.f32.mrf.mxu0  ;;  %v2628_v20 = vld [vmem:[#allocation2 + $0xc1] sm:$0xff] }
 0x149   : > { %v4114_v22 = vpop.f32.mrf.mxu1  ;;  %4317 = vmatmul.mubr.msk.bf16.gmra.mxu1 %vm588_vm4, %v2651_v29 }
 0x14a   : > { %v1043_v11 = vadd.f32 %v4114_v22, %v5146_v53  ;;  %4320 = vmatprep.mubr.msk.bf16.mxu1 %vm588_vm4, %v2652_v44  ;;  %v5240_v61 = vadd.f32 %v1283_v3, %v1022_v42  ;;  %v4149_v18 = vpop.f32.mrf.mxu0  ;;  %v2654_v53 = vpack.c.bf16 %v2629_v63, %v2628_v20  ;;  %v2630_v22 = vld [vmem:[#allocation2 + $0xd9] sm:$0xff] }
 0x14b   : > { %v1034_v56 = vpop.f32.mrf.mxu1 }
 0x14c   : > { %v1035_v14 = vadd.f32 %v1034_v56, %v5156_v0  ;;  %v5243_v62 = vadd.f32 %v4148_v54, %v1043_v11  ;;  %v1299_v26 = vpop.f32.mrf.mxu0 }
 0x14d   : > { %v4115_v1 = vpop.f32.mrf.mxu1 }
 0x14e   : > { %v1046_v29 = vadd.f32 %v4115_v1, %v5162_v38  ;;  %v5246_v8 = vadd.f32 %v1296_v27, %v1035_v14  ;;  %v4152_v48 = vpop.f32.mrf.mxu0  ;;  %4355 = vmatmul.mubr.msk.bf16.gmra.mxu0 %vm588_vm4, %v4935_v21  ;;  %v2631_v27 = vld [vmem:[#allocation2 + $0xe1] sm:$0xff] }
 0x14f   : > { %v1037_v44 = vpop.f32.mrf.mxu1  ;;  %4358 = vmatprep.mubr.msk.bf16.mxu0 %vm588_vm4, %v4937_v43  ;;  %v2655_v63 = vpack.c.bf16 %v2631_v27, %v2630_v22 }
 0x150   : > { %v1038_v3 = vadd.f32 %v1037_v44, %v5166_v17  ;;  %v5253_v0 = vadd.f32 %v4149_v18, %v1046_v29  ;;  %v1312_v42 = vpop.f32.mrf.mxu0  ;;  %v2632_v17 = vld [vmem:[#allocation2 + $0xf1] sm:$0xff] }
 0x151   : > { %v4118_v54 = vpop.f32.mrf.mxu1  ;;  %4321 = vmatmul.mubr.msk.bf16.gmra.mxu1 %vm588_vm4, %v2653_v49 }
 0x152   : > { %v1059_v38 = vadd.f32 %v4118_v54, %v5170_v52  ;;  %4324 = vmatprep.mubr.msk.bf16.mxu1 %vm588_vm4, %v2654_v53  ;;  %v5258_v11 = vadd.f32 %v1299_v26, %v1038_v3  ;;  %v4153_v28 = vpop.f32.mrf.mxu0  ;;  %v2656_v52 = vpack.c.bf16 %v2633_v46, %v2632_v17  ;;  %v2635_v3 = vld [vmem:[#allocation2 + $0x111] sm:$0xff] }
 0x153   : > { %v1050_v21 = vpop.f32.mrf.mxu1 }
 0x154   : > { %v1051_v43 = vadd.f32 %v1050_v21, %v5179_v36  ;;  %v5261_v56 = vadd.f32 %v4152_v48, %v1059_v38  ;;  %v1315_v20 = vpop.f32.mrf.mxu0  ;;  %v2634_v48 = vld [vmem:[#allocation2 + $0x109] sm:$0xff] }
 0x155   : > { %v4119_v18 = vpop.f32.mrf.mxu1  ;;  %v2637_v38 = vld [vmem:[#allocation2 + $0x129] sm:$0xff] }
 0x156   : > { %v1062_v14 = vadd.f32 %v4119_v18, %v5185_v33  ;;  %v5264_v1 = vadd.f32 %v1312_v42, %v1051_v43  ;;  %v4156_v29 = vpop.f32.mrf.mxu0  ;;  %4359 = vmatmul.mubr.msk.bf16.gmra.mxu0 %vm588_vm4, %v4951_v55 }
 0x157   : > { %v1053_v49 = vpop.f32.mrf.mxu1  ;;  %4362 = vmatprep.mubr.msk.bf16.mxu0 %vm588_vm4, %v4953_v25 }
 0x158   : > { %v1054_v26 = vadd.f32 %v1053_v49, %v5189_v58  ;;  %v5271_v36 = vadd.f32 %v4153_v28, %v1062_v14  ;;  %v1328_v44 = vpop.f32.mrf.mxu0  ;;  %v2636_v58 = vld [vmem:[#allocation2 + $0x121] sm:$0xff]  ;;  %v2657_v28 = vpack.c.bf16 %v2635_v3, %v2634_v48 }
 0x159   : > { %v4122_v53 = vpop.f32.mrf.mxu1  ;;  %4325 = vmatmul.mubr.msk.bf16.gmra.mxu1 %vm588_vm4, %v2655_v63  ;;  %v2639_v49 = vld [vmem:[#allocation2 + $0x141] sm:$0xff] }
 0x15a   : > { %v1075_v33 = vadd.f32 %v4122_v53, %v5195_v24  ;;  %4328 = vmatprep.mubr.msk.bf16.mxu1 %vm588_vm4, %v2656_v52  ;;  %v5276_v54 = vadd.f32 %v1315_v20, %v1054_v26  ;;  %v4157_v42 = vpop.f32.mrf.mxu0  ;;  %v2658_v24 = vpack.c.bf16 %v2637_v38, %v2636_v58  ;;  %v2638_v52 = vld [vmem:[#allocation2 + $0x139] sm:$0xff] }
 0x15b   : > { %v1066_v55 = vpop.f32.mrf.mxu1  ;;  %v2641_v53 = vld [vmem:[#allocation2 + $0x159] sm:$0xff]  ;;  %v2659_v3 = vpack.c.bf16 %v2639_v49, %v2638_v52 }
 0x15c   : > { %v1067_v25 = vadd.f32 %v1066_v55, %v5204_v40  ;;  %v5279_v22 = vadd.f32 %v4156_v29, %v1075_v33  ;;  %v1331_v21 = vpop.f32.mrf.mxu0 }
 0x15d   : > { %v4123_v27 = vpop.f32.mrf.mxu1 }
 0x15e   : > { %v1078_v17 = vadd.f32 %v4123_v27, %v5209_v5  ;;  %v5282_v46 = vadd.f32 %v1328_v44, %v1067_v25  ;;  %v4160_v18 = vpop.f32.mrf.mxu0  ;;  %4363 = vmatmul.mubr.msk.bf16.gmra.mxu0 %vm588_vm4, %v4967_v9 }
 0x15f   : > { %v1069_v43 = vpop.f32.mrf.mxu1  ;;  %4366 = vmatprep.mubr.msk.bf16.mxu0 %vm588_vm4, %v4969_v60 }
 0x160   : > { %v1070_v20 = vadd.f32 %v1069_v43, %v5213_v23  ;;  %v5289_v40 = vadd.f32 %v4157_v42, %v1078_v17  ;;  %v1344_v14 = vpop.f32.mrf.mxu0  ;;  %v2640_v23 = vld [vmem:[#allocation2 + $0x151] sm:$0xff] }
 0x161   : > { %v4126_v63 = vpop.f32.mrf.mxu1  ;;  %4329 = vmatmul.mubr.msk.bf16.gmra.mxu1 %vm588_vm4, %v2657_v28  ;;  %v2642_v28 = vld [vmem:[#allocation2 + $0x169] sm:$0xff]  ;;  %v2643_v17 = vld [vmem:[#allocation2 + $0x171] sm:$0xff] }
 0x162   : > { %v1091_v5 = vadd.f32 %v4126_v63, %v5128_v51  ;;  %4332 = vmatprep.mubr.msk.bf16.mxu1 %vm588_vm4, %v2658_v24  ;;  %v5294_v29 = vadd.f32 %v1331_v21, %v1070_v20  ;;  %v4161_v26 = vpop.f32.mrf.mxu0  ;;  %v2660_v51 = vpack.c.bf16 %v2641_v53, %v2640_v23  ;;  %v2661_v63 = vpack.c.bf16 %v2643_v17, %v2642_v28 }
 0x163   : > { %v1082_v9 = vpop.f32.mrf.mxu1 }
 0x164   : > { %v1083_v60 = vadd.f32 %v1082_v9, %v5136_v6  ;;  %v5297_v44 = vadd.f32 %v4160_v18, %v1091_v5  ;;  %v1347_v48 = vpop.f32.mrf.mxu0  ;;  %v2941_v9 = vld [vmem:[#allocation2 + $0x1a2] sm:$0xff] }
 0x165   : > { %v4127_v33 = vpop.f32.mrf.mxu1 }
 0x166   : > { %v1094_v55 = vadd.f32 %v4127_v33, %v5140_v13  ;;  %v5300_v42 = vadd.f32 %v1344_v14, %v1083_v60  ;;  %v4164_v38 = vpop.f32.mrf.mxu0  ;;  %4367 = vmatmul.mubr.msk.bf16.gmra.mxu0 %vm588_vm4, %v4983_v12  ;;  %v2646_v60 = vld [vmem:[#allocation2 + $0x199] sm:$0xff] }
 0x167   : > { %v1085_v58 = vpop.f32.mrf.mxu1  ;;  %4370 = vmatprep.mubr.msk.bf16.mxu0 %vm588_vm4, %v4985_v7 }
 0x168   : > { %v1086_v25 = vadd.f32 %v1085_v58, %v5144_v41  ;;  %v5307_v6 = vadd.f32 %v4161_v26, %v1094_v55  ;;  %v1360_v21 = vpop.f32.mrf.mxu0 }
 0x169   : > { %v4130_v27 = vpop.f32.mrf.mxu1  ;;  %4333 = vmatmul.mubr.msk.bf16.gmra.mxu1 %vm588_vm4, %v2659_v3 }
 0x16a   : > { %v1107_v13 = vadd.f32 %v4130_v27, %v5152_v57  ;;  %4336 = vmatprep.mubr.msk.bf16.mxu1 %vm588_vm4, %v2660_v51  ;;  %v5312_v24 = vadd.f32 %v1347_v48, %v1086_v25  ;;  %v4165_v43 = vpop.f32.mrf.mxu0 }
 0x16b   : > { %v1098_v12 = vpop.f32.mrf.mxu1 }
 0x16c   : > { %v1099_v41 = vadd.f32 %v1098_v12, %v5160_v34  ;;  %v5315_v18 = vadd.f32 %v4164_v38, %v1107_v13  ;;  %v1363_v20 = vpop.f32.mrf.mxu0  ;;  %v2940_v34 = vld [vmem:[#allocation2 + $0x19a] sm:$0xff] }
 0x16d   : > { %v4131_v7 = vpop.f32.mrf.mxu1 }
 0x16e   : > { %v1110_v14 = vadd.f32 %v4131_v7, %v5164_v16  ;;  %v5318_v5 = vadd.f32 %v1360_v21, %v1099_v41  ;;  %v4168_v52 = vpop.f32.mrf.mxu0  ;;  %4371 = vmatmul.mubr.msk.bf16.gmra.mxu0 %vm588_vm4, %v4999_v50  ;;  %v2647_v50 = vld [vmem:[#allocation2 + $0x1a1] sm:$0xff] }
 0x16f   : > { %v1101_v57 = vpop.f32.mrf.mxu1  ;;  %4374 = vmatprep.mubr.msk.bf16.mxu0 %vm588_vm4, %v5191_v59  ;;  %v2957_v59 = vpack.c.bf16 %v2941_v9, %v2940_v34  ;;  %v2663_v38 = vpack.c.bf16 %v2647_v50, %v2646_v60 }
 0x170   : > { %v1102_v49 = vadd.f32 %v1101_v57, %v5168_v47  ;;  %v5325_v26 = vadd.f32 %v4165_v43, %v1110_v14  ;;  %v1376_v16 = vpop.f32.mrf.mxu0 }
 0x171   : > { %v4134_v23 = vpop.f32.mrf.mxu1  ;;  %4337 = vmatmul.mubr.msk.bf16.gmra.mxu1 %vm588_vm4, %v2661_v63 }
 0x172   : > { %v1123_v53 = vadd.f32 %v4134_v23, %v5175_v10  ;;  %4340 = vmatprep.mubr.msk.bf16.mxu1 %vm588_vm4, %v5079_v39  ;;  %v5331_v33 = vadd.f32 %v1363_v20, %v1102_v49  ;;  %v4169_v48 = vpop.f32.mrf.mxu0 }
 0x173   : > { %v1114_v47 = vpop.f32.mrf.mxu1 }
 0x174   : > { %v1115_v3 = vadd.f32 %v1114_v47, %v5183_v35  ;;  %v5334_v55 = vadd.f32 %v4168_v52, %v1123_v53  ;;  %v1379_v58 = vpop.f32.mrf.mxu0 }
 0x175   : > { %v4135_v51 = vpop.f32.mrf.mxu1 }
 0x176   : > { %v1126_v25 = vadd.f32 %v4135_v51, %v5187_v15  ;;  %v5337_v10 = vadd.f32 %v1376_v16, %v1115_v3  ;;  %v4172_v39 = vpop.f32.mrf.mxu0  ;;  %4375 = vmatmul.mubr.msk.bf16.gmra.mxu0 %vm588_vm4, %v2957_v59 }
 0x177   : > { %v1117_v27 = vpop.f32.mrf.mxu1 }
 0x178   : > { %v1118_v21 = vadd.f32 %v1117_v27, %v5193_v19  ;;  %v5341_v13 = vadd.f32 %v4169_v48, %v1126_v25  ;;  %v1392_v35 = vpop.f32.mrf.mxu0 }
 0x179   : > { %v4138_v28 = vpop.f32.mrf.mxu1  ;;  %4341 = vmatmul.mubr.msk.bf16.gmra.mxu1 %vm588_vm4, %v2663_v38 }
 0x17a   : > { %v1139_v17 = vadd.f32 %v4138_v28, %v5200_v32  ;;  %v5345_v12 = vadd.f32 %v1379_v58, %v1118_v21  ;;  %v4173_v15 = vpop.f32.mrf.mxu0 }
 0x17b   : > { %v1130_v43 = vpop.f32.mrf.mxu1 }
 0x17c   : > { %v1131_v41 = vadd.f32 %v1130_v43, %v5207_v4  ;;  %v5348_v7 = vadd.f32 %v4172_v39, %v1139_v17  ;;  %v1395_v63 = vpop.f32.mrf.mxu0 }
 0x17d   : > { %v4139_v20 = vpop.f32.mrf.mxu1 }
 0x17e   : > { %v1142_v19 = vadd.f32 %v4139_v20, %v5211_v2  ;;  %v5351_v14 = vadd.f32 %v1392_v35, %v1131_v41  ;;  %v4212_v52 = vpop.f32.mrf.mxu0 }
 0x17f   : > { %v1133_v57 = vpop.f32.mrf.mxu1 }
 0x180   : > { %v1134_v49 = vadd.f32 %v1133_v57, %v5215_v37  ;;  %v5354_v34 = vadd.f32 %v4173_v15, %v1142_v19  ;;  %v1868_v9 = vpop.f32.mrf.mxu0 }
 0x181   : > { %v4178_v32 = vpop.f32.mrf.mxu1 }
 0x182   : > { %v1703_v23 = vadd.f32 %v4178_v32, %v5225_v45  ;;  %v5357_v16 = vadd.f32 %v1395_v63, %v1134_v49  ;;  %v4213_v53 = vpop.f32.mrf.mxu0 }
 0x183   : > { %v1574_v4 = vpop.f32.mrf.mxu1 }
 0x184   : > { %v1701_v60 = vadd.f32 %v1574_v4, %v5228_v30  ;;  %v5360_v50 = vadd.f32 %v4212_v52, %v1703_v23  ;;  %v1871_v47 = vpop.f32.mrf.mxu0 }
 0x185   : > { %v4179_v2 = vpop.f32.mrf.mxu1 }
 0x186   : > { %v1704_v48 = vadd.f32 %v4179_v2, %v5235_v31  ;;  %v5363_v59 = vadd.f32 %v1868_v9, %v1701_v60  ;;  %v4216_v3 = vpop.f32.mrf.mxu0 }
 0x187   : > { %v1577_v37 = vpop.f32.mrf.mxu1 }
 0x188   : > { %v1702_v51 = vadd.f32 %v1577_v37, %v5240_v61  ;;  %v5366_v58 = vadd.f32 %v4213_v53, %v1704_v48  ;;  %v1884_v38 = vpop.f32.mrf.mxu0 }
 0x189   : > { %v4182_v45 = vpop.f32.mrf.mxu1 }
 0x18a   : > { %v1707_v25 = vadd.f32 %v4182_v45, %v5243_v62  ;;  %v5369_v27 = vadd.f32 %v1871_v47, %v1702_v51  ;;  %v4217_v39 = vpop.f32.mrf.mxu0 }
 0x18b   : > { %v1590_v30 = vpop.f32.mrf.mxu1 }
 0x18c   : > { %v1705_v21 = vadd.f32 %v1590_v30, %v5246_v8  ;;  %v5372_v28 = vadd.f32 %v4216_v3, %v1707_v25  ;;  %v1887_v35 = vpop.f32.mrf.mxu0 }
 0x18d   : > { %v4183_v31 = vpop.f32.mrf.mxu1 }
 0x18e   : > { %v1708_v17 = vadd.f32 %v4183_v31, %v5253_v0  ;;  %v5375_v43 = vadd.f32 %v1884_v38, %v1705_v21  ;;  %v4220_v15 = vpop.f32.mrf.mxu0 }
 0x18f   : > { %v1593_v61 = vpop.f32.mrf.mxu1 }
 0x190   : > { %v1706_v41 = vadd.f32 %v1593_v61, %v5258_v11  ;;  %v5378_v20 = vadd.f32 %v4217_v39, %v1708_v17  ;;  %v1900_v63 = vpop.f32.mrf.mxu0 }
 0x191   : > { %v4186_v62 = vpop.f32.mrf.mxu1 }
 0x192   : > { %v1711_v19 = vadd.f32 %v4186_v62, %v5261_v56  ;;  %v5381_v57 = vadd.f32 %v1887_v35, %v1706_v41  ;;  %v4221_v52 = vpop.f32.mrf.mxu0 }
 0x193   : > { %v1606_v8 = vpop.f32.mrf.mxu1 }
 0x194   : > { %v1709_v49 = vadd.f32 %v1606_v8, %v5264_v1  ;;  %v5384_v32 = vadd.f32 %v4220_v15, %v1711_v19  ;;  %v1903_v9 = vpop.f32.mrf.mxu0 }
 0x195   : > { %v4187_v0 = vpop.f32.mrf.mxu1 }
 0x196   : > { %v1712_v23 = vadd.f32 %v4187_v0, %v5271_v36  ;;  %v5387_v4 = vadd.f32 %v1900_v63, %v1709_v49  ;;  %v4224_v53 = vpop.f32.mrf.mxu0 }
 0x197   : > { %v1609_v11 = vpop.f32.mrf.mxu1 }
 0x198   : > { %v1710_v60 = vadd.f32 %v1609_v11, %v5276_v54  ;;  %v5390_v2 = vadd.f32 %v4221_v52, %v1712_v23  ;;  %v1916_v47 = vpop.f32.mrf.mxu0 }
 0x199   : > { %v4190_v56 = vpop.f32.mrf.mxu1 }
 0x19a   : > { %v1715_v48 = vadd.f32 %v4190_v56, %v5279_v22  ;;  %v5393_v37 = vadd.f32 %v1903_v9, %v1710_v60  ;;  %v4225_v3 = vpop.f32.mrf.mxu0 }
 0x19b   : > { %v1622_v1 = vpop.f32.mrf.mxu1 }
 0x19c   : > { %v1713_v51 = vadd.f32 %v1622_v1, %v5282_v46  ;;  %v5396_v45 = vadd.f32 %v4224_v53, %v1715_v48  ;;  %v1919_v38 = vpop.f32.mrf.mxu0 }
 0x19d   : > { %v4191_v36 = vpop.f32.mrf.mxu1 }
 0x19e   : > { %v1716_v25 = vadd.f32 %v4191_v36, %v5289_v40  ;;  %v5399_v30 = vadd.f32 %v1916_v47, %v1713_v51  ;;  %v4228_v39 = vpop.f32.mrf.mxu0 }
 0x19f   : > { %v1625_v54 = vpop.f32.mrf.mxu1 }
 0x1a0   : > { %v1714_v21 = vadd.f32 %v1625_v54, %v5294_v29  ;;  %v5402_v31 = vadd.f32 %v4225_v3, %v1716_v25  ;;  %v1932_v35 = vpop.f32.mrf.mxu0 }
 0x1a1   : > { %v4194_v22 = vpop.f32.mrf.mxu1 }
 0x1a2   : > { %v1719_v17 = vadd.f32 %v4194_v22, %v5297_v44  ;;  %v5405_v61 = vadd.f32 %v1919_v38, %v1714_v21  ;;  %v4229_v15 = vpop.f32.mrf.mxu0 }
 0x1a3   : > { %v1638_v46 = vpop.f32.mrf.mxu1 }
 0x1a4   : > { %v1717_v41 = vadd.f32 %v1638_v46, %v5300_v42  ;;  %v5408_v62 = vadd.f32 %v4228_v39, %v1719_v17  ;;  %v1935_v63 = vpop.f32.mrf.mxu0 }
 0x1a5   : > { %v4195_v40 = vpop.f32.mrf.mxu1 }
 0x1a6   : > { %v1720_v19 = vadd.f32 %v4195_v40, %v5307_v6  ;;  %v5411_v8 = vadd.f32 %v1932_v35, %v1717_v41  ;;  %v4232_v52 = vpop.f32.mrf.mxu0 }
 0x1a7   : > { %v1641_v29 = vpop.f32.mrf.mxu1 }
 0x1a8   : > { %v1718_v49 = vadd.f32 %v1641_v29, %v5312_v24  ;;  %v5414_v0 = vadd.f32 %v4229_v15, %v1720_v19  ;;  %v1948_v9 = vpop.f32.mrf.mxu0 }
 0x1a9   : > { %v4198_v44 = vpop.f32.mrf.mxu1 }
 0x1aa   : > { %v1723_v23 = vadd.f32 %v4198_v44, %v5315_v18  ;;  %v5417_v11 = vadd.f32 %v1935_v63, %v1718_v49  ;;  %v4233_v53 = vpop.f32.mrf.mxu0 }
 0x1ab   : > { %v1654_v42 = vpop.f32.mrf.mxu1 }
 0x1ac   : > { %5860 = vst [vmem:[#allocation3_spill] sm:$0xff] %v5417_v11  ;;  %v1721_v60 = vadd.f32 %v1654_v42, %v5318_v5  ;;  %v5420_v56 = vadd.f32 %v4232_v52, %v1723_v23  ;;  %v1951_v47 = vpop.f32.mrf.mxu0 }
 0x1ad   : > { %v4199_v6 = vpop.f32.mrf.mxu1 }
 0x1ae   : > { %5861 = vst [vmem:[#allocation4_spill] sm:$0xff] %v5420_v56  ;;  %v1724_v48 = vadd.f32 %v4199_v6, %v5325_v26  ;;  %v5423_v1 = vadd.f32 %v1948_v9, %v1721_v60  ;;  %v4236_v3 = vpop.f32.mrf.mxu0 }
 0x1af   : > { %v1657_v24 = vpop.f32.mrf.mxu1 }
 0x1b0   : > { %5862 = vst [vmem:[#allocation5_spill] sm:$0xff] %v5423_v1  ;;  %v1722_v51 = vadd.f32 %v1657_v24, %v5331_v33  ;;  %v5426_v36 = vadd.f32 %v4233_v53, %v1724_v48  ;;  %v1964_v38 = vpop.f32.mrf.mxu0 }
 0x1b1   : > { %v4202_v18 = vpop.f32.mrf.mxu1 }
 0x1b2   : > { %5863 = vst [vmem:[#allocation6_spill] sm:$0xff] %v5426_v36  ;;  %v1727_v25 = vadd.f32 %v4202_v18, %v5334_v55  ;;  %v5429_v54 = vadd.f32 %v1951_v47, %v1722_v51  ;;  %v4237_v39 = vpop.f32.mrf.mxu0 }
 0x1b3   : > { %v1670_v5 = vpop.f32.mrf.mxu1 }
 0x1b4   : > { %5864 = vst [vmem:[#allocation7_spill] sm:$0xff] %v5429_v54  ;;  %v1725_v21 = vadd.f32 %v1670_v5, %v5337_v10  ;;  %v5432_v22 = vadd.f32 %v4236_v3, %v1727_v25  ;;  %v1967_v35 = vpop.f32.mrf.mxu0 }
 0x1b5   : > { %v4203_v26 = vpop.f32.mrf.mxu1 }
 0x1b6   : > { %5865 = vst [vmem:[#allocation8_spill] sm:$0xff] %v5432_v22  ;;  %v1728_v17 = vadd.f32 %v4203_v26, %v5341_v13  ;;  %v5435_v46 = vadd.f32 %v1964_v38, %v1725_v21  ;;  %v4240_v15 = vpop.f32.mrf.mxu0 }
 0x1b7   : > { %v1673_v33 = vpop.f32.mrf.mxu1 }
 0x1b8   : > { %5866 = vst [vmem:[#allocation9_spill] sm:$0xff] %v5435_v46  ;;  %v1726_v41 = vadd.f32 %v1673_v33, %v5345_v12  ;;  %v5438_v40 = vadd.f32 %v4237_v39, %v1728_v17  ;;  %v1980_v63 = vpop.f32.mrf.mxu0 }
 0x1b9   : > { %v4206_v55 = vpop.f32.mrf.mxu1 }
 0x1ba   : > { %5867 = vst [vmem:[#allocation10_spill] sm:$0xff] %v5438_v40  ;;  %v1731_v19 = vadd.f32 %v4206_v55, %v5348_v7  ;;  %v5441_v29 = vadd.f32 %v1967_v35, %v1726_v41  ;;  %v4241_v52 = vpop.f32.mrf.mxu0 }
 0x1bb   : > { %v1686_v10 = vpop.f32.mrf.mxu1 }
 0x1bc   : > { %5868 = vst [vmem:[#allocation11_spill] sm:$0xff] %v5441_v29  ;;  %v1729_v49 = vadd.f32 %v1686_v10, %v5351_v14  ;;  %v5444_v44 = vadd.f32 %v4240_v15, %v1731_v19  ;;  %v1983_v9 = vpop.f32.mrf.mxu0 }
 0x1bd   : > { %v4207_v13 = vpop.f32.mrf.mxu1 }
 0x1be   : > { %5869 = vst [vmem:[#allocation12_spill] sm:$0xff] %v5444_v44  ;;  %v1732_v23 = vadd.f32 %v4207_v13, %v5354_v34  ;;  %v5447_v42 = vadd.f32 %v1980_v63, %v1729_v49  ;;  %v5449_v53 = vpop.f32.mrf.mxu0 }
 0x1bf   : > { %v1689_v12 = vpop.f32.mrf.mxu1 }
 0x1c0   : > { %5870 = vst [vmem:[#allocation13_spill] sm:$0xff] %v5447_v42  ;;  %v1730_v60 = vadd.f32 %v1689_v12, %v5357_v16  ;;  %v5452_v7 = vadd.f32 %v4241_v52, %v1732_v23  ;;  %v5454_v47 = vpop.f32.mrf.mxu0 }
 0x1c1   : > { %v4246_v6 = vpop.f32.mrf.mxu1 }
 0x1c2   : > { %5871 = vst [vmem:[#allocation14_spill] sm:$0xff] %v5452_v7  ;;  %v5456_v48 = vadd.f32 %v1983_v9, %v1730_v60  ;;  %v5458_v24 = vpop.f32.mrf.mxu0 }
 0x1c3   : > { %v2162_v14 = vpop.f32.mrf.mxu1 }
 0x1c4   : > { %5872 = vst [vmem:[#allocation15_spill] sm:$0xff] %v5456_v48  ;;  %v5460_v51 = vpop.f32.mrf.mxu0 }
 0x1c5   : > { %v4247_v3 = vpop.f32.mrf.mxu1 }
 0x1c6   : > { %v5462_v18 = vpop.f32.mrf.mxu0 }
 0x1c7   : > { %v2165_v34 = vpop.f32.mrf.mxu1 }
 0x1c8   : > { %v5464_v25 = vpop.f32.mrf.mxu0 }
 0x1c9   : > { %v4250_v38 = vpop.f32.mrf.mxu1 }
 0x1ca   : > { %v5466_v5 = vpop.f32.mrf.mxu0 }
 0x1cb   : > { %v2178_v16 = vpop.f32.mrf.mxu1 }
 0x1cc   : > { %v5468_v21 = vpop.f32.mrf.mxu0 }
 0x1cd   : > { %v4251_v39 = vpop.f32.mrf.mxu1 }
 0x1ce   : > { %v5470_v35 = vpop.f32.mrf.mxu0 }
 0x1cf   : > { %v2181_v26 = vpop.f32.mrf.mxu1 }
 0x1d0   : > { %v5472_v33 = vpop.f32.mrf.mxu0 }
 0x1d1   : > { %v4254_v17 = vpop.f32.mrf.mxu1 }
 0x1d2   : > { %v5474_v41 = vpop.f32.mrf.mxu0 }
 0x1d3   : > { %v2194_v15 = vpop.f32.mrf.mxu1 }
 0x1d4   : > { %v5476_v63 = vpop.f32.mrf.mxu0 }
 0x1d5   : > { %v4255_v55 = vpop.f32.mrf.mxu1 }
 0x1d6   : > { %v5478_v10 = vpop.f32.mrf.mxu0 }
 0x1d7   : > { %v2197_v19 = vpop.f32.mrf.mxu1 }
 0x1d8   : > { %v5480_v49 = vpop.f32.mrf.mxu0 }
 0x1d9   : > { %v4258_v52 = vpop.f32.mrf.mxu1 }
 0x1da   : > { %v5482_v9 = vpop.f32.mrf.mxu0 }
 0x1db   : > { %v2210_v13 = vpop.f32.mrf.mxu1 }
 0x1dc   : > { %v5484_v12 = vpop.f32.mrf.mxu0 }
 0x1dd   : > { %v4259_v23 = vpop.f32.mrf.mxu1  ;;  %5873 = vst [vmem:[#allocation16_spill] sm:$0xff] %v5484_v12 }
 0x1de   : > { %v5486_v48 = vpop.f32.mrf.mxu0 }
 0x1df   : > { %v2213_v60 = vpop.f32.mrf.mxu1  ;;  %5874 = vst [vmem:[#allocation17_spill] sm:$0xff] %v5486_v48 }
 0x1e0   : > { %v5488_v42 = vpop.f32.mrf.mxu0 }
 0x1e1   : > { %v4262_v7 = vpop.f32.mrf.mxu1  ;;  %5875 = vst [vmem:[#allocation18_spill] sm:$0xff] %v5488_v42 }
 0x1e2   : > { %v5490_v29 = vpop.f32.mrf.mxu0 }
 0x1e3   : > { %v2226_v44 = vpop.f32.mrf.mxu1  ;;  %5876 = vst [vmem:[#allocation19_spill] sm:$0xff] %v5490_v29 }
 0x1e4   : > { %v5492_v46 = vpop.f32.mrf.mxu0 }
 0x1e5   : > { %v4263_v40 = vpop.f32.mrf.mxu1  ;;  %5877 = vst [vmem:[#allocation20_spill] sm:$0xff] %v5492_v46 }
 0x1e6   : > { %v5496_v54 = vpop.f32.mrf.mxu0 }
 0x1e7   : > { %v5494_v22 = vpop.f32.mrf.mxu1  ;;  %5879 = vst [vmem:[#allocation22_spill] sm:$0xff] %v5496_v54 }
 0x1e8   : > { %5878 = vst [vmem:[#allocation21_spill] sm:$0xff] %v5494_v22  ;;  %v5500_v1 = vpop.f32.mrf.mxu0 }
 0x1e9   : > { %v5498_v36 = vpop.f32.mrf.mxu1  ;;  %5881 = vst [vmem:[#allocation24_spill] sm:$0xff] %v5500_v1 }
 0x1ea   : > { %5880 = vst [vmem:[#allocation23_spill] sm:$0xff] %v5498_v36  ;;  %v5504_v48 = vpop.f32.mrf.mxu0 }
 0x1eb   : > { %v5502_v56 = vpop.f32.mrf.mxu1  ;;  %5883 = vst [vmem:[#allocation26_spill] sm:$0xff] %v5504_v48  ;;  %v2291_v48 = vadd.f32 %v4246_v6, %v5360_v50  ;;  %v2296_v50 = vadd.f32 %v4251_v39, %v5378_v20 }
 0x1ec   : > { %5882 = vst [vmem:[#allocation25_spill] sm:$0xff] %v5502_v56  ;;  %v5508_v42 = vpop.f32.mrf.mxu0 }
 0x1ed   : > { %v5506_v11 = vpop.f32.mrf.mxu1  ;;  %5885 = vst [vmem:[#allocation28_spill] sm:$0xff] %v5508_v42 }
 0x1ee   : > { %5884 = vst [vmem:[#allocation27_spill] sm:$0xff] %v5506_v11  ;;  %v5512_v12 = vpop.f32.mrf.mxu0 }
 0x1ef   : > { %v5510_v29 = vpop.f32.mrf.mxu1  ;;  %5887 = vst [vmem:[#allocation30_spill] sm:$0xff] %v5512_v12  ;;  %v2289_v12 = vadd.f32 %v2162_v14, %v5363_v59  ;;  %v2586_v59 = vadd.f32 %v5449_v53, %v2291_v48  ;;  %v2299_v14 = vadd.f32 %v4254_v17, %v5384_v32  ;;  %v2304_v32 = vadd.f32 %v4259_v23, %v5402_v31  ;;  %v5899_v17 = vld [vmem:[#allocation5_spill] sm:$0xff] }
 0x1f0   : > { %5886 = vst [vmem:[#allocation29_spill] sm:$0xff] %v5510_v29  ;;  %v5516_v22 = vpop.f32.mrf.mxu0 }
 0x1f1   : > { %v5514_v46 = vpop.f32.mrf.mxu1  ;;  %5889 = vst [vmem:[#allocation32_spill] sm:$0xff] %v5516_v22  ;;  %v5576_v31 = vadd.f32 %v5470_v35, %v2299_v14  ;;  %v5908_v14 = vld [vmem:[#allocation9_spill] sm:$0xff] }
 0x1f2   : > { %5888 = vst [vmem:[#allocation31_spill] sm:$0xff] %v5514_v46  ;;  %v5520_v36 = vpop.f32.mrf.mxu0  ;;  %v2292_v46 = vadd.f32 %v4247_v3, %v5366_v58  ;;  %v2294_v58 = vadd.f32 %v2181_v26, %v5381_v57  ;;  %v2297_v3 = vadd.f32 %v2194_v15, %v5387_v4  ;;  %v2301_v57 = vadd.f32 %v2210_v13, %v5399_v30  ;;  %v5898_v26 = vld [vmem:[#allocation23_spill] sm:$0xff] }
 0x1f3   : > { %v5518_v54 = vpop.f32.mrf.mxu1  ;;  %5890 = vst [vmem:[#allocation33_spill] sm:$0xff] %v5520_v36  ;;  %v2290_v36 = vadd.f32 %v2165_v34, %v5369_v27  ;;  %v2300_v27 = vadd.f32 %v4255_v55, %v5390_v2  ;;  %v2302_v4 = vadd.f32 %v2213_v60, %v5405_v61  ;;  %v5904_v13 = vld [vmem:[#allocation7_spill] sm:$0xff] }
 0x1f4   : > { %v5524_v56 = vpop.f32.mrf.mxu0  ;;  %v2587_v53 = vadd.f32 %v5458_v24, %v2292_v46  ;;  %v5570_v46 = vadd.f32 %v5466_v5, %v2296_v50  ;;  %v5573_v30 = vadd.f32 %v5468_v21, %v2294_v58  ;;  %v5579_v61 = vadd.f32 %v5472_v33, %v2297_v3  ;;  %v5894_v5 = vld [vmem:[#allocation16_spill] sm:$0xff]  ;;  %v5900_v33 = vld [vmem:[#allocation25_spill] sm:$0xff] }
 0x1f5   : > { %v5522_v1 = vpop.f32.mrf.mxu1  ;;  %5892 = vst [vmem:[#allocation35_spill] sm:$0xff] %v5524_v56  ;;  %v2293_v56 = vadd.f32 %v2178_v16, %v5375_v43  ;;  %v2303_v43 = vadd.f32 %v4258_v52, %v5396_v45  ;;  %v2585_v2 = vadd.f32 %v5460_v51, %v2290_v36  ;;  %v5599_v21 = vadd.f32 %v5894_v5, %v2302_v4  ;;  %v5903_v52 = vld [vmem:[#allocation27_spill] sm:$0xff]  ;;  %v5906_v50 = vld [vmem:[#allocation8_spill] sm:$0xff] }
 0x1f6   : > { %5891 = vst [vmem:[#allocation34_spill] sm:$0xff] %v5522_v1  ;;  %v5529_v42 = vpop.f32.mrf.mxu0  ;;  %v2295_v1 = vadd.f32 %v4250_v38, %v5372_v28  ;;  %v2298_v28 = vadd.f32 %v2197_v19, %v5393_v37  ;;  %v2584_v38 = vadd.f32 %v5454_v47, %v2289_v12  ;;  %v2307_v37 = vadd.f32 %v4262_v7, %v5408_v62 }
 0x1f7   : > { %v5527_v11 = vpop.f32.mrf.mxu1  ;;  %v5567_v39 = vadd.f32 %v5464_v25, %v2293_v56  ;;  %v5582_v62 = vadd.f32 %v5474_v41, %v2300_v27  ;;  %v2308_v56 = vadd.f32 %v4263_v40, %v5414_v0  ;;  %v5590_v24 = vadd.f32 %v5478_v10, %v2303_v43  ;;  %v5896_v0 = vld [vmem:[#allocation21_spill] sm:$0xff]  ;;  %v5902_v10 = vld [vmem:[#allocation6_spill] sm:$0xff] }
 0x1f8   : > { %5893 = vst [vmem:[#allocation36_spill] sm:$0xff] %v5527_v11  ;;  %v5535_v22 = vpop.f32.mrf.mxu0  ;;  %v2590_v16 = vadd.f32 %v5462_v18, %v2295_v1  ;;  %v2305_v1 = vadd.f32 %v2226_v44, %v5411_v8  ;;  %v5587_v47 = vadd.f32 %v5476_v63, %v2298_v28  ;;  %v5593_v18 = vadd.f32 %v5480_v49, %v2301_v57  ;;  %v5895_v8 = vld [vmem:[#allocation3_spill] sm:$0xff]  ;;  %v5897_v44 = vld [vmem:[#allocation4_spill] sm:$0xff]  ;;  %v5901_v63 = vld [vmem:[#allocation17_spill] sm:$0xff] }
 0x1f9   : > { %v5533_v29 = vpop.f32.mrf.mxu1  ;;  %v5596_v25 = vadd.f32 %v5482_v9, %v2304_v32  ;;  %v2306_v40 = vadd.f32 %v5896_v0, %v5895_v8  ;;  %v2311_v35 = vadd.f32 %v5898_v26, %v5897_v44  ;;  %v2309_v15 = vadd.f32 %v5900_v33, %v5899_v17  ;;  %v5905_v9 = vld [vmem:[#allocation29_spill] sm:$0xff]  ;;  %v5909_v43 = vld [vmem:[#allocation18_spill] sm:$0xff]  ;;  %v5910_v32 = vld [vmem:[#allocation19_spill] sm:$0xff] }
 0x1fa   : > { %v5543_v11 = vpop.f32.mrf.mxu0  ;;  %v5608_v19 = vadd.f32 %v5901_v63, %v2307_v37  ;;  %v2312_v49 = vadd.f32 %v5903_v52, %v5902_v10  ;;  %v2310_v23 = vadd.f32 %v5905_v9, %v5904_v13  ;;  %v2313_v3 = vadd.f32 %v5518_v54, %v5908_v14  ;;  %v5911_v37 = vld [vmem:[#allocation10_spill] sm:$0xff]  ;;  %v5915_v44 = vld [vmem:[#allocation12_spill] sm:$0xff] }
 0x1fb   : > { %v5541_v6 = vpop.f32.mrf.mxu1  ;;  %v5619_v57 = vadd.f32 %v5909_v43, %v2305_v1  ;;  %v5622_v4 = vadd.f32 %v5910_v32, %v2308_v56  ;;  %v2319_v26 = vadd.f32 %v5533_v29, %v5915_v44  ;;  %v5916_v1 = vld [vmem:[#allocation20_spill] sm:$0xff]  ;;  %v5917_v56 = vld [vmem:[#allocation22_spill] sm:$0xff] }
 0x1fc   : > { %v5554_v20 = vpop.f32.mrf.mxu0  ;;  %v5634_v63 = vadd.f32 %v5917_v56, %v2311_v35  ;;  %v5918_v52 = vld [vmem:[#allocation24_spill] sm:$0xff]  ;;  %v5921_v14 = vld [vmem:[#allocation30_spill] sm:$0xff] }
 0x1fd   : > { %v5552_v34 = vpop.f32.mrf.mxu1  ;;  %v5639_v13 = vadd.f32 %v5918_v52, %v2309_v15  ;;  %v5920_v29 = vld [vmem:[#allocation28_spill] sm:$0xff]  ;;  %v5926_v44 = vld [vmem:[#allocation14_spill] sm:$0xff] }
 0x1fe   : > { %v4348_v48 = vpop.f32.mrf.mxu0  ;;  %v5922_v35 = vld [vmem:[#allocation32_spill] sm:$0xff] }
 0x1ff   : > { %v5563_v45 = vpop.f32.mrf.mxu1  ;;  %v5651_v43 = vadd.f32 %v5922_v35, %v2313_v3 }
 0x200   : > { %v3045_v7 = vpop.f32.mrf.mxu0 }
 0x201   : > { %v4314_v36 = vpop.f32.mrf.mxu1 }
 0x202   : > { %v2880_v51 = vadd.f32 %v4314_v36, %v2586_v59  ;;  %v4349_v55 = vpop.f32.mrf.mxu0  ;;  %v5907_v59 = vld [vmem:[#allocation31_spill] sm:$0xff]  ;;  %v5912_v36 = vld [vmem:[#allocation34_spill] sm:$0xff] }
 0x203   : > { %v2751_v41 = vpop.f32.mrf.mxu1  ;;  %v2315_v58 = vadd.f32 %v5907_v59, %v5906_v50  ;;  %v2316_v5 = vadd.f32 %v5912_v36, %v5911_v37 }
 0x204   : > { %v3174_v12 = vadd.f32 %v4348_v48, %v2880_v51  ;;  %v2878_v60 = vadd.f32 %v2751_v41, %v2584_v38  ;;  %v3048_v28 = vpop.f32.mrf.mxu0  ;;  %v5913_v48 = vld [vmem:[#allocation11_spill] sm:$0xff]  ;;  %v5914_v38 = vld [vmem:[#allocation36_spill] sm:$0xff]  ;;  %v5631_v41 = vadd.f32 %v5916_v1, %v2306_v40 }
 0x205   : > { %v4315_v27 = vpop.f32.mrf.mxu1  ;;  %v2314_v51 = vadd.f32 %v5914_v38, %v5913_v48 }
 0x206   : > { %v3810_v8 = vpack.c.bf16 %v3174_v12, %v3174_v12  ;;  %v3172_v0 = vadd.f32 %v3045_v7, %v2878_v60  ;;  %v2881_v54 = vadd.f32 %v4315_v27, %v2587_v53  ;;  %v4352_v33 = vpop.f32.mrf.mxu0  ;;  %v5919_v7 = vld [vmem:[#allocation26_spill] sm:$0xff]  ;;  %v5645_v53 = vadd.f32 %v5920_v29, %v2310_v23  ;;  %v5924_v23 = vld [vmem:[#allocation35_spill] sm:$0xff] }
 0x207   : > { %v2754_v17 = vpop.f32.mrf.mxu1  ;;  %v5642_v9 = vadd.f32 %v5919_v7, %v2312_v49  ;;  %v5648_v27 = vadd.f32 %v5921_v14, %v2315_v58  ;;  %v5923_v49 = vld [vmem:[#allocation33_spill] sm:$0xff]  ;;  %v5659_v36 = vadd.f32 %v5924_v23, %v2314_v51 }
 0x208   : > { %3335 = vst.msk [vmem:[%s4471_s14 + $0x8] sm:$0xf] %vm3332_vm5, %v3810_v8  ;;  %v3808_v10 = vpack.c.bf16 %v3172_v0, %v3172_v0  ;;  %v3175_v60 = vadd.f32 %v4349_v55, %v2881_v54  ;;  %v2879_v50 = vadd.f32 %v2754_v17, %v2585_v2  ;;  %v3061_v40 = vpop.f32.mrf.mxu0  ;;  %v3439_v15 = vmul.f32 %v3172_v0, %v3172_v0  ;;  %v5925_v2 = vld [vmem:[#allocation13_spill] sm:$0xff] }
 0x209   : > { %v4318_v59 = vpop.f32.mrf.mxu1  ;;  %v5656_v37 = vadd.f32 %v5923_v49, %v2316_v5  ;;  %v5663_v55 = vadd.f32 %v5541_v6, %v5925_v2  ;;  %v5666_v8 = vadd.f32 %v5529_v42, %v2319_v26  ;;  %v3441_v5 = vmul.f32 %v3174_v12, %v3174_v12 }
 0x20a   : > { %3333 = vst.msk [vmem:[%s4471_s14] sm:$0xf] %vm3332_vm5, %v3808_v10  ;;  %v2884_v32 = vadd.f32 %v4318_v59, %v2590_v16  ;;  %v3811_v58 = vpack.c.bf16 %v3175_v60, %v3175_v60  ;;  %v3173_v48 = vadd.f32 %v3048_v28, %v2879_v50  ;;  %v4353_v3 = vpop.f32.mrf.mxu0  ;;  %v5670_v16 = vadd.f32 %v5552_v34, %v5926_v44 }
 0x20b   : > { %v2767_v38 = vpop.f32.mrf.mxu1  ;;  %v3366_v17 = vsel %vm588_vm4, %v3172_v0, 0.0  ;;  %v3369_v26 = vsel %vm588_vm4, %v3174_v12, 0.0  ;;  %v3471_v34 = vsel %vm588_vm4, %v3439_v15, 0.0  ;;  %v3474_v59 = vsel %vm588_vm4, %v3441_v5, 0.0 }
 0x20c   : > { %v3178_v54 = vadd.f32 %v4352_v33, %v2884_v32  ;;  %v2882_v51 = vadd.f32 %v2767_v38, %v5567_v39  ;;  %3336 = vst.msk [vmem:[%s4471_s14 + $0xc] sm:$0xf] %vm3332_vm5, %v3811_v58  ;;  %v3809_v6 = vpack.c.bf16 %v3173_v48, %v3173_v48  ;;  %v3367_v28 = vsel %vm588_vm4, %v3173_v48, 0.0  ;;  %v3064_v42 = vpop.f32.mrf.mxu0 }
 0x20d   : > { %v3440_v1 = vmul.f32 %v3173_v48, %v3173_v48  ;;  %v4319_v56 = vpop.f32.mrf.mxu1  ;;  %v3368_v10 = vadd.f32 %v3367_v28, %v3366_v17  ;;  %v3442_v33 = vmul.f32 %v3175_v60, %v3175_v60  ;;  %v3371_v15 = vsel %vm588_vm4, %v3175_v60, 0.0 }
 0x20e   : > { %v3814_v52 = vpack.c.bf16 %v3178_v54, %v3178_v54  ;;  %3334 = vst.msk [vmem:[%s4471_s14 + $0x4] sm:$0xf] %vm3332_vm5, %v3809_v6  ;;  %v3176_v0 = vadd.f32 %v3061_v40, %v2882_v51  ;;  %v2885_v7 = vadd.f32 %v4319_v56, %v5570_v46  ;;  %v4356_v50 = vpop.f32.mrf.mxu0  ;;  %v3445_v5 = vmul.f32 %v3178_v54, %v3178_v54 }
 0x20f   : > { %v3472_v39 = vsel %vm588_vm4, %v3440_v1, 0.0  ;;  %v2770_v29 = vpop.f32.mrf.mxu1  ;;  %v3370_v14 = vadd.f32 %v3369_v26, %v3368_v10  ;;  %v3476_v44 = vsel %vm588_vm4, %v3442_v33, 0.0 }
 0x210   : > { %v3473_v35 = vadd.f32 %v3472_v39, %v3471_v34  ;;  %3339 = vst.msk [vmem:[%s4471_s14 + $0x18] sm:$0xf] %vm3332_vm5, %v3814_v52  ;;  %v2883_v12 = vadd.f32 %v2770_v29, %v5573_v30  ;;  %v3812_v32 = vpack.c.bf16 %v3176_v0, %v3176_v0  ;;  %v3443_v49 = vmul.f32 %v3176_v0, %v3176_v0  ;;  %v3077_v40 = vpop.f32.mrf.mxu0 }
 0x211   : > { %v3179_v23 = vadd.f32 %v4353_v3, %v2885_v7  ;;  %v4322_v2 = vpop.f32.mrf.mxu1  ;;  %v3372_v46 = vadd.f32 %v3371_v15, %v3370_v14  ;;  %v3373_v30 = vsel %vm588_vm4, %v3176_v0, 0.0  ;;  %v5703_v0 = vadd.f32 %v5535_v22, %v5663_v55 }
 0x212   : > { %v3475_v58 = vadd.f32 %v3474_v59, %v3473_v35  ;;  %v3177_v48 = vadd.f32 %v3064_v42, %v2883_v12  ;;  %v2888_v38 = vadd.f32 %v4322_v2, %v5576_v31  ;;  %3337 = vst.msk [vmem:[%s4471_s14 + $0x10] sm:$0xf] %vm3332_vm5, %v3812_v32  ;;  %v4357_v17 = vpop.f32.mrf.mxu0  ;;  %v3478_v56 = vsel %vm588_vm4, %v3443_v49, 0.0  ;;  %v5927_v49 = vld [vmem:[#allocation15_spill] sm:$0xff] }
 0x213   : > { %v3815_v60 = vpack.c.bf16 %v3179_v23, %v3179_v23  ;;  %v2783_v51 = vpop.f32.mrf.mxu1  ;;  %v3374_v3 = vadd.f32 %v3373_v30, %v3372_v46  ;;  %v3377_v7 = vsel %vm588_vm4, %v3178_v54, 0.0  ;;  %v3446_v29 = vmul.f32 %v3179_v23, %v3179_v23 }
 0x214   : > { %v3477_v6 = vadd.f32 %v3476_v44, %v3475_v58  ;;  %v3813_v28 = vpack.c.bf16 %v3177_v48, %v3177_v48  ;;  %v3375_v1 = vsel %vm588_vm4, %v3177_v48, 0.0  ;;  %v3444_v31 = vmul.f32 %v3177_v48, %v3177_v48  ;;  %v3080_v10 = vpop.f32.mrf.mxu0 }
 0x215   : > { %3340 = vst.msk [vmem:[%s4471_s14 + $0x1c] sm:$0xf] %vm3332_vm5, %v3815_v60  ;;  %v3182_v42 = vadd.f32 %v4356_v50, %v2888_v38  ;;  %v2886_v26 = vadd.f32 %v2783_v51, %v5579_v61  ;;  %v4323_v34 = vpop.f32.mrf.mxu1  ;;  %v3376_v33 = vadd.f32 %v3375_v1, %v3374_v3  ;;  %v2318_v2 = vadd.f32 %v5563_v45, %v5927_v49 }
 0x216   : > { %v3479_v52 = vadd.f32 %v3478_v56, %v3477_v6  ;;  %3338 = vst.msk [vmem:[%s4471_s14 + $0x14] sm:$0xf] %vm3332_vm5, %v3813_v28  ;;  %v2889_v39 = vadd.f32 %v4323_v34, %v5582_v62  ;;  %v3480_v50 = vsel %vm588_vm4, %v3444_v31, 0.0  ;;  %v4360_v14 = vpop.f32.mrf.mxu0  ;;  %v3482_v62 = vsel %vm588_vm4, %v3445_v5, 0.0 }
 0x217   : > { %v3818_v59 = vpack.c.bf16 %v3182_v42, %v3182_v42  ;;  %v2786_v61 = vpop.f32.mrf.mxu1  ;;  %v3378_v35 = vadd.f32 %v3377_v7, %v3376_v33  ;;  %v3180_v15 = vadd.f32 %v3077_v40, %v2886_v26  ;;  %v3379_v22 = vsel %vm588_vm4, %v3179_v23, 0.0 }
 0x218   : > { %v3481_v12 = vadd.f32 %v3480_v50, %v3479_v52  ;;  %v3183_v32 = vadd.f32 %v4357_v17, %v2889_v39  ;;  %v2887_v55 = vadd.f32 %v2786_v61, %v5587_v47  ;;  %v3093_v58 = vpop.f32.mrf.mxu0  ;;  %v5716_v40 = vadd.f32 %v5543_v11, %v5670_v16 }
 0x219   : > { %3343 = vst.msk [vmem:[%s4471_s14 + $0x28] sm:$0xf] %vm3332_vm5, %v3818_v59  ;;  %v4326_v54 = vpop.f32.mrf.mxu1  ;;  %v3816_v48 = vpack.c.bf16 %v3180_v15, %v3180_v15  ;;  %v3380_v38 = vadd.f32 %v3379_v22, %v3378_v35  ;;  %v3484_v45 = vsel %vm588_vm4, %v3446_v29, 0.0  ;;  %v3381_v44 = vsel %vm588_vm4, %v3180_v15, 0.0 }
 0x21a   : > { %v3483_v46 = vadd.f32 %v3482_v62, %v3481_v12  ;;  %v3447_v5 = vmul.f32 %v3180_v15, %v3180_v15  ;;  %v3819_v23 = vpack.c.bf16 %v3183_v32, %v3183_v32  ;;  %v4361_v60 = vpop.f32.mrf.mxu0  ;;  %v3181_v17 = vadd.f32 %v3080_v10, %v2887_v55 }
 0x21b   : > { %v2799_v30 = vpop.f32.mrf.mxu1  ;;  %3341 = vst.msk [vmem:[%s4471_s14 + $0x20] sm:$0xf] %vm3332_vm5, %v3816_v48  ;;  %v3382_v47 = vadd.f32 %v3381_v44, %v3380_v38  ;;  %v2892_v3 = vadd.f32 %v4326_v54, %v5590_v24  ;;  %v3449_v6 = vmul.f32 %v3182_v42, %v3182_v42  ;;  %v3450_v11 = vmul.f32 %v3183_v32, %v3183_v32 }
 0x21c   : > { %v3485_v51 = vadd.f32 %v3484_v45, %v3483_v46  ;;  %v3486_v28 = vsel %vm588_vm4, %v3447_v5, 0.0  ;;  %3344 = vst.msk [vmem:[%s4471_s14 + $0x2c] sm:$0xf] %vm3332_vm5, %v3819_v23  ;;  %v2890_v16 = vadd.f32 %v2799_v30, %v5593_v18  ;;  %v3096_v56 = vpop.f32.mrf.mxu0  ;;  %v3817_v26 = vpack.c.bf16 %v3181_v17, %v3181_v17 }
 0x21d   : > { %v4327_v1 = vpop.f32.mrf.mxu1  ;;  %v3383_v34 = vsel %vm588_vm4, %v3181_v17, 0.0  ;;  %v3448_v52 = vmul.f32 %v3181_v17, %v3181_v17  ;;  %v3186_v10 = vadd.f32 %v4360_v14, %v2892_v3  ;;  %v3385_v50 = vsel %vm588_vm4, %v3182_v42, 0.0 }
 0x21e   : > { %v3487_v31 = vadd.f32 %v3486_v28, %v3485_v51  ;;  %v3384_v33 = vadd.f32 %v3383_v34, %v3382_v47  ;;  %v3184_v39 = vadd.f32 %v3093_v58, %v2890_v16  ;;  %v2893_v24 = vadd.f32 %v4327_v1, %v5596_v25  ;;  %v4364_v29 = vpop.f32.mrf.mxu0  ;;  %3342 = vst.msk [vmem:[%s4471_s14 + $0x24] sm:$0xf] %vm3332_vm5, %v3817_v26 }
 0x21f   : > { %v2802_v7 = vpop.f32.mrf.mxu1  ;;  %v3488_v18 = vsel %vm588_vm4, %v3448_v52, 0.0  ;;  %v5735_v61 = vadd.f32 %v5554_v20, %v2318_v2  ;;  %v3490_v35 = vsel %vm588_vm4, %v3449_v6, 0.0  ;;  %v3822_v25 = vpack.c.bf16 %v3186_v10, %v3186_v10 }
 0x220   : > { %v2891_v59 = vadd.f32 %v2802_v7, %v5599_v21  ;;  %v3386_v14 = vadd.f32 %v3385_v50, %v3384_v33  ;;  %v3489_v12 = vadd.f32 %v3488_v18, %v3487_v31  ;;  %v3109_v49 = vpop.f32.mrf.mxu0  ;;  %v3387_v42 = vsel %vm588_vm4, %v3183_v32, 0.0 }
 0x221   : > { %v4330_v15 = vpop.f32.mrf.mxu1  ;;  %v3492_v62 = vsel %vm588_vm4, %v3450_v11, 0.0  ;;  %v3820_v22 = vpack.c.bf16 %v3184_v39, %v3184_v39  ;;  %v3451_v55 = vmul.f32 %v3184_v39, %v3184_v39  ;;  %3347 = vst.msk [vmem:[%s4471_s14 + $0x38] sm:$0xf] %vm3332_vm5, %v3822_v25  ;;  %v3187_v20 = vadd.f32 %v4361_v60, %v2893_v24 }
 0x222   : > { %v3491_v54 = vadd.f32 %v3490_v35, %v3489_v12  ;;  %v3388_v21 = vadd.f32 %v3387_v42, %v3386_v14  ;;  %v3185_v2 = vadd.f32 %v3096_v56, %v2891_v59  ;;  %v4365_v46 = vpop.f32.mrf.mxu0  ;;  %v3453_v48 = vmul.f32 %v3186_v10, %v3186_v10 }
 0x223   : > { %v2815_v58 = vpop.f32.mrf.mxu1  ;;  %3345 = vst.msk [vmem:[%s4471_s14 + $0x30] sm:$0xf] %vm3332_vm5, %v3820_v22  ;;  %v3389_v38 = vsel %vm588_vm4, %v3184_v39, 0.0  ;;  %v2896_v32 = vadd.f32 %v4330_v15, %v5608_v19  ;;  %v3494_v23 = vsel %vm588_vm4, %v3451_v55, 0.0  ;;  %v3823_v30 = vpack.c.bf16 %v3187_v20, %v3187_v20 }
 0x224   : > { %v2894_v45 = vadd.f32 %v2815_v58, %v5619_v57  ;;  %v3390_v44 = vadd.f32 %v3389_v38, %v3388_v21  ;;  %v3493_v5 = vadd.f32 %v3492_v62, %v3491_v54  ;;  %v3112_v47 = vpop.f32.mrf.mxu0  ;;  %v3454_v51 = vmul.f32 %v3187_v20, %v3187_v20 }
 0x225   : > { %v4331_v60 = vpop.f32.mrf.mxu1  ;;  %v3821_v17 = vpack.c.bf16 %v3185_v2, %v3185_v2  ;;  %v3391_v3 = vsel %vm588_vm4, %v3185_v2, 0.0  ;;  %v3452_v6 = vmul.f32 %v3185_v2, %v3185_v2  ;;  %3348 = vst.msk [vmem:[%s4471_s14 + $0x3c] sm:$0xf] %vm3332_vm5, %v3823_v30  ;;  %v3190_v19 = vadd.f32 %v4364_v29, %v2896_v32 }
 0x226   : > { %v3495_v28 = vadd.f32 %v3494_v23, %v3493_v5  ;;  %v3392_v11 = vadd.f32 %v3391_v3, %v3390_v44  ;;  %v3188_v16 = vadd.f32 %v3109_v49, %v2894_v45  ;;  %v4368_v1 = vpop.f32.mrf.mxu0  ;;  %v3393_v56 = vsel %vm588_vm4, %v3186_v10, 0.0 }
 0x227   : > { %v2818_v57 = vpop.f32.mrf.mxu1  ;;  %3346 = vst.msk [vmem:[%s4471_s14 + $0x34] sm:$0xf] %vm3332_vm5, %v3821_v17  ;;  %v3496_v31 = vsel %vm588_vm4, %v3452_v6, 0.0  ;;  %v2897_v26 = vadd.f32 %v4331_v60, %v5622_v4  ;;  %v3498_v52 = vsel %vm588_vm4, %v3453_v48, 0.0  ;;  %v3826_v24 = vpack.c.bf16 %v3190_v19, %v3190_v19 }
 0x228   : > { %v2895_v34 = vadd.f32 %v2818_v57, %v5631_v41  ;;  %v3394_v33 = vadd.f32 %v3393_v56, %v3392_v11  ;;  %v3497_v39 = vadd.f32 %v3496_v31, %v3495_v28  ;;  %v3125_v29 = vpop.f32.mrf.mxu0  ;;  %v3395_v50 = vsel %vm588_vm4, %v3187_v20, 0.0 }
 0x229   : > { %v4334_v7 = vpop.f32.mrf.mxu1  ;;  %v3500_v10 = vsel %vm588_vm4, %v3454_v51, 0.0  ;;  %v3824_v18 = vpack.c.bf16 %v3188_v16, %v3188_v16  ;;  %v3455_v59 = vmul.f32 %v3188_v16, %v3188_v16  ;;  %3351 = vst.msk [vmem:[%s4471_s14 + $0x48] sm:$0xf] %vm3332_vm5, %v3826_v24  ;;  %v3191_v14 = vadd.f32 %v4365_v46, %v2897_v26 }
 0x22a   : > { %v3499_v35 = vadd.f32 %v3498_v52, %v3497_v39  ;;  %v3396_v4 = vadd.f32 %v3395_v50, %v3394_v33  ;;  %v3189_v41 = vadd.f32 %v3112_v47, %v2895_v34  ;;  %v4369_v25 = vpop.f32.mrf.mxu0  ;;  %v3457_v15 = vmul.f32 %v3190_v19, %v3190_v19 }
 0x22b   : > { %v2831_v12 = vpop.f32.mrf.mxu1  ;;  %3349 = vst.msk [vmem:[%s4471_s14 + $0x40] sm:$0xf] %vm3332_vm5, %v3824_v18  ;;  %v3397_v49 = vsel %vm588_vm4, %v3188_v16, 0.0  ;;  %v2900_v42 = vadd.f32 %v4334_v7, %v5634_v63  ;;  %v3502_v54 = vsel %vm588_vm4, %v3455_v59, 0.0  ;;  %v3827_v21 = vpack.c.bf16 %v3191_v14, %v3191_v14 }
 0x22c   : > { %v2898_v62 = vadd.f32 %v2831_v12, %v5639_v13  ;;  %v3398_v22 = vadd.f32 %v3397_v49, %v3396_v4  ;;  %v3501_v55 = vadd.f32 %v3500_v10, %v3499_v35  ;;  %v3128_v2 = vpop.f32.mrf.mxu0  ;;  %v3458_v58 = vmul.f32 %v3191_v14, %v3191_v14 }
 0x22d   : > { %v4335_v20 = vpop.f32.mrf.mxu1  ;;  %v3825_v46 = vpack.c.bf16 %v3189_v41, %v3189_v41  ;;  %v3399_v48 = vsel %vm588_vm4, %v3189_v41, 0.0  ;;  %v3456_v38 = vmul.f32 %v3189_v41, %v3189_v41  ;;  %3352 = vst.msk [vmem:[%s4471_s14 + $0x4c] sm:$0xf] %vm3332_vm5, %v3827_v21  ;;  %v3194_v63 = vadd.f32 %v4368_v1, %v2900_v42 }
 0x22e   : > { %v3503_v32 = vadd.f32 %v3502_v54, %v3501_v55  ;;  %v3400_v45 = vadd.f32 %v3399_v48, %v3398_v22  ;;  %v3192_v44 = vadd.f32 %v3125_v29, %v2898_v62  ;;  %v4372_v5 = vpop.f32.mrf.mxu0  ;;  %v3401_v23 = vsel %vm588_vm4, %v3190_v19, 0.0 }
 0x22f   : > { %v2834_v13 = vpop.f32.mrf.mxu1  ;;  %3350 = vst.msk [vmem:[%s4471_s14 + $0x44] sm:$0xf] %vm3332_vm5, %v3825_v46  ;;  %v3504_v30 = vsel %vm588_vm4, %v3456_v38, 0.0  ;;  %v2901_v60 = vadd.f32 %v4335_v20, %v5642_v9  ;;  %v3506_v51 = vsel %vm588_vm4, %v3457_v15, 0.0  ;;  %v3830_v6 = vpack.c.bf16 %v3194_v63, %v3194_v63 }
 0x230   : > { %v2899_v47 = vadd.f32 %v2834_v13, %v5645_v53  ;;  %v3402_v17 = vadd.f32 %v3401_v23, %v3400_v45  ;;  %v3505_v3 = vadd.f32 %v3504_v30, %v3503_v32  ;;  %v3141_v11 = vpop.f32.mrf.mxu0  ;;  %v3403_v16 = vsel %vm588_vm4, %v3191_v14, 0.0 }
 0x231   : > { %v4338_v28 = vpop.f32.mrf.mxu1  ;;  %v3508_v19 = vsel %vm588_vm4, %v3458_v58, 0.0  ;;  %v3828_v57 = vpack.c.bf16 %v3192_v44, %v3192_v44  ;;  %v3459_v1 = vmul.f32 %v3192_v44, %v3192_v44  ;;  %3355 = vst.msk [vmem:[%s4471_s14 + $0x58] sm:$0xf] %vm3332_vm5, %v3830_v6  ;;  %v3195_v31 = vadd.f32 %v4369_v25, %v2901_v60 }
 0x232   : > { %v3507_v56 = vadd.f32 %v3506_v51, %v3505_v3  ;;  %v3404_v9 = vadd.f32 %v3403_v16, %v3402_v17  ;;  %v3193_v53 = vadd.f32 %v3128_v2, %v2899_v47  ;;  %v4373_v34 = vpop.f32.mrf.mxu0  ;;  %v3461_v52 = vmul.f32 %v3194_v63, %v3194_v63 }
 0x233   : > { %v2847_v26 = vpop.f32.mrf.mxu1  ;;  %3353 = vst.msk [vmem:[%s4471_s14 + $0x50] sm:$0xf] %vm3332_vm5, %v3828_v57  ;;  %v3405_v33 = vsel %vm588_vm4, %v3192_v44, 0.0  ;;  %v2904_v39 = vadd.f32 %v4338_v28, %v5648_v27  ;;  %v3510_v50 = vsel %vm588_vm4, %v3459_v1, 0.0  ;;  %v3831_v10 = vpack.c.bf16 %v3195_v31, %v3195_v31 }
 0x234   : > { %v2902_v24 = vadd.f32 %v2847_v26, %v5651_v43  ;;  %v3406_v7 = vadd.f32 %v3405_v33, %v3404_v9  ;;  %v3509_v29 = vadd.f32 %v3508_v19, %v3507_v56  ;;  %v3144_v59 = vpop.f32.mrf.mxu0  ;;  %v3462_v35 = vmul.f32 %v3195_v31, %v3195_v31 }
 0x235   : > { %v4339_v18 = vpop.f32.mrf.mxu1  ;;  %v3829_v4 = vpack.c.bf16 %v3193_v53, %v3193_v53  ;;  %v3407_v14 = vsel %vm588_vm4, %v3193_v53, 0.0  ;;  %v3460_v41 = vmul.f32 %v3193_v53, %v3193_v53  ;;  %3356 = vst.msk [vmem:[%s4471_s14 + $0x5c] sm:$0xf] %vm3332_vm5, %v3831_v10  ;;  %v3198_v27 = vadd.f32 %v4372_v5, %v2904_v39 }
 0x236   : > { %v3511_v12 = vadd.f32 %v3510_v50, %v3509_v29  ;;  %v3408_v25 = vadd.f32 %v3407_v14, %v3406_v7  ;;  %v3196_v15 = vadd.f32 %v3141_v11, %v2902_v24  ;;  %v4376_v49 = vpop.f32.mrf.mxu0  ;;  %v3409_v42 = vsel %vm588_vm4, %v3194_v63, 0.0 }
 0x237   : > { %v2850_v43 = vpop.f32.mrf.mxu1  ;;  %3354 = vst.msk [vmem:[%s4471_s14 + $0x54] sm:$0xf] %vm3332_vm5, %v3829_v4  ;;  %v3512_v62 = vsel %vm588_vm4, %v3460_v41, 0.0  ;;  %v2905_v22 = vadd.f32 %v4339_v18, %v5656_v37  ;;  %v3514_v54 = vsel %vm588_vm4, %v3461_v52, 0.0  ;;  %v3834_v2 = vpack.c.bf16 %v3198_v27, %v3198_v27 }
 0x238   : > { %v2903_v55 = vadd.f32 %v2850_v43, %v5659_v36  ;;  %v3410_v21 = vadd.f32 %v3409_v42, %v3408_v25  ;;  %v3513_v20 = vadd.f32 %v3512_v62, %v3511_v12  ;;  %v3411_v46 = vsel %vm588_vm4, %v3195_v31, 0.0  ;;  %v3157_v45 = vpop.f32.mrf.mxu0 }
 0x239   : > { %v4342_v58 = vpop.f32.mrf.mxu1  ;;  %v3516_v48 = vsel %vm588_vm4, %v3462_v35, 0.0  ;;  %v3832_v38 = vpack.c.bf16 %v3196_v15, %v3196_v15  ;;  %v3463_v32 = vmul.f32 %v3196_v15, %v3196_v15  ;;  %3359 = vst.msk [vmem:[%s4471_s14 + $0x68] sm:$0xf] %vm3332_vm5, %v3834_v2  ;;  %v3199_v44 = vadd.f32 %v4373_v34, %v2905_v22 }
 0x23a   : > { %v3515_v63 = vadd.f32 %v3514_v54, %v3513_v20  ;;  %v3412_v37 = vadd.f32 %v3411_v46, %v3410_v21  ;;  %v3197_v36 = vadd.f32 %v3144_v59, %v2903_v55  ;;  %v3417_v5 = vsel %vm588_vm4, %v3198_v27, 0.0  ;;  %v4377_v57 = vpop.f32.mrf.mxu0 }
 0x23b   : > { %v2863_v13 = vpop.f32.mrf.mxu1  ;;  %3357 = vst.msk [vmem:[%s4471_s14 + $0x60] sm:$0xf] %vm3332_vm5, %v3832_v38  ;;  %v3413_v23 = vsel %vm588_vm4, %v3196_v15, 0.0  ;;  %v2908_v30 = vadd.f32 %v4342_v58, %v5666_v8  ;;  %v3465_v47 = vmul.f32 %v3198_v27, %v3198_v27  ;;  %v3835_v3 = vpack.c.bf16 %v3199_v44, %v3199_v44 }
 0x23c   : > { %v2906_v60 = vadd.f32 %v2863_v13, %v5703_v0  ;;  %v3414_v51 = vadd.f32 %v3413_v23, %v3412_v37  ;;  %v3517_v17 = vadd.f32 %v3516_v48, %v3515_v63  ;;  %v3518_v28 = vsel %vm588_vm4, %v3463_v32, 0.0  ;;  %v3160_v10 = vpop.f32.mrf.mxu0 }
 0x23d   : > { %v4343_v6 = vpop.f32.mrf.mxu1  ;;  %v3833_v11 = vpack.c.bf16 %v3197_v36, %v3197_v36  ;;  %v3415_v16 = vsel %vm588_vm4, %v3197_v36, 0.0  ;;  %v3464_v19 = vmul.f32 %v3197_v36, %v3197_v36  ;;  %3360 = vst.msk [vmem:[%s4471_s14 + $0x6c] sm:$0xf] %vm3332_vm5, %v3835_v3  ;;  %v3202_v8 = vadd.f32 %v4376_v49, %v2908_v30 }
 0x23e   : > { %v3519_v1 = vadd.f32 %v3518_v28, %v3517_v17  ;;  %v3416_v56 = vadd.f32 %v3415_v16, %v3414_v51  ;;  %v3200_v9 = vadd.f32 %v3157_v45, %v2906_v60  ;;  %v3466_v31 = vmul.f32 %v3199_v44, %v3199_v44  ;;  %v3365_v60 = vld [vmem:[%s5858_s7] sm:$0x1] }
 0x23f   : > { %v2866_v0 = vpop.f32.mrf.mxu1  ;;  %3358 = vst.msk [vmem:[%s4471_s14 + $0x64] sm:$0xf] %vm3332_vm5, %v3833_v11  ;;  %v3520_v53 = vsel %vm588_vm4, %v3464_v19, 0.0  ;;  %v2909_v26 = vadd.f32 %v4343_v6, %v5716_v40  ;;  %v3838_v39 = vpack.c.bf16 %v3202_v8, %v3202_v8  ;;  %v3522_v24 = vsel %vm588_vm4, %v3465_v47, 0.0  ;;  %v3438_v17 = vld [vmem:[%s5859_s8] sm:$0x1] }
 0x240   : > { %v2907_v34 = vadd.f32 %v2866_v0, %v5735_v61  ;;  %v3418_v52 = vadd.f32 %v3417_v5, %v3416_v56  ;;  %v3521_v33 = vadd.f32 %v3520_v53, %v3519_v1  ;;  %v3419_v7 = vsel %vm588_vm4, %v3199_v44, 0.0 }
 0x241   : > { %v3836_v29 = vpack.c.bf16 %v3200_v9, %v3200_v9  ;;  %v3467_v50 = vmul.f32 %v3200_v9, %v3200_v9  ;;  %3363 = vst.msk [vmem:[%s4471_s14 + $0x78] sm:$0xf] %vm3332_vm5, %v3838_v39  ;;  %v3203_v35 = vadd.f32 %v4377_v57, %v2909_v26  ;;  %v3524_v4 = vsel %vm588_vm4, %v3466_v31, 0.0 }
 0x242   : > { %v3523_v18 = vadd.f32 %v3522_v24, %v3521_v33  ;;  %v3420_v59 = vadd.f32 %v3419_v7, %v3418_v52  ;;  %v3201_v40 = vadd.f32 %v3160_v10, %v2907_v34  ;;  %v3421_v61 = vsel %vm588_vm4, %v3200_v9, 0.0 }
 0x243   : > { %3361 = vst.msk [vmem:[%s4471_s14 + $0x70] sm:$0xf] %vm3332_vm5, %v3836_v29  ;;  %v3469_v14 = vmul.f32 %v3202_v8, %v3202_v8  ;;  %v3839_v25 = vpack.c.bf16 %v3203_v35, %v3203_v35  ;;  %v3526_v27 = vsel %vm588_vm4, %v3467_v50, 0.0  ;;  %v3425_v22 = vsel %vm588_vm4, %v3202_v8, 0.0 }
 0x244   : > { %v3422_v41 = vadd.f32 %v3421_v61, %v3420_v59  ;;  %v3525_v12 = vadd.f32 %v3524_v4, %v3523_v18  ;;  %v3837_v15 = vpack.c.bf16 %v3201_v40, %v3201_v40  ;;  %v3423_v43 = vsel %vm588_vm4, %v3201_v40, 0.0 }
 0x245   : > { %v3468_v49 = vmul.f32 %v3201_v40, %v3201_v40  ;;  %3364 = vst.msk [vmem:[%s4471_s14 + $0x7c] sm:$0xf] %vm3332_vm5, %v3839_v25  ;;  %v3470_v55 = vmul.f32 %v3203_v35, %v3203_v35  ;;  %v3530_v2 = vsel %vm588_vm4, %v3469_v14, 0.0  ;;  %v3427_v58 = vsel %vm588_vm4, %v3203_v35, 0.0 }
 0x246   : > { %v3527_v42 = vadd.f32 %v3526_v27, %v3525_v12  ;;  %v3424_v62 = vadd.f32 %v3423_v43, %v3422_v41  ;;  %3362 = vst.msk [vmem:[%s4471_s14 + $0x74] sm:$0xf] %vm3332_vm5, %v3837_v15 }
 0x247   : > { %v3528_v54 = vsel %vm588_vm4, %v3468_v49, 0.0  ;;  %v3532_v38 = vsel %vm588_vm4, %v3470_v55, 0.0 }
 0x248   : > { %v3426_v21 = vadd.f32 %v3425_v22, %v3424_v62  ;;  %v3529_v20 = vadd.f32 %v3528_v54, %v3527_v42 }
 0x24a   : > { %v3428_v46 = vadd.f32 %v3427_v58, %v3426_v21  ;;  %v3531_v48 = vadd.f32 %v3530_v2, %v3529_v20 }
 0x24c   : > { %v3429_v32 = vrot.slane %v3428_v46, 4  ;;  %v3533_v45 = vadd.f32 %v3532_v38, %v3531_v48 }
 0x24e   : > { %v3430_v63 = vadd.f32 %v3429_v32, %v3428_v46  ;;  %v3534_v37 = vrot.slane %v3533_v45, 4 }
 0x250   : > { %v3431_v44 = vrot.slane %v3430_v63, 2  ;;  %v3535_v36 = vadd.f32 %v3534_v37, %v3533_v45 }
 0x252   : > { %v3432_v13 = vadd.f32 %v3431_v44, %v3430_v63  ;;  %v3536_v5 = vrot.slane %v3535_v36, 2 }
 0x254   : > { %v3433_v23 = vrot.slane %v3432_v13, 1  ;;  %v3537_v30 = vadd.f32 %v3536_v5, %v3535_v36 }
 0x256   : > { %v3434_v47 = vadd.f32 %v3433_v23, %v3432_v13  ;;  %v3538_v51 = vrot.slane %v3537_v30, 1 }
 0x258   : > { %v3435_v3 = vadd.f32 %v3434_v47, %v3365_v60  ;;  %v3539_v6 = vadd.f32 %v3538_v51, %v3537_v30 }
 0x25a   : > { %3437 = vst.msk [vmem:[%s5858_s7] sm:$0x1] %vm3436_vm6, %v3435_v3  ;;  %v3540_v28 = vadd.f32 %v3539_v6, %v3438_v17 }
 0x25c   : > { %3541 = vst.msk [vmem:[%s5859_s8] sm:$0x1] %vm3436_vm6, %v3540_v28 }
 0x25d PF: > { %s19_s27 = sadd.s32 1, %s4407_s27  }
 0x25e   : > { %p16_p5 = scmp.ge.s32.totalorder %s19_s27, 4  }
 0x260   :  { %18 = sbr.rel (!%p16_p5) target bundleno = 1 (0x1), region = 104 }

</bundles_post_ra>
